<compile_context>
chip_gen: v6e
topology: v6e:2x2x1
jax: 0.10.0
libtpu: 0.0.40
codegen_flags: <defaults>
</compile_context>

<pallas_src>
import functools

import jax
import jax.numpy as jnp
from jax.experimental import pallas as pl
from jax.experimental.pallas import tpu as pltpu


# ----------------------------- in-kernel helpers -----------------------------


def _lstm_gates_to_state(gates, c_prev):
    """gates: (B, 4H) in (i, f, o, g) order -> (h_new, c_new)."""
    H = c_prev.shape[-1]
    ifo = jax.nn.sigmoid(gates[:, : 3 * H])
    g = jnp.tanh(gates[:, 3 * H:])
    c_new = ifo[:, H:2 * H] * c_prev + ifo[:, :H] * g
    h_new = ifo[:, 2 * H:3 * H] * jnp.tanh(c_new)
    return h_new, c_new


# ----------------------------- Pallas kernels -----------------------------


def _bilstm_kernel(x_ref, wih_ref, whh_ref, b_ref, o_ref, h_s, c_s):
    """Fused LSTM over time.  grid = (direction, time).

    x_ref:   (1, 1, B, I) block (direction d, timestep t)
    wih_ref: (1, I, 4H)   weights of direction d (VMEM-resident across t)
    whh_ref: (1, H, 4H)
    b_ref:   (1, 1, 4H)
    o_ref:   (1, 1, B, H) hidden output for (d, t)
    h_s/c_s: (B, H) VMEM scratch carrying the recurrent state across t.
    """
    @pl.when(pl.program_id(1) == 0)
    def _():
        h_s[...] = jnp.zeros_like(h_s)
        c_s[...] = jnp.zeros_like(c_s)

    h = h_s[...]
    c = c_s[...]
    gates = (jnp.dot(x_ref[0, 0], wih_ref[0], preferred_element_type=jnp.float32)
             + jnp.dot(h, whh_ref[0], preferred_element_type=jnp.float32)
             + b_ref[0])
    h_new, c_new = _lstm_gates_to_state(gates, c)
    o_ref[0, 0] = h_new
    h_s[...] = h_new
    c_s[...] = c_new


def _mlp3_kernel(x_ref, w0_ref, b0_ref, w1_ref, b1_ref, w2_ref, b2_ref, o_ref):
    """Fused Linear-ReLU-Linear-ReLU-Linear (used for the hoisted psi chain)."""
    f32 = jnp.float32
    y = jnp.maximum(
        jnp.dot(x_ref[...], w0_ref[...], preferred_element_type=f32) + b0_ref[...], 0.0)
    y = jnp.maximum(
        jnp.dot(y, w1_ref[...], preferred_element_type=f32) + b1_ref[...], 0.0)
    o_ref[...] = jnp.dot(y, w2_ref[...], preferred_element_type=f32) + b2_ref[...]


def _dec_start_kernel(x_ref, wh_ref, bh_ref, wc_ref, bc_ref, h_ref, c_ref):
    f32 = jnp.float32
    x = x_ref[...]
    h_ref[...] = jnp.dot(x, wh_ref[...], preferred_element_type=f32) + bh_ref[...]
    c_ref[...] = jnp.dot(x, wc_ref[...], preferred_element_type=f32) + bc_ref[...]


def _decoder_kernel(tok_ref, emb_ref, psis_ref, h_init_ref, c_init_ref,
                    w0e_ref, w0c_ref, w0h_ref, b0_ref,
                    w1x_ref, w1h_ref, b1_ref,
                    phi0w_ref, phi0b_ref, phi1w_ref, phi1b_ref, phi2w_ref, phi2b_ref,
                    p0h_ref, p0c_ref, p0b_ref, p1w_ref, p1b_ref,
                    logits_ref,
                    h0_s, c0_s, h1_s, c1_s, ctx_s):
    """One fused decode step per grid iteration (teacher forcing).

    All decoder weights + the precomputed psi(encoded) support stay resident in
    VMEM (constant index_map); h0/c0/h1/c1/context carried in VMEM scratch.
    """
    f32 = jnp.float32

    def phi(state):
        q = jnp.maximum(
            jnp.dot(state, phi0w_ref[...], preferred_element_type=f32) + phi0b_ref[...], 0.0)
        q = jnp.maximum(
            jnp.dot(q, phi1w_ref[...], preferred_element_type=f32) + phi1b_ref[...], 0.0)
        return jnp.dot(q, phi2w_ref[...], preferred_element_type=f32) + phi2b_ref[...]

    def attend_pool(state):
        s = psis_ref[...]                                   # (B, T, C) support = psi(encoded)
        q = phi(state)                                      # (B, C)
        # scores = bmm(support, query) on the MXU -> (B, T, 1)
        scores = jax.lax.dot_general(
            s, q[:, :, None], (((2,), (1,)), ((0,), (0,))),
            preferred_element_type=f32)
        scores = scores - jnp.max(scores, axis=1, keepdims=True)
        e = jnp.exp(scores)
        p = e * pl.reciprocal(jnp.sum(e, axis=1, keepdims=True), approx=True)
        return jnp.sum(s * p, axis=1)                       # (B, C)

    @pl.when(pl.program_id(0) == 0)
    def _():
        h0_s[...] = h_init_ref[0]
        c0_s[...] = c_init_ref[0]
        h1_s[...] = h_init_ref[1]
        c1_s[...] = c_init_ref[1]
        # initial context = attention(prev_h[1], encoded)
        ctx_s[...] = attend_pool(h_init_ref[1])

    # Embedding lookup as a one-hot matmul (MXU-friendly gather).
    tok = tok_ref[0]                                        # (B, 1) int32
    B = tok.shape[0]
    V = emb_ref.shape[0]
    onehot = (jax.lax.broadcasted_iota(jnp.int32, (B, V), 1) == tok).astype(f32)
    emb = jnp.dot(onehot, emb_ref[...], preferred_element_type=f32)       # (B, E)

    # Layer-0 LSTM cell: input = [emb ; prev_context]  (weights split to avoid
    # in-kernel lane concatenation).
    g0 = (jnp.dot(emb, w0e_ref[...], preferred_element_type=f32)
          + jnp.dot(ctx_s[...], w0c_ref[...], preferred_element_type=f32)
          + jnp.dot(h0_s[...], w0h_ref[...], preferred_element_type=f32)
          + b0_ref[...])
    h0, c0 = _lstm_gates_to_state(g0, c0_s[...])

    # Layer-1 LSTM cell: input = h0.
    g1 = (jnp.dot(h0, w1x_ref[...], preferred_element_type=f32)
          + jnp.dot(h1_s[...], w1h_ref[...], preferred_element_type=f32)
          + b1_ref[...])
    h1, c1 = _lstm_gates_to_state(g1, c1_s[...])

    new_ctx = attend_pool(h1)

    # Predictor: Linear-ReLU-Linear on [h1 ; new_context].
    y = jnp.maximum(
        jnp.dot(h1, p0h_ref[...], preferred_element_type=f32)
        + jnp.dot(new_ctx, p0c_ref[...], preferred_element_type=f32)
        + p0b_ref[...], 0.0)
    logits = jnp.dot(y, p1w_ref[...], preferred_element_type=f32) + p1b_ref[...]

    logits_ref[0] = logits
    h0_s[...] = h0
    c0_s[...] = c0
    h1_s[...] = h1
    c1_s[...] = c1
    ctx_s[...] = new_ctx


# ----------------------------- kernel wrappers -----------------------------


def bilstm(x, p):
    """Bidirectional LSTM layer.  x: (B, T, I) -> (B, T, 2H). One pallas_call."""
    B, T, I = x.shape
    wih, whh, b = p["wih"], p["whh"], p["b"]
    H = whh.shape[-1] // 4
    xt = jnp.transpose(x, (1, 0, 2))                  # (T, B, I)
    x_both = jnp.stack([xt, xt[::-1]], axis=0)        # (2, T, B, I): fwd, time-reversed

    out = pl.pallas_call(
        _bilstm_kernel,
        grid=(2, T),
        in_specs=[
            pl.BlockSpec((1, 1, B, I), lambda d, t: (d, t, 0, 0)),
            pl.BlockSpec((1, I, 4 * H), lambda d, t: (d, 0, 0)),
            pl.BlockSpec((1, H, 4 * H), lambda d, t: (d, 0, 0)),
            pl.BlockSpec((1, 1, 4 * H), lambda d, t: (d, 0, 0)),
        ],
        out_specs=pl.BlockSpec((1, 1, B, H), lambda d, t: (d, t, 0, 0)),
        out_shape=jax.ShapeDtypeStruct((2, T, B, H), jnp.float32),
        scratch_shapes=[pltpu.VMEM((B, H), jnp.float32),
                        pltpu.VMEM((B, H), jnp.float32)],
        compiler_params=pltpu.CompilerParams(
            dimension_semantics=("parallel", "arbitrary")),
    )(x_both, wih, whh, b)

    fwd = out[0]                                      # (T, B, H)
    bwd = out[1][::-1]                                # un-reverse time
    y = jnp.concatenate([fwd, bwd], axis=-1)          # (T, B, 2H)
    return jnp.transpose(y, (1, 0, 2))                # (B, T, 2H)


def listen(x, enc_params):
    """Pyramidal BLSTM encoder. x: (B, T, F) -> (B, T / 2**n_layers, 2H)."""
    x = bilstm(x, enc_params["blstm"])
    for p in enc_params["layers"]:
        n, l, f = x.shape
        if l % 2 == 1:                                # matches torch.cat((x, x[:, -1:]), 1)
            x = jnp.concatenate([x, x[:, -1:, :]], axis=1)
            l += 1
        x = x.reshape(n, l // 2, f * 2)
        x = bilstm(x, p)
    return x


def psi_project(encoded, att):
    """Hoisted psi(encoded): computed once, reused for every decode step."""
    # TODO(synk): at production sizes (H~512, long T) tile rows with a grid and
    # cap vmem_limit_bytes for v7x's smaller VMEM; a single block is fine here.
    B, T, F = encoded.shape
    w0, b0 = att["psi0"]
    w1, b1 = att["psi1"]
    w2, b2 = att["psi2"]
    x2 = encoded.reshape(B * T, F)
    out = pl.pallas_call(
        _mlp3_kernel,
        out_shape=jax.ShapeDtypeStruct((B * T, w2.shape[1]), jnp.float32),
    )(x2, w0, b0, w1, b1, w2, b2)
    return out.reshape(B, T, w2.shape[1])


def decode_teacher_forced(targets, prev_h, prev_c, psi_s, dec):
    """Run all decode steps in one pallas_call.  Returns (B, L-1, V) logits."""
    n_steps = targets.shape[1] - 1
    B, H = prev_h.shape[1], prev_h.shape[2]
    V = dec["embedding"].shape[0]
    C = psi_s.shape[2]
    tokens = jnp.transpose(targets[:, :n_steps], (1, 0))[:, :, None]   # (L-1, B, 1)

    att = dec["attention"]
    resident = [dec["embedding"], psi_s, prev_h, prev_c,
                dec["lstm0_we"], dec["lstm0_wc"], dec["lstm0_wh"], dec["lstm0_b"],
                dec["lstm1_wx"], dec["lstm1_wh"], dec["lstm1_b"],
                att["phi0"][0], att["phi0"][1],
                att["phi1"][0], att["phi1"][1],
                att["phi2"][0], att["phi2"][1],
                dec["pred0_wh"], dec["pred0_wc"], dec["pred0_b"],
                dec["pred1_w"], dec["pred1_b"]]

    def _const_spec(arr):
        zeros = (0,) * arr.ndim
        return pl.BlockSpec(arr.shape, lambda t, _z=zeros: _z)

    in_specs = ([pl.BlockSpec((1, B, 1), lambda t: (t, 0, 0))]
                + [_const_spec(a) for a in resident])

    logits = pl.pallas_call(
        _decoder_kernel,
        grid=(n_steps,),
        in_specs=in_specs,
        out_specs=pl.BlockSpec((1, B, V), lambda t: (t, 0, 0)),
        out_shape=jax.ShapeDtypeStruct((n_steps, B, V), jnp.float32),
        scratch_shapes=[pltpu.VMEM((B, H), jnp.float32)] * 4
                       + [pltpu.VMEM((B, C), jnp.float32)],
        compiler_params=pltpu.CompilerParams(dimension_semantics=("arbitrary",)),
    )(tokens, *resident)
    return jnp.transpose(logits, (1, 0, 2))            # (B, L-1, V)


# ----------------------------- full forward -----------------------------


def las_forward(specs, specs_len, targets, params, bos_idx, vocab_size):
    # specs: (B, F, T) like x['specs']; transpose(2,1) -> (B, T, F)
    x = jnp.transpose(specs, (0, 2, 1))
    encoded = listen(x, params["encoder"])              # (B, T_enc, 2H)
    B = encoded.shape[0]

    # Mirrors the PyTorch module exactly: the *downsampled* encoder output is
    # indexed with specs_len - 1 (caller must pass indices valid post-pyramid).
    last_hidden = encoded[jnp.arange(B), specs_len - 1]  # (B, 2H)

    prev_h, prev_c = pl.pallas_call(
        _dec_start_kernel,
        out_shape=(jax.ShapeDtypeStruct(last_hidden.shape, jnp.float32),
                   jax.ShapeDtypeStruct(last_hidden.shape, jnp.float32)),
    )(last_hidden, *params["dec_start_h"], *params["dec_start_c"])
    H2 = last_hidden.shape[1]
    prev_h = prev_h.reshape(B, H2 // 2, 2).transpose(2, 0, 1)   # (2, B, H)
    prev_c = prev_c.reshape(B, H2 // 2, 2).transpose(2, 0, 1)

    dec = params["decoder"]
    psi_s = psi_project(encoded, dec["attention"])       # hoisted out of decode loop

    bos = jnp.log(jax.nn.one_hot(jnp.full((B,), bos_idx), vocab_size) + 1e-9)
    bos = bos[:, None, :].astype(jnp.float32)

    if targets.shape[1] - 1 == 0:
        return bos
    # TODO(synk): scheduled sampling (Bernoulli / Categorical draws) omitted;
    # this is the sampling_from_prev_rate=0 teacher-forcing branch.
    step_logits = decode_teacher_forced(targets, prev_h, prev_c, psi_s, dec)
    return jnp.concatenate([bos, step_logits], axis=1)


# ----------------------------- parameter init -----------------------------


def _init(key, shape, scale=0.08):
    return scale * jax.random.normal(key, shape, dtype=jnp.float32)


def init_linear(key, n_in, n_out):
    k1, k2 = jax.random.split(key)
    return (_init(k1, (n_in, n_out)), _init(k2, (1, n_out)))


def init_bilstm(key, n_in, hidden):
    # Weights of both directions stacked on a leading axis; gate order (i,f,o,g);
    # bias = b_ih + b_hh combined.
    k1, k2, k3 = jax.random.split(key, 3)
    return {"wih": _init(k1, (2, n_in, 4 * hidden)),
            "whh": _init(k2, (2, hidden, 4 * hidden)),
            "b": _init(k3, (2, 1, 4 * hidden))}


def init_las_params(key, *, vocab_size, padding_idx, input_size, hidden_size,
                    emb_size, context_size, encoder_n_layers):
    keys = iter(jax.random.split(key, 64))
    H = hidden_size
    enc = {
        "blstm": init_bilstm(next(keys), input_size, H),
        "layers": [init_bilstm(next(keys), 4 * H, H) for _ in range(encoder_n_layers)],
    }
    emb = _init(next(keys), (vocab_size, emb_size))
    emb = emb.at[padding_idx].set(0.0)                  # padding_idx row is zero
    dec = {
        "embedding": emb,
        "attention": {
            "phi0": init_linear(next(keys), H, 3 * H),
            "phi1": init_linear(next(keys), 3 * H, 3 * H),
            "phi2": init_linear(next(keys), 3 * H, context_size),
            "psi0": init_linear(next(keys), 2 * H, 3 * H),
            "psi1": init_linear(next(keys), 3 * H, 3 * H),
            "psi2": init_linear(next(keys), 3 * H, context_size),
        },
        # decoder LSTM layer 0: input = [emb ; context], split weights
        "lstm0_we": _init(next(keys), (emb_size, 4 * H)),
        "lstm0_wc": _init(next(keys), (context_size, 4 * H)),
        "lstm0_wh": _init(next(keys), (H, 4 * H)),
        "lstm0_b": _init(next(keys), (1, 4 * H)),
        # decoder LSTM layer 1
        "lstm1_wx": _init(next(keys), (H, 4 * H)),
        "lstm1_wh": _init(next(keys), (H, 4 * H)),
        "lstm1_b": _init(next(keys), (1, 4 * H)),
        # predictor: Linear(context+hidden -> 2H) split, ReLU, Linear(2H -> V)
        "pred0_wh": _init(next(keys), (H, 2 * H)),
        "pred0_wc": _init(next(keys), (context_size, 2 * H)),
        "pred0_b": _init(next(keys), (1, 2 * H)),
        "pred1_w": _init(next(keys), (2 * H, vocab_size)),
        "pred1_b": _init(next(keys), (1, vocab_size)),
    }
    return {
        "encoder": enc,
        "decoder": dec,
        "dec_start_h": init_linear(next(keys), 2 * H, 2 * H),
        "dec_start_c": init_linear(next(keys), 2 * H, 2 * H),
    }


# ----------------------------- main -----------------------------

if __name__ == "__main__":
    B, F_IN, T = 2, 16, 8            # batch, spec feature dim, spec time
    H = 32                           # hidden_size
    V = 16                           # vocab_size
    E = 32                           # emb_size
    C = 32                           # context_size (== hidden_size, as required by Spell)
    N_ENC_LAYERS = 2                 # pyramid layers: T 8 -> 4 -> 2
    L_TGT = 4                        # target sequence length
    BOS_IDX, PAD_IDX = 1, 0

    key = jax.random.PRNGKey(0)
    k_param, k_spec, k_tgt = jax.random.split(key, 3)

    params = init_las_params(
        k_param, vocab_size=V, padding_idx=PAD_IDX, input_size=F_IN,
        hidden_size=H, emb_size=E, context_size=C, encoder_n_layers=N_ENC_LAYERS)

    specs = jax.random.normal(k_spec, (B, F_IN, T), dtype=jnp.float32)
    specs_len = jnp.array([2, 1], dtype=jnp.int32)   # indices valid for encoded length 2
    targets = jax.random.randint(k_tgt, (B, L_TGT), 0, V, dtype=jnp.int32)

    fwd = jax.jit(functools.partial(las_forward, bos_idx=BOS_IDX, vocab_size=V))
    out = fwd(specs, specs_len, targets, params)
    out = jax.block_until_ready(out)

    assert out.shape == (B, L_TGT, V), out.shape
    assert jnp.all(jnp.isfinite(out))
    print("KERNEL_OK")
</pallas_src>

<mosaic_0001>
module attributes {stable_mosaic.version = 11 : i64} {
  func.func @_bilstm_kernel(%arg0: i32, %arg1: i32, %arg2: memref<1x1x2x16xf32, #tpu.memory_space<vmem>>, %arg3: memref<1x16x128xf32, #tpu.memory_space<vmem>>, %arg4: memref<1x32x128xf32, #tpu.memory_space<vmem>>, %arg5: memref<1x1x128xf32, #tpu.memory_space<vmem>>, %arg6: memref<1x1x2x32xf32, #tpu.memory_space<vmem>>, %arg7: memref<2x32xf32, #tpu.memory_space<vmem>>, %arg8: memref<2x32xf32, #tpu.memory_space<vmem>>) attributes {dimension_semantics = [#tpu.dimension_semantics<parallel>, #tpu.dimension_semantics<arbitrary>], iteration_bounds = array<i64: 2, 8>, scalar_prefetch = 0 : i64, scratch_operands = 2 : i64, tpu.core_type = #tpu.core_type<tc>, window_params = [{transform_indices = @transform_0, window_bounds = array<i64: 1, 1, 2, 16>}, {transform_indices = @transform_1, window_bounds = array<i64: 1, 16, 128>}, {transform_indices = @transform_2, window_bounds = array<i64: 1, 32, 128>}, {transform_indices = @transform_3, window_bounds = array<i64: 1, 1, 128>}, {transform_indices = @transform_4, window_bounds = array<i64: 1, 1, 2, 32>}]} {
    %c0_i32 = arith.constant 0 : i32
    %0 = arith.cmpi eq, %arg1, %c0_i32 : i32
    %1 = arith.extui %0 : i1 to i32
    %c0_i32_0 = arith.constant 0 : i32
    %2 = arith.cmpi ne, %1, %c0_i32_0 : i32
    scf.if %2 {
      %cst_27 = arith.constant 0.000000e+00 : f32
      %39 = vector.broadcast %cst_27 : f32 to vector<2x32xf32>
      %c0_28 = arith.constant 0 : index
      %c0_29 = arith.constant 0 : index
      %40 = vector.load %arg7[%c0_28, %c0_29] : memref<2x32xf32, #tpu.memory_space<vmem>>, vector<2x32xf32>
      tpu.vector_store %arg7[%c0_28, %c0_29], %39 {strides = array<i32>} : memref<2x32xf32, #tpu.memory_space<vmem>>, vector<2x32xf32>,
      %cst_30 = arith.constant 0.000000e+00 : f32
      %41 = vector.broadcast %cst_30 : f32 to vector<2x32xf32>
      %c0_31 = arith.constant 0 : index
      %c0_32 = arith.constant 0 : index
      %42 = vector.load %arg8[%c0_31, %c0_32] : memref<2x32xf32, #tpu.memory_space<vmem>>, vector<2x32xf32>
      tpu.vector_store %arg8[%c0_31, %c0_32], %41 {strides = array<i32>} : memref<2x32xf32, #tpu.memory_space<vmem>>, vector<2x32xf32>,
    } else {
    }
    %c0 = arith.constant 0 : index
    %c0_1 = arith.constant 0 : index
    %3 = vector.load %arg7[%c0, %c0_1] : memref<2x32xf32, #tpu.memory_space<vmem>>, vector<2x32xf32>
    %c0_2 = arith.constant 0 : index
    %c0_3 = arith.constant 0 : index
    %4 = vector.load %arg8[%c0_2, %c0_3] : memref<2x32xf32, #tpu.memory_space<vmem>>, vector<2x32xf32>
    %c0_4 = arith.constant 0 : index
    %c0_5 = arith.constant 0 : index
    %c0_6 = arith.constant 0 : index
    %c0_7 = arith.constant 0 : index
    %5 = vector.load %arg2[%c0_4, %c0_5, %c0_6, %c0_7] : memref<1x1x2x16xf32, #tpu.memory_space<vmem>>, vector<1x1x2x16xf32>
    %6 = vector.shape_cast %5 : vector<1x1x2x16xf32> to vector<2x16xf32>
    %c0_8 = arith.constant 0 : index
    %c0_9 = arith.constant 0 : index
    %c0_10 = arith.constant 0 : index
    %7 = vector.load %arg3[%c0_8, %c0_9, %c0_10] : memref<1x16x128xf32, #tpu.memory_space<vmem>>, vector<1x16x128xf32>
    %8 = vector.shape_cast %7 : vector<1x16x128xf32> to vector<16x128xf32>
    %cst = arith.constant dense<0.000000e+00> : vector<2x128xf32>
    %9 = tpu.matmul %6, %8, %cst {dimension_numbers = #tpu.dot_dimension_numbers<[1], [0], [0], [1], [0, 0, 1, 1], [], []>} : vector<2x16xf32>, vector<16x128xf32>, vector<2x128xf32> -> vector<2x128xf32>
    %c0_11 = arith.constant 0 : index
    %c0_12 = arith.constant 0 : index
    %c0_13 = arith.constant 0 : index
    %10 = vector.load %arg4[%c0_11, %c0_12, %c0_13] : memref<1x32x128xf32, #tpu.memory_space<vmem>>, vector<1x32x128xf32>
    %11 = vector.shape_cast %10 : vector<1x32x128xf32> to vector<32x128xf32>
    %cst_14 = arith.constant dense<0.000000e+00> : vector<2x128xf32>
    %12 = tpu.matmul %3, %11, %cst_14 {dimension_numbers = #tpu.dot_dimension_numbers<[1], [0], [0], [1], [0, 0, 1, 1], [], []>} : vector<2x32xf32>, vector<32x128xf32>, vector<2x128xf32> -> vector<2x128xf32>
    %13 = arith.addf %9, %12 : vector<2x128xf32>
    %c0_15 = arith.constant 0 : index
    %c0_16 = arith.constant 0 : index
    %c0_17 = arith.constant 0 : index
    %14 = vector.load %arg5[%c0_15, %c0_16, %c0_17] : memref<1x1x128xf32, #tpu.memory_space<vmem>>, vector<1x1x128xf32>
    %15 = vector.shape_cast %14 : vector<1x1x128xf32> to vector<1x128xf32>
    %16 = vector.broadcast %15 : vector<1x128xf32> to vector<2x128xf32>
    %17 = arith.addf %13, %16 : vector<2x128xf32>
    %18 = vector.extract_strided_slice %17 {offsets = [0, 0], sizes = [2, 96], strides = [1, 1]} : vector<2x128xf32> to vector<2x96xf32>
    %19 = arith.negf %18 : vector<2x96xf32>
    %20 = math.exp %19 : vector<2x96xf32>
    %cst_18 = arith.constant 1.000000e+00 : f32
    %21 = vector.broadcast %cst_18 : f32 to vector<2x96xf32>
    %22 = arith.addf %21, %20 : vector<2x96xf32>
    %23 = arith.divf %21, %22 : vector<2x96xf32>
    %24 = vector.extract_strided_slice %17 {offsets = [0, 96], sizes = [2, 32], strides = [1, 1]} : vector<2x128xf32> to vector<2x32xf32>
    %25 = math.tanh %24 : vector<2x32xf32>
    %26 = vector.extract_strided_slice %23 {offsets = [0, 32], sizes = [2, 32], strides = [1, 1]} : vector<2x96xf32> to vector<2x32xf32>
    %27 = arith.mulf %26, %4 : vector<2x32xf32>
    %28 = vector.extract_strided_slice %23 {offsets = [0, 0], sizes = [2, 32], strides = [1, 1]} : vector<2x96xf32> to vector<2x32xf32>
    %29 = arith.mulf %28, %25 : vector<2x32xf32>
    %30 = arith.addf %27, %29 : vector<2x32xf32>
    %31 = vector.extract_strided_slice %23 {offsets = [0, 64], sizes = [2, 32], strides = [1, 1]} : vector<2x96xf32> to vector<2x32xf32>
    %32 = math.tanh %30 : vector<2x32xf32>
    %33 = arith.mulf %31, %32 : vector<2x32xf32>
    %c0_19 = arith.constant 0 : index
    %c0_20 = arith.constant 0 : index
    %c0_21 = arith.constant 0 : index
    %c0_22 = arith.constant 0 : index
    %34 = vector.load %arg6[%c0_19, %c0_20, %c0_21, %c0_22] : memref<1x1x2x32xf32, #tpu.memory_space<vmem>>, vector<1x1x2x32xf32>
    %35 = vector.shape_cast %34 : vector<1x1x2x32xf32> to vector<2x32xf32>
    %36 = vector.shape_cast %33 : vector<2x32xf32> to vector<1x1x2x32xf32>
    tpu.vector_store %arg6[%c0_19, %c0_20, %c0_21, %c0_22], %36 {strides = array<i32>} : memref<1x1x2x32xf32, #tpu.memory_space<vmem>>, vector<1x1x2x32xf32>,
    %c0_23 = arith.constant 0 : index
    %c0_24 = arith.constant 0 : index
    %37 = vector.load %arg7[%c0_23, %c0_24] : memref<2x32xf32, #tpu.memory_space<vmem>>, vector<2x32xf32>
    tpu.vector_store %arg7[%c0_23, %c0_24], %33 {strides = array<i32>} : memref<2x32xf32, #tpu.memory_space<vmem>>, vector<2x32xf32>,
    %c0_25 = arith.constant 0 : index
    %c0_26 = arith.constant 0 : index
    %38 = vector.load %arg8[%c0_25, %c0_26] : memref<2x32xf32, #tpu.memory_space<vmem>>, vector<2x32xf32>
    tpu.vector_store %arg8[%c0_25, %c0_26], %30 {strides = array<i32>} : memref<2x32xf32, #tpu.memory_space<vmem>>, vector<2x32xf32>,
    return
  }
  func.func @transform_0(%arg0: i32, %arg1: i32) -> (i32, i32, i32, i32) {
    %c0_i32 = arith.constant 0 : i32
    %c0_i32_0 = arith.constant 0 : i32
    %c0_i32_1 = arith.constant 0 : i32
    return %arg0, %arg1, %c0_i32, %c0_i32_0 : i32, i32, i32, i32
  }
  func.func @transform_1(%arg0: i32, %arg1: i32) -> (i32, i32, i32) {
    %c0_i32 = arith.constant 0 : i32
    %c0_i32_0 = arith.constant 0 : i32
    %c0_i32_1 = arith.constant 0 : i32
    return %arg0, %c0_i32, %c0_i32_0 : i32, i32, i32
  }
  func.func @transform_2(%arg0: i32, %arg1: i32) -> (i32, i32, i32) {
    %c0_i32 = arith.constant 0 : i32
    %c0_i32_0 = arith.constant 0 : i32
    %c0_i32_1 = arith.constant 0 : i32
    return %arg0, %c0_i32, %c0_i32_0 : i32, i32, i32
  }
  func.func @transform_3(%arg0: i32, %arg1: i32) -> (i32, i32, i32) {
    %c0_i32 = arith.constant 0 : i32
    %c0_i32_0 = arith.constant 0 : i32
    %c0_i32_1 = arith.constant 0 : i32
    return %arg0, %c0_i32, %c0_i32_0 : i32, i32, i32
  }
  func.func @transform_4(%arg0: i32, %arg1: i32) -> (i32, i32, i32, i32) {
    %c0_i32 = arith.constant 0 : i32
    %c0_i32_0 = arith.constant 0 : i32
    %c0_i32_1 = arith.constant 0 : i32
    return %arg0, %arg1, %c0_i32, %c0_i32_0 : i32, i32, i32, i32
  }
}

module attributes {stable_mosaic.version = 11 : i64} {
  func.func @_bilstm_kernel(%arg0: i32, %arg1: i32, %arg2: memref<1x1x2x128xf32, #tpu.memory_space<vmem>>, %arg3: memref<1x128x128xf32, #tpu.memory_space<vmem>>, %arg4: memref<1x32x128xf32, #tpu.memory_space<vmem>>, %arg5: memref<1x1x128xf32, #tpu.memory_space<vmem>>, %arg6: memref<1x1x2x32xf32, #tpu.memory_space<vmem>>, %arg7: memref<2x32xf32, #tpu.memory_space<vmem>>, %arg8: memref<2x32xf32, #tpu.memory_space<vmem>>) attributes {dimension_semantics = [#tpu.dimension_semantics<parallel>, #tpu.dimension_semantics<arbitrary>], iteration_bounds = array<i64: 2, 4>, scalar_prefetch = 0 : i64, scratch_operands = 2 : i64, tpu.core_type = #tpu.core_type<tc>, window_params = [{transform_indices = @transform_0, window_bounds = array<i64: 1, 1, 2, 128>}, {transform_indices = @transform_1, window_bounds = array<i64: 1, 128, 128>}, {transform_indices = @transform_2, window_bounds = array<i64: 1, 32, 128>}, {transform_indices = @transform_3, window_bounds = array<i64: 1, 1, 128>}, {transform_indices = @transform_4, window_bounds = array<i64: 1, 1, 2, 32>}]} {
    %c0_i32 = arith.constant 0 : i32
    %0 = arith.cmpi eq, %arg1, %c0_i32 : i32
    %1 = arith.extui %0 : i1 to i32
    %c0_i32_0 = arith.constant 0 : i32
    %2 = arith.cmpi ne, %1, %c0_i32_0 : i32
    scf.if %2 {
      %cst_27 = arith.constant 0.000000e+00 : f32
      %39 = vector.broadcast %cst_27 : f32 to vector<2x32xf32>
      %c0_28 = arith.constant 0 : index
      %c0_29 = arith.constant 0 : index
      %40 = vector.load %arg7[%c0_28, %c0_29] : memref<2x32xf32, #tpu.memory_space<vmem>>, vector<2x32xf32>
      tpu.vector_store %arg7[%c0_28, %c0_29], %39 {strides = array<i32>} : memref<2x32xf32, #tpu.memory_space<vmem>>, vector<2x32xf32>,
      %cst_30 = arith.constant 0.000000e+00 : f32
      %41 = vector.broadcast %cst_30 : f32 to vector<2x32xf32>
      %c0_31 = arith.constant 0 : index
      %c0_32 = arith.constant 0 : index
      %42 = vector.load %arg8[%c0_31, %c0_32] : memref<2x32xf32, #tpu.memory_space<vmem>>, vector<2x32xf32>
      tpu.vector_store %arg8[%c0_31, %c0_32], %41 {strides = array<i32>} : memref<2x32xf32, #tpu.memory_space<vmem>>, vector<2x32xf32>,
    } else {
    }
    %c0 = arith.constant 0 : index
    %c0_1 = arith.constant 0 : index
    %3 = vector.load %arg7[%c0, %c0_1] : memref<2x32xf32, #tpu.memory_space<vmem>>, vector<2x32xf32>
    %c0_2 = arith.constant 0 : index
    %c0_3 = arith.constant 0 : index
    %4 = vector.load %arg8[%c0_2, %c0_3] : memref<2x32xf32, #tpu.memory_space<vmem>>, vector<2x32xf32>
    %c0_4 = arith.constant 0 : index
    %c0_5 = arith.constant 0 : index
    %c0_6 = arith.constant 0 : index
    %c0_7 = arith.constant 0 : index
    %5 = vector.load %arg2[%c0_4, %c0_5, %c0_6, %c0_7] : memref<1x1x2x128xf32, #tpu.memory_space<vmem>>, vector<1x1x2x128xf32>
    %6 = vector.shape_cast %5 : vector<1x1x2x128xf32> to vector<2x128xf32>
    %c0_8 = arith.constant 0 : index
    %c0_9 = arith.constant 0 : index
    %c0_10 = arith.constant 0 : index
    %7 = vector.load %arg3[%c0_8, %c0_9, %c0_10] : memref<1x128x128xf32, #tpu.memory_space<vmem>>, vector<1x128x128xf32>
    %8 = vector.shape_cast %7 : vector<1x128x128xf32> to vector<128x128xf32>
    %cst = arith.constant dense<0.000000e+00> : vector<2x128xf32>
    %9 = tpu.matmul %6, %8, %cst {dimension_numbers = #tpu.dot_dimension_numbers<[1], [0], [0], [1], [0, 0, 1, 1], [], []>} : vector<2x128xf32>, vector<128x128xf32>, vector<2x128xf32> -> vector<2x128xf32>
    %c0_11 = arith.constant 0 : index
    %c0_12 = arith.constant 0 : index
    %c0_13 = arith.constant 0 : index
    %10 = vector.load %arg4[%c0_11, %c0_12, %c0_13] : memref<1x32x128xf32, #tpu.memory_space<vmem>>, vector<1x32x128xf32>
    %11 = vector.shape_cast %10 : vector<1x32x128xf32> to vector<32x128xf32>
    %cst_14 = arith.constant dense<0.000000e+00> : vector<2x128xf32>
    %12 = tpu.matmul %3, %11, %cst_14 {dimension_numbers = #tpu.dot_dimension_numbers<[1], [0], [0], [1], [0, 0, 1, 1], [], []>} : vector<2x32xf32>, vector<32x128xf32>, vector<2x128xf32> -> vector<2x128xf32>
    %13 = arith.addf %9, %12 : vector<2x128xf32>
    %c0_15 = arith.constant 0 : index
    %c0_16 = arith.constant 0 : index
    %c0_17 = arith.constant 0 : index
    %14 = vector.load %arg5[%c0_15, %c0_16, %c0_17] : memref<1x1x128xf32, #tpu.memory_space<vmem>>, vector<1x1x128xf32>
    %15 = vector.shape_cast %14 : vector<1x1x128xf32> to vector<1x128xf32>
    %16 = vector.broadcast %15 : vector<1x128xf32> to vector<2x128xf32>
    %17 = arith.addf %13, %16 : vector<2x128xf32>
    %18 = vector.extract_strided_slice %17 {offsets = [0, 0], sizes = [2, 96], strides = [1, 1]} : vector<2x128xf32> to vector<2x96xf32>
    %19 = arith.negf %18 : vector<2x96xf32>
    %20 = math.exp %19 : vector<2x96xf32>
    %cst_18 = arith.constant 1.000000e+00 : f32
    %21 = vector.broadcast %cst_18 : f32 to vector<2x96xf32>
    %22 = arith.addf %21, %20 : vector<2x96xf32>
    %23 = arith.divf %21, %22 : vector<2x96xf32>
    %24 = vector.extract_strided_slice %17 {offsets = [0, 96], sizes = [2, 32], strides = [1, 1]} : vector<2x128xf32> to vector<2x32xf32>
    %25 = math.tanh %24 : vector<2x32xf32>
    %26 = vector.extract_strided_slice %23 {offsets = [0, 32], sizes = [2, 32], strides = [1, 1]} : vector<2x96xf32> to vector<2x32xf32>
    %27 = arith.mulf %26, %4 : vector<2x32xf32>
    %28 = vector.extract_strided_slice %23 {offsets = [0, 0], sizes = [2, 32], strides = [1, 1]} : vector<2x96xf32> to vector<2x32xf32>
    %29 = arith.mulf %28, %25 : vector<2x32xf32>
    %30 = arith.addf %27, %29 : vector<2x32xf32>
    %31 = vector.extract_strided_slice %23 {offsets = [0, 64], sizes = [2, 32], strides = [1, 1]} : vector<2x96xf32> to vector<2x32xf32>
    %32 = math.tanh %30 : vector<2x32xf32>
    %33 = arith.mulf %31, %32 : vector<2x32xf32>
    %c0_19 = arith.constant 0 : index
    %c0_20 = arith.constant 0 : index
    %c0_21 = arith.constant 0 : index
    %c0_22 = arith.constant 0 : index
    %34 = vector.load %arg6[%c0_19, %c0_20, %c0_21, %c0_22] : memref<1x1x2x32xf32, #tpu.memory_space<vmem>>, vector<1x1x2x32xf32>
    %35 = vector.shape_cast %34 : vector<1x1x2x32xf32> to vector<2x32xf32>
    %36 = vector.shape_cast %33 : vector<2x32xf32> to vector<1x1x2x32xf32>
    tpu.vector_store %arg6[%c0_19, %c0_20, %c0_21, %c0_22], %36 {strides = array<i32>} : memref<1x1x2x32xf32, #tpu.memory_space<vmem>>, vector<1x1x2x32xf32>,
    %c0_23 = arith.constant 0 : index
    %c0_24 = arith.constant 0 : index
    %37 = vector.load %arg7[%c0_23, %c0_24] : memref<2x32xf32, #tpu.memory_space<vmem>>, vector<2x32xf32>
    tpu.vector_store %arg7[%c0_23, %c0_24], %33 {strides = array<i32>} : memref<2x32xf32, #tpu.memory_space<vmem>>, vector<2x32xf32>,
    %c0_25 = arith.constant 0 : index
    %c0_26 = arith.constant 0 : index
    %38 = vector.load %arg8[%c0_25, %c0_26] : memref<2x32xf32, #tpu.memory_space<vmem>>, vector<2x32xf32>
    tpu.vector_store %arg8[%c0_25, %c0_26], %30 {strides = array<i32>} : memref<2x32xf32, #tpu.memory_space<vmem>>, vector<2x32xf32>,
    return
  }
  func.func @transform_0(%arg0: i32, %arg1: i32) -> (i32, i32, i32, i32) {
    %c0_i32 = arith.constant 0 : i32
    %c0_i32_0 = arith.constant 0 : i32
    %c0_i32_1 = arith.constant 0 : i32
    return %arg0, %arg1, %c0_i32, %c0_i32_0 : i32, i32, i32, i32
  }
  func.func @transform_1(%arg0: i32, %arg1: i32) -> (i32, i32, i32) {
    %c0_i32 = arith.constant 0 : i32
    %c0_i32_0 = arith.constant 0 : i32
    %c0_i32_1 = arith.constant 0 : i32
    return %arg0, %c0_i32, %c0_i32_0 : i32, i32, i32
  }
  func.func @transform_2(%arg0: i32, %arg1: i32) -> (i32, i32, i32) {
    %c0_i32 = arith.constant 0 : i32
    %c0_i32_0 = arith.constant 0 : i32
    %c0_i32_1 = arith.constant 0 : i32
    return %arg0, %c0_i32, %c0_i32_0 : i32, i32, i32
  }
  func.func @transform_3(%arg0: i32, %arg1: i32) -> (i32, i32, i32) {
    %c0_i32 = arith.constant 0 : i32
    %c0_i32_0 = arith.constant 0 : i32
    %c0_i32_1 = arith.constant 0 : i32
    return %arg0, %c0_i32, %c0_i32_0 : i32, i32, i32
  }
  func.func @transform_4(%arg0: i32, %arg1: i32) -> (i32, i32, i32, i32) {
    %c0_i32 = arith.constant 0 : i32
    %c0_i32_0 = arith.constant 0 : i32
    %c0_i32_1 = arith.constant 0 : i32
    return %arg0, %arg1, %c0_i32, %c0_i32_0 : i32, i32, i32, i32
  }
}

module attributes {stable_mosaic.version = 11 : i64} {
  func.func @_bilstm_kernel(%arg0: i32, %arg1: i32, %arg2: memref<1x1x2x128xf32, #tpu.memory_space<vmem>>, %arg3: memref<1x128x128xf32, #tpu.memory_space<vmem>>, %arg4: memref<1x32x128xf32, #tpu.memory_space<vmem>>, %arg5: memref<1x1x128xf32, #tpu.memory_space<vmem>>, %arg6: memref<1x1x2x32xf32, #tpu.memory_space<vmem>>, %arg7: memref<2x32xf32, #tpu.memory_space<vmem>>, %arg8: memref<2x32xf32, #tpu.memory_space<vmem>>) attributes {dimension_semantics = [#tpu.dimension_semantics<parallel>, #tpu.dimension_semantics<arbitrary>], iteration_bounds = array<i64: 2, 2>, scalar_prefetch = 0 : i64, scratch_operands = 2 : i64, tpu.core_type = #tpu.core_type<tc>, window_params = [{transform_indices = @transform_0, window_bounds = array<i64: 1, 1, 2, 128>}, {transform_indices = @transform_1, window_bounds = array<i64: 1, 128, 128>}, {transform_indices = @transform_2, window_bounds = array<i64: 1, 32, 128>}, {transform_indices = @transform_3, window_bounds = array<i64: 1, 1, 128>}, {transform_indices = @transform_4, window_bounds = array<i64: 1, 1, 2, 32>}]} {
    %c0_i32 = arith.constant 0 : i32
    %0 = arith.cmpi eq, %arg1, %c0_i32 : i32
    %1 = arith.extui %0 : i1 to i32
    %c0_i32_0 = arith.constant 0 : i32
    %2 = arith.cmpi ne, %1, %c0_i32_0 : i32
    scf.if %2 {
      %cst_27 = arith.constant 0.000000e+00 : f32
      %39 = vector.broadcast %cst_27 : f32 to vector<2x32xf32>
      %c0_28 = arith.constant 0 : index
      %c0_29 = arith.constant 0 : index
      %40 = vector.load %arg7[%c0_28, %c0_29] : memref<2x32xf32, #tpu.memory_space<vmem>>, vector<2x32xf32>
      tpu.vector_store %arg7[%c0_28, %c0_29], %39 {strides = array<i32>} : memref<2x32xf32, #tpu.memory_space<vmem>>, vector<2x32xf32>,
      %cst_30 = arith.constant 0.000000e+00 : f32
      %41 = vector.broadcast %cst_30 : f32 to vector<2x32xf32>
      %c0_31 = arith.constant 0 : index
      %c0_32 = arith.constant 0 : index
      %42 = vector.load %arg8[%c0_31, %c0_32] : memref<2x32xf32, #tpu.memory_space<vmem>>, vector<2x32xf32>
      tpu.vector_store %arg8[%c0_31, %c0_32], %41 {strides = array<i32>} : memref<2x32xf32, #tpu.memory_space<vmem>>, vector<2x32xf32>,
    } else {
    }
    %c0 = arith.constant 0 : index
    %c0_1 = arith.constant 0 : index
    %3 = vector.load %arg7[%c0, %c0_1] : memref<2x32xf32, #tpu.memory_space<vmem>>, vector<2x32xf32>
    %c0_2 = arith.constant 0 : index
    %c0_3 = arith.constant 0 : index
    %4 = vector.load %arg8[%c0_2, %c0_3] : memref<2x32xf32, #tpu.memory_space<vmem>>, vector<2x32xf32>
    %c0_4 = arith.constant 0 : index
    %c0_5 = arith.constant 0 : index
    %c0_6 = arith.constant 0 : index
    %c0_7 = arith.constant 0 : index
    %5 = vector.load %arg2[%c0_4, %c0_5, %c0_6, %c0_7] : memref<1x1x2x128xf32, #tpu.memory_space<vmem>>, vector<1x1x2x128xf32>
    %6 = vector.shape_cast %5 : vector<1x1x2x128xf32> to vector<2x128xf32>
    %c0_8 = arith.constant 0 : index
    %c0_9 = arith.constant 0 : index
    %c0_10 = arith.constant 0 : index
    %7 = vector.load %arg3[%c0_8, %c0_9, %c0_10] : memref<1x128x128xf32, #tpu.memory_space<vmem>>, vector<1x128x128xf32>
    %8 = vector.shape_cast %7 : vector<1x128x128xf32> to vector<128x128xf32>
    %cst = arith.constant dense<0.000000e+00> : vector<2x128xf32>
    %9 = tpu.matmul %6, %8, %cst {dimension_numbers = #tpu.dot_dimension_numbers<[1], [0], [0], [1], [0, 0, 1, 1], [], []>} : vector<2x128xf32>, vector<128x128xf32>, vector<2x128xf32> -> vector<2x128xf32>
    %c0_11 = arith.constant 0 : index
    %c0_12 = arith.constant 0 : index
    %c0_13 = arith.constant 0 : index
    %10 = vector.load %arg4[%c0_11, %c0_12, %c0_13] : memref<1x32x128xf32, #tpu.memory_space<vmem>>, vector<1x32x128xf32>
    %11 = vector.shape_cast %10 : vector<1x32x128xf32> to vector<32x128xf32>
    %cst_14 = arith.constant dense<0.000000e+00> : vector<2x128xf32>
    %12 = tpu.matmul %3, %11, %cst_14 {dimension_numbers = #tpu.dot_dimension_numbers<[1], [0], [0], [1], [0, 0, 1, 1], [], []>} : vector<2x32xf32>, vector<32x128xf32>, vector<2x128xf32> -> vector<2x128xf32>
    %13 = arith.addf %9, %12 : vector<2x128xf32>
    %c0_15 = arith.constant 0 : index
    %c0_16 = arith.constant 0 : index
    %c0_17 = arith.constant 0 : index
    %14 = vector.load %arg5[%c0_15, %c0_16, %c0_17] : memref<1x1x128xf32, #tpu.memory_space<vmem>>, vector<1x1x128xf32>
    %15 = vector.shape_cast %14 : vector<1x1x128xf32> to vector<1x128xf32>
    %16 = vector.broadcast %15 : vector<1x128xf32> to vector<2x128xf32>
    %17 = arith.addf %13, %16 : vector<2x128xf32>
    %18 = vector.extract_strided_slice %17 {offsets = [0, 0], sizes = [2, 96], strides = [1, 1]} : vector<2x128xf32> to vector<2x96xf32>
    %19 = arith.negf %18 : vector<2x96xf32>
    %20 = math.exp %19 : vector<2x96xf32>
    %cst_18 = arith.constant 1.000000e+00 : f32
    %21 = vector.broadcast %cst_18 : f32 to vector<2x96xf32>
    %22 = arith.addf %21, %20 : vector<2x96xf32>
    %23 = arith.divf %21, %22 : vector<2x96xf32>
    %24 = vector.extract_strided_slice %17 {offsets = [0, 96], sizes = [2, 32], strides = [1, 1]} : vector<2x128xf32> to vector<2x32xf32>
    %25 = math.tanh %24 : vector<2x32xf32>
    %26 = vector.extract_strided_slice %23 {offsets = [0, 32], sizes = [2, 32], strides = [1, 1]} : vector<2x96xf32> to vector<2x32xf32>
    %27 = arith.mulf %26, %4 : vector<2x32xf32>
    %28 = vector.extract_strided_slice %23 {offsets = [0, 0], sizes = [2, 32], strides = [1, 1]} : vector<2x96xf32> to vector<2x32xf32>
    %29 = arith.mulf %28, %25 : vector<2x32xf32>
    %30 = arith.addf %27, %29 : vector<2x32xf32>
    %31 = vector.extract_strided_slice %23 {offsets = [0, 64], sizes = [2, 32], strides = [1, 1]} : vector<2x96xf32> to vector<2x32xf32>
    %32 = math.tanh %30 : vector<2x32xf32>
    %33 = arith.mulf %31, %32 : vector<2x32xf32>
    %c0_19 = arith.constant 0 : index
    %c0_20 = arith.constant 0 : index
    %c0_21 = arith.constant 0 : index
    %c0_22 = arith.constant 0 : index
    %34 = vector.load %arg6[%c0_19, %c0_20, %c0_21, %c0_22] : memref<1x1x2x32xf32, #tpu.memory_space<vmem>>, vector<1x1x2x32xf32>
    %35 = vector.shape_cast %34 : vector<1x1x2x32xf32> to vector<2x32xf32>
    %36 = vector.shape_cast %33 : vector<2x32xf32> to vector<1x1x2x32xf32>
    tpu.vector_store %arg6[%c0_19, %c0_20, %c0_21, %c0_22], %36 {strides = array<i32>} : memref<1x1x2x32xf32, #tpu.memory_space<vmem>>, vector<1x1x2x32xf32>,
    %c0_23 = arith.constant 0 : index
    %c0_24 = arith.constant 0 : index
    %37 = vector.load %arg7[%c0_23, %c0_24] : memref<2x32xf32, #tpu.memory_space<vmem>>, vector<2x32xf32>
    tpu.vector_store %arg7[%c0_23, %c0_24], %33 {strides = array<i32>} : memref<2x32xf32, #tpu.memory_space<vmem>>, vector<2x32xf32>,
    %c0_25 = arith.constant 0 : index
    %c0_26 = arith.constant 0 : index
    %38 = vector.load %arg8[%c0_25, %c0_26] : memref<2x32xf32, #tpu.memory_space<vmem>>, vector<2x32xf32>
    tpu.vector_store %arg8[%c0_25, %c0_26], %30 {strides = array<i32>} : memref<2x32xf32, #tpu.memory_space<vmem>>, vector<2x32xf32>,
    return
  }
  func.func @transform_0(%arg0: i32, %arg1: i32) -> (i32, i32, i32, i32) {
    %c0_i32 = arith.constant 0 : i32
    %c0_i32_0 = arith.constant 0 : i32
    %c0_i32_1 = arith.constant 0 : i32
    return %arg0, %arg1, %c0_i32, %c0_i32_0 : i32, i32, i32, i32
  }
  func.func @transform_1(%arg0: i32, %arg1: i32) -> (i32, i32, i32) {
    %c0_i32 = arith.constant 0 : i32
    %c0_i32_0 = arith.constant 0 : i32
    %c0_i32_1 = arith.constant 0 : i32
    return %arg0, %c0_i32, %c0_i32_0 : i32, i32, i32
  }
  func.func @transform_2(%arg0: i32, %arg1: i32) -> (i32, i32, i32) {
    %c0_i32 = arith.constant 0 : i32
    %c0_i32_0 = arith.constant 0 : i32
    %c0_i32_1 = arith.constant 0 : i32
    return %arg0, %c0_i32, %c0_i32_0 : i32, i32, i32
  }
  func.func @transform_3(%arg0: i32, %arg1: i32) -> (i32, i32, i32) {
    %c0_i32 = arith.constant 0 : i32
    %c0_i32_0 = arith.constant 0 : i32
    %c0_i32_1 = arith.constant 0 : i32
    return %arg0, %c0_i32, %c0_i32_0 : i32, i32, i32
  }
  func.func @transform_4(%arg0: i32, %arg1: i32) -> (i32, i32, i32, i32) {
    %c0_i32 = arith.constant 0 : i32
    %c0_i32_0 = arith.constant 0 : i32
    %c0_i32_1 = arith.constant 0 : i32
    return %arg0, %arg1, %c0_i32, %c0_i32_0 : i32, i32, i32, i32
  }
}

module attributes {stable_mosaic.version = 11 : i64} {
  func.func @_dec_start_kernel(%arg0: memref<2x64xf32, #tpu.memory_space<vmem>>, %arg1: memref<64x64xf32, #tpu.memory_space<vmem>>, %arg2: memref<1x64xf32, #tpu.memory_space<vmem>>, %arg3: memref<64x64xf32, #tpu.memory_space<vmem>>, %arg4: memref<1x64xf32, #tpu.memory_space<vmem>>, %arg5: memref<2x64xf32, #tpu.memory_space<vmem>>, %arg6: memref<2x64xf32, #tpu.memory_space<vmem>>) attributes {dimension_semantics = [], scalar_prefetch = 0 : i64, scratch_operands = 0 : i64, tpu.core_type = #tpu.core_type<tc>} {
    %c0 = arith.constant 0 : index
    %c0_0 = arith.constant 0 : index
    %0 = vector.load %arg0[%c0, %c0_0] : memref<2x64xf32, #tpu.memory_space<vmem>>, vector<2x64xf32>
    %c0_1 = arith.constant 0 : index
    %c0_2 = arith.constant 0 : index
    %1 = vector.load %arg1[%c0_1, %c0_2] : memref<64x64xf32, #tpu.memory_space<vmem>>, vector<64x64xf32>
    %cst = arith.constant dense<0.000000e+00> : vector<2x64xf32>
    %2 = tpu.matmul %0, %1, %cst {dimension_numbers = #tpu.dot_dimension_numbers<[1], [0], [0], [1], [0, 0, 1, 1], [], []>} : vector<2x64xf32>, vector<64x64xf32>, vector<2x64xf32> -> vector<2x64xf32>
    %c0_3 = arith.constant 0 : index
    %c0_4 = arith.constant 0 : index
    %3 = vector.load %arg2[%c0_3, %c0_4] : memref<1x64xf32, #tpu.memory_space<vmem>>, vector<1x64xf32>
    %4 = vector.broadcast %3 : vector<1x64xf32> to vector<2x64xf32>
    %5 = arith.addf %2, %4 : vector<2x64xf32>
    %c0_5 = arith.constant 0 : index
    %c0_6 = arith.constant 0 : index
    %6 = vector.load %arg5[%c0_5, %c0_6] : memref<2x64xf32, #tpu.memory_space<vmem>>, vector<2x64xf32>
    tpu.vector_store %arg5[%c0_5, %c0_6], %5 {strides = array<i32>} : memref<2x64xf32, #tpu.memory_space<vmem>>, vector<2x64xf32>,
    %c0_7 = arith.constant 0 : index
    %c0_8 = arith.constant 0 : index
    %7 = vector.load %arg3[%c0_7, %c0_8] : memref<64x64xf32, #tpu.memory_space<vmem>>, vector<64x64xf32>
    %cst_9 = arith.constant dense<0.000000e+00> : vector<2x64xf32>
    %8 = tpu.matmul %0, %7, %cst_9 {dimension_numbers = #tpu.dot_dimension_numbers<[1], [0], [0], [1], [0, 0, 1, 1], [], []>} : vector<2x64xf32>, vector<64x64xf32>, vector<2x64xf32> -> vector<2x64xf32>
    %c0_10 = arith.constant 0 : index
    %c0_11 = arith.constant 0 : index
    %9 = vector.load %arg4[%c0_10, %c0_11] : memref<1x64xf32, #tpu.memory_space<vmem>>, vector<1x64xf32>
    %10 = vector.broadcast %9 : vector<1x64xf32> to vector<2x64xf32>
    %11 = arith.addf %8, %10 : vector<2x64xf32>
    %c0_12 = arith.constant 0 : index
    %c0_13 = arith.constant 0 : index
    %12 = vector.load %arg6[%c0_12, %c0_13] : memref<2x64xf32, #tpu.memory_space<vmem>>, vector<2x64xf32>
    tpu.vector_store %arg6[%c0_12, %c0_13], %11 {strides = array<i32>} : memref<2x64xf32, #tpu.memory_space<vmem>>, vector<2x64xf32>,
    return
  }
}

module attributes {stable_mosaic.version = 11 : i64} {
  func.func @_mlp3_kernel(%arg0: memref<4x64xf32, #tpu.memory_space<vmem>>, %arg1: memref<64x96xf32, #tpu.memory_space<vmem>>, %arg2: memref<1x96xf32, #tpu.memory_space<vmem>>, %arg3: memref<96x96xf32, #tpu.memory_space<vmem>>, %arg4: memref<1x96xf32, #tpu.memory_space<vmem>>, %arg5: memref<96x32xf32, #tpu.memory_space<vmem>>, %arg6: memref<1x32xf32, #tpu.memory_space<vmem>>, %arg7: memref<4x32xf32, #tpu.memory_space<vmem>>) attributes {dimension_semantics = [], scalar_prefetch = 0 : i64, scratch_operands = 0 : i64, tpu.core_type = #tpu.core_type<tc>} {
    %c0 = arith.constant 0 : index
    %c0_0 = arith.constant 0 : index
    %0 = vector.load %arg0[%c0, %c0_0] : memref<4x64xf32, #tpu.memory_space<vmem>>, vector<4x64xf32>
    %c0_1 = arith.constant 0 : index
    %c0_2 = arith.constant 0 : index
    %1 = vector.load %arg1[%c0_1, %c0_2] : memref<64x96xf32, #tpu.memory_space<vmem>>, vector<64x96xf32>
    %cst = arith.constant dense<0.000000e+00> : vector<4x96xf32>
    %2 = tpu.matmul %0, %1, %cst {dimension_numbers = #tpu.dot_dimension_numbers<[1], [0], [0], [1], [0, 0, 1, 1], [], []>} : vector<4x64xf32>, vector<64x96xf32>, vector<4x96xf32> -> vector<4x96xf32>
    %c0_3 = arith.constant 0 : index
    %c0_4 = arith.constant 0 : index
    %3 = vector.load %arg2[%c0_3, %c0_4] : memref<1x96xf32, #tpu.memory_space<vmem>>, vector<1x96xf32>
    %4 = vector.broadcast %3 : vector<1x96xf32> to vector<4x96xf32>
    %5 = arith.addf %2, %4 : vector<4x96xf32>
    %cst_5 = arith.constant 0.000000e+00 : f32
    %6 = vector.broadcast %cst_5 : f32 to vector<4x96xf32>
    %7 = arith.maximumf %5, %6 : vector<4x96xf32>
    %c0_6 = arith.constant 0 : index
    %c0_7 = arith.constant 0 : index
    %8 = vector.load %arg3[%c0_6, %c0_7] : memref<96x96xf32, #tpu.memory_space<vmem>>, vector<96x96xf32>
    %cst_8 = arith.constant dense<0.000000e+00> : vector<4x96xf32>
    %9 = tpu.matmul %7, %8, %cst_8 {dimension_numbers = #tpu.dot_dimension_numbers<[1], [0], [0], [1], [0, 0, 1, 1], [], []>} : vector<4x96xf32>, vector<96x96xf32>, vector<4x96xf32> -> vector<4x96xf32>
    %c0_9 = arith.constant 0 : index
    %c0_10 = arith.constant 0 : index
    %10 = vector.load %arg4[%c0_9, %c0_10] : memref<1x96xf32, #tpu.memory_space<vmem>>, vector<1x96xf32>
    %11 = vector.broadcast %10 : vector<1x96xf32> to vector<4x96xf32>
    %12 = arith.addf %9, %11 : vector<4x96xf32>
    %cst_11 = arith.constant 0.000000e+00 : f32
    %13 = vector.broadcast %cst_11 : f32 to vector<4x96xf32>
    %14 = arith.maximumf %12, %13 : vector<4x96xf32>
    %c0_12 = arith.constant 0 : index
    %c0_13 = arith.constant 0 : index
    %15 = vector.load %arg5[%c0_12, %c0_13] : memref<96x32xf32, #tpu.memory_space<vmem>>, vector<96x32xf32>
    %cst_14 = arith.constant dense<0.000000e+00> : vector<4x32xf32>
    %16 = tpu.matmul %14, %15, %cst_14 {dimension_numbers = #tpu.dot_dimension_numbers<[1], [0], [0], [1], [0, 0, 1, 1], [], []>} : vector<4x96xf32>, vector<96x32xf32>, vector<4x32xf32> -> vector<4x32xf32>
    %c0_15 = arith.constant 0 : index
    %c0_16 = arith.constant 0 : index
    %17 = vector.load %arg6[%c0_15, %c0_16] : memref<1x32xf32, #tpu.memory_space<vmem>>, vector<1x32xf32>
    %18 = vector.broadcast %17 : vector<1x32xf32> to vector<4x32xf32>
    %19 = arith.addf %16, %18 : vector<4x32xf32>
    %c0_17 = arith.constant 0 : index
    %c0_18 = arith.constant 0 : index
    %20 = vector.load %arg7[%c0_17, %c0_18] : memref<4x32xf32, #tpu.memory_space<vmem>>, vector<4x32xf32>
    tpu.vector_store %arg7[%c0_17, %c0_18], %19 {strides = array<i32>} : memref<4x32xf32, #tpu.memory_space<vmem>>, vector<4x32xf32>,
    return
  }
}

module attributes {stable_mosaic.version = 11 : i64} {
  func.func @_decoder_kernel(%arg0: i32, %arg1: memref<1x2x1xi32, #tpu.memory_space<vmem>>, %arg2: memref<16x32xf32, #tpu.memory_space<vmem>>, %arg3: memref<2x2x32xf32, #tpu.memory_space<vmem>>, %arg4: memref<2x2x32xf32, #tpu.memory_space<vmem>>, %arg5: memref<2x2x32xf32, #tpu.memory_space<vmem>>, %arg6: memref<32x128xf32, #tpu.memory_space<vmem>>, %arg7: memref<32x128xf32, #tpu.memory_space<vmem>>, %arg8: memref<32x128xf32, #tpu.memory_space<vmem>>, %arg9: memref<1x128xf32, #tpu.memory_space<vmem>>, %arg10: memref<32x128xf32, #tpu.memory_space<vmem>>, %arg11: memref<32x128xf32, #tpu.memory_space<vmem>>, %arg12: memref<1x128xf32, #tpu.memory_space<vmem>>, %arg13: memref<32x96xf32, #tpu.memory_space<vmem>>, %arg14: memref<1x96xf32, #tpu.memory_space<vmem>>, %arg15: memref<96x96xf32, #tpu.memory_space<vmem>>, %arg16: memref<1x96xf32, #tpu.memory_space<vmem>>, %arg17: memref<96x32xf32, #tpu.memory_space<vmem>>, %arg18: memref<1x32xf32, #tpu.memory_space<vmem>>, %arg19: memref<32x64xf32, #tpu.memory_space<vmem>>, %arg20: memref<32x64xf32, #tpu.memory_space<vmem>>, %arg21: memref<1x64xf32, #tpu.memory_space<vmem>>, %arg22: memref<64x16xf32, #tpu.memory_space<vmem>>, %arg23: memref<1x16xf32, #tpu.memory_space<vmem>>, %arg24: memref<1x2x16xf32, #tpu.memory_space<vmem>>, %arg25: memref<2x32xf32, #tpu.memory_space<vmem>>, %arg26: memref<2x32xf32, #tpu.memory_space<vmem>>, %arg27: memref<2x32xf32, #tpu.memory_space<vmem>>, %arg28: memref<2x32xf32, #tpu.memory_space<vmem>>, %arg29: memref<2x32xf32, #tpu.memory_space<vmem>>) attributes {dimension_semantics = [#tpu.dimension_semantics<arbitrary>], iteration_bounds = array<i64: 3>, scalar_prefetch = 0 : i64, scratch_operands = 5 : i64, tpu.core_type = #tpu.core_type<tc>, window_params = [{transform_indices = @transform_0, window_bounds = array<i64: 1, 2, 1>}, {pipeline_mode = #tpu.pipeline_mode<synchronous>, transform_indices = @transform_1, window_bounds = array<i64: 16, 32>}, {pipeline_mode = #tpu.pipeline_mode<synchronous>, transform_indices = @transform_2, window_bounds = array<i64: 2, 2, 32>}, {pipeline_mode = #tpu.pipeline_mode<synchronous>, transform_indices = @transform_3, window_bounds = array<i64: 2, 2, 32>}, {pipeline_mode = #tpu.pipeline_mode<synchronous>, transform_indices = @transform_4, window_bounds = array<i64: 2, 2, 32>}, {pipeline_mode = #tpu.pipeline_mode<synchronous>, transform_indices = @transform_5, window_bounds = array<i64: 32, 128>}, {pipeline_mode = #tpu.pipeline_mode<synchronous>, transform_indices = @transform_6, window_bounds = array<i64: 32, 128>}, {pipeline_mode = #tpu.pipeline_mode<synchronous>, transform_indices = @transform_7, window_bounds = array<i64: 32, 128>}, {pipeline_mode = #tpu.pipeline_mode<synchronous>, transform_indices = @transform_8, window_bounds = array<i64: 1, 128>}, {pipeline_mode = #tpu.pipeline_mode<synchronous>, transform_indices = @transform_9, window_bounds = array<i64: 32, 128>}, {pipeline_mode = #tpu.pipeline_mode<synchronous>, transform_indices = @transform_10, window_bounds = array<i64: 32, 128>}, {pipeline_mode = #tpu.pipeline_mode<synchronous>, transform_indices = @transform_11, window_bounds = array<i64: 1, 128>}, {pipeline_mode = #tpu.pipeline_mode<synchronous>, transform_indices = @transform_12, window_bounds = array<i64: 32, 96>}, {pipeline_mode = #tpu.pipeline_mode<synchronous>, transform_indices = @transform_13, window_bounds = array<i64: 1, 96>}, {pipeline_mode = #tpu.pipeline_mode<synchronous>, transform_indices = @transform_14, window_bounds = array<i64: 96, 96>}, {pipeline_mode = #tpu.pipeline_mode<synchronous>, transform_indices = @transform_15, window_bounds = array<i64: 1, 96>}, {pipeline_mode = #tpu.pipeline_mode<synchronous>, transform_indices = @transform_16, window_bounds = array<i64: 96, 32>}, {pipeline_mode = #tpu.pipeline_mode<synchronous>, transform_indices = @transform_17, window_bounds = array<i64: 1, 32>}, {pipeline_mode = #tpu.pipeline_mode<synchronous>, transform_indices = @transform_18, window_bounds = array<i64: 32, 64>}, {pipeline_mode = #tpu.pipeline_mode<synchronous>, transform_indices = @transform_19, window_bounds = array<i64: 32, 64>}, {pipeline_mode = #tpu.pipeline_mode<synchronous>, transform_indices = @transform_20, window_bounds = array<i64: 1, 64>}, {pipeline_mode = #tpu.pipeline_mode<synchronous>, transform_indices = @transform_21, window_bounds = array<i64: 64, 16>}, {pipeline_mode = #tpu.pipeline_mode<synchronous>, transform_indices = @transform_22, window_bounds = array<i64: 1, 16>}, {transform_indices = @transform_23, window_bounds = array<i64: 1, 2, 16>}]} {
    %c0_i32 = arith.constant 0 : i32
    %0 = arith.cmpi eq, %arg0, %c0_i32 : i32
    %1 = arith.extui %0 : i1 to i32
    %c0_i32_0 = arith.constant 0 : i32
    %2 = arith.cmpi ne, %1, %c0_i32_0 : i32
    scf.if %2 {
      %c0_87 = arith.constant 0 : index
      %c0_88 = arith.constant 0 : index
      %c0_89 = arith.constant 0 : index
      %126 = vector.load %arg4[%c0_87, %c0_88, %c0_89] : memref<2x2x32xf32, #tpu.memory_space<vmem>>, vector<1x2x32xf32>
      %127 = vector.shape_cast %126 : vector<1x2x32xf32> to vector<2x32xf32>
      %c0_90 = arith.constant 0 : index
      %c0_91 = arith.constant 0 : index
      %128 = vector.load %arg25[%c0_90, %c0_91] : memref<2x32xf32, #tpu.memory_space<vmem>>, vector<2x32xf32>
      tpu.vector_store %arg25[%c0_90, %c0_91], %127 {strides = array<i32>} : memref<2x32xf32, #tpu.memory_space<vmem>>, vector<2x32xf32>,
      %c0_92 = arith.constant 0 : index
      %c0_93 = arith.constant 0 : index
      %c0_94 = arith.constant 0 : index
      %129 = vector.load %arg5[%c0_92, %c0_93, %c0_94] : memref<2x2x32xf32, #tpu.memory_space<vmem>>, vector<1x2x32xf32>
      %130 = vector.shape_cast %129 : vector<1x2x32xf32> to vector<2x32xf32>
      %c0_95 = arith.constant 0 : index
      %c0_96 = arith.constant 0 : index
      %131 = vector.load %arg26[%c0_95, %c0_96] : memref<2x32xf32, #tpu.memory_space<vmem>>, vector<2x32xf32>
      tpu.vector_store %arg26[%c0_95, %c0_96], %130 {strides = array<i32>} : memref<2x32xf32, #tpu.memory_space<vmem>>, vector<2x32xf32>,
      %c1 = arith.constant 1 : index
      %c0_97 = arith.constant 0 : index
      %c0_98 = arith.constant 0 : index
      %132 = vector.load %arg4[%c1, %c0_97, %c0_98] : memref<2x2x32xf32, #tpu.memory_space<vmem>>, vector<1x2x32xf32>
      %133 = vector.shape_cast %132 : vector<1x2x32xf32> to vector<2x32xf32>
      %c0_99 = arith.constant 0 : index
      %c0_100 = arith.constant 0 : index
      %134 = vector.load %arg27[%c0_99, %c0_100] : memref<2x32xf32, #tpu.memory_space<vmem>>, vector<2x32xf32>
      tpu.vector_store %arg27[%c0_99, %c0_100], %133 {strides = array<i32>} : memref<2x32xf32, #tpu.memory_space<vmem>>, vector<2x32xf32>,
      %c1_101 = arith.constant 1 : index
      %c0_102 = arith.constant 0 : index
      %c0_103 = arith.constant 0 : index
      %135 = vector.load %arg5[%c1_101, %c0_102, %c0_103] : memref<2x2x32xf32, #tpu.memory_space<vmem>>, vector<1x2x32xf32>
      %136 = vector.shape_cast %135 : vector<1x2x32xf32> to vector<2x32xf32>
      %c0_104 = arith.constant 0 : index
      %c0_105 = arith.constant 0 : index
      %137 = vector.load %arg28[%c0_104, %c0_105] : memref<2x32xf32, #tpu.memory_space<vmem>>, vector<2x32xf32>
      tpu.vector_store %arg28[%c0_104, %c0_105], %136 {strides = array<i32>} : memref<2x32xf32, #tpu.memory_space<vmem>>, vector<2x32xf32>,
      %c1_106 = arith.constant 1 : index
      %c0_107 = arith.constant 0 : index
      %c0_108 = arith.constant 0 : index
      %138 = vector.load %arg4[%c1_106, %c0_107, %c0_108] : memref<2x2x32xf32, #tpu.memory_space<vmem>>, vector<1x2x32xf32>
      %139 = vector.shape_cast %138 : vector<1x2x32xf32> to vector<2x32xf32>
      %c0_109 = arith.constant 0 : index
      %c0_110 = arith.constant 0 : index
      %c0_111 = arith.constant 0 : index
      %140 = vector.load %arg3[%c0_109, %c0_110, %c0_111] : memref<2x2x32xf32, #tpu.memory_space<vmem>>, vector<2x2x32xf32>
      %c0_112 = arith.constant 0 : index
      %c0_113 = arith.constant 0 : index
      %141 = vector.load %arg13[%c0_112, %c0_113] : memref<32x96xf32, #tpu.memory_space<vmem>>, vector<32x96xf32>
      %cst_114 = arith.constant dense<0.000000e+00> : vector<2x96xf32>
      %142 = tpu.matmul %139, %141, %cst_114 {dimension_numbers = #tpu.dot_dimension_numbers<[1], [0], [0], [1], [0, 0, 1, 1], [], []>} : vector<2x32xf32>, vector<32x96xf32>, vector<2x96xf32> -> vector<2x96xf32>
      %c0_115 = arith.constant 0 : index
      %c0_116 = arith.constant 0 : index
      %143 = vector.load %arg14[%c0_115, %c0_116] : memref<1x96xf32, #tpu.memory_space<vmem>>, vector<1x96xf32>
      %144 = vector.broadcast %143 : vector<1x96xf32> to vector<2x96xf32>
      %145 = arith.addf %142, %144 : vector<2x96xf32>
      %cst_117 = arith.constant 0.000000e+00 : f32
      %146 = vector.broadcast %cst_117 : f32 to vector<2x96xf32>
      %147 = arith.maximumf %145, %146 : vector<2x96xf32>
      %c0_118 = arith.constant 0 : index
      %c0_119 = arith.constant 0 : index
      %148 = vector.load %arg15[%c0_118, %c0_119] : memref<96x96xf32, #tpu.memory_space<vmem>>, vector<96x96xf32>
      %cst_120 = arith.constant dense<0.000000e+00> : vector<2x96xf32>
      %149 = tpu.matmul %147, %148, %cst_120 {dimension_numbers = #tpu.dot_dimension_numbers<[1], [0], [0], [1], [0, 0, 1, 1], [], []>} : vector<2x96xf32>, vector<96x96xf32>, vector<2x96xf32> -> vector<2x96xf32>
      %c0_121 = arith.constant 0 : index
      %c0_122 = arith.constant 0 : index
      %150 = vector.load %arg16[%c0_121, %c0_122] : memref<1x96xf32, #tpu.memory_space<vmem>>, vector<1x96xf32>
      %151 = vector.broadcast %150 : vector<1x96xf32> to vector<2x96xf32>
      %152 = arith.addf %149, %151 : vector<2x96xf32>
      %cst_123 = arith.constant 0.000000e+00 : f32
      %153 = vector.broadcast %cst_123 : f32 to vector<2x96xf32>
      %154 = arith.maximumf %152, %153 : vector<2x96xf32>
      %c0_124 = arith.constant 0 : index
      %c0_125 = arith.constant 0 : index
      %155 = vector.load %arg17[%c0_124, %c0_125] : memref<96x32xf32, #tpu.memory_space<vmem>>, vector<96x32xf32>
      %cst_126 = arith.constant dense<0.000000e+00> : vector<2x32xf32>
      %156 = tpu.matmul %154, %155, %cst_126 {dimension_numbers = #tpu.dot_dimension_numbers<[1], [0], [0], [1], [0, 0, 1, 1], [], []>} : vector<2x96xf32>, vector<96x32xf32>, vector<2x32xf32> -> vector<2x32xf32>
      %c0_127 = arith.constant 0 : index
      %c0_128 = arith.constant 0 : index
      %157 = vector.load %arg18[%c0_127, %c0_128] : memref<1x32xf32, #tpu.memory_space<vmem>>, vector<1x32xf32>
      %158 = vector.broadcast %157 : vector<1x32xf32> to vector<2x32xf32>
      %159 = arith.addf %156, %158 : vector<2x32xf32>
      %160 = vector.shape_cast %159 : vector<2x32xf32> to vector<2x32x1xf32>
      %cst_129 = arith.constant dense<0.000000e+00> : vector<2x2x1xf32>
      %161 = tpu.matmul %140, %160, %cst_129 {dimension_numbers = #tpu.dot_dimension_numbers<[2], [1], [1], [2], [0, 0, 0, 1, 1, 2], [0], [0]>} : vector<2x2x32xf32>, vector<2x32x1xf32>, vector<2x2x1xf32> -> vector<2x2x1xf32>
      %cst_130 = arith.constant dense<0xFF800000> : vector<2x1xf32>
      %162 = vector.multi_reduction <maximumf>, %161, %cst_130 [1] : vector<2x2x1xf32> to vector<2x1xf32>
      %163 = vector.shape_cast %162 : vector<2x1xf32> to vector<2x1x1xf32>
      %164 = vector.broadcast %163 : vector<2x1x1xf32> to vector<2x2x1xf32>
      %165 = arith.subf %161, %164 : vector<2x2x1xf32>
      %166 = math.exp %165 : vector<2x2x1xf32>
      %cst_131 = arith.constant dense<0.000000e+00> : vector<2x1xf32>
      %167 = vector.multi_reduction <add>, %166, %cst_131 [1] : vector<2x2x1xf32> to vector<2x1xf32>
      %168 = vector.shape_cast %167 : vector<2x1xf32> to vector<2x1x1xf32>
      %169 = tpu.reciprocal %168 {approx = true} : vector<2x1x1xf32> -> vector<2x1x1xf32>
      %170 = vector.broadcast %169 : vector<2x1x1xf32> to vector<2x2x1xf32>
      %171 = arith.mulf %166, %170 : vector<2x2x1xf32>
      %172 = vector.broadcast %171 : vector<2x2x1xf32> to vector<2x2x32xf32>
      %173 = arith.mulf %140, %172 : vector<2x2x32xf32>
      %cst_132 = arith.constant dense<0.000000e+00> : vector<2x32xf32>
      %174 = vector.multi_reduction <add>, %173, %cst_132 [1] : vector<2x2x32xf32> to vector<2x32xf32>
      %c0_133 = arith.constant 0 : index
      %c0_134 = arith.constant 0 : index
      %175 = vector.load %arg29[%c0_133, %c0_134] : memref<2x32xf32, #tpu.memory_space<vmem>>, vector<2x32xf32>
      tpu.vector_store %arg29[%c0_133, %c0_134], %174 {strides = array<i32>} : memref<2x32xf32, #tpu.memory_space<vmem>>, vector<2x32xf32>,
    } else {
    }
    %c0 = arith.constant 0 : index
    %c0_1 = arith.constant 0 : index
    %c0_2 = arith.constant 0 : index
    %3 = vector.load %arg1[%c0, %c0_1, %c0_2] : memref<1x2x1xi32, #tpu.memory_space<vmem>>, vector<1x2x1xi32>
    %4 = vector.shape_cast %3 : vector<1x2x1xi32> to vector<2x1xi32>
    %5 = tpu.iota {dimensions = array<i32: 1>} : vector<2x16xi32>
    %6 = vector.broadcast %4 : vector<2x1xi32> to vector<2x16xi32>
    %7 = arith.cmpi eq, %5, %6 : vector<2x16xi32>
    %8 = arith.extui %7 : vector<2x16xi1> to vector<2x16xi32>
    %9 = arith.sitofp %8 : vector<2x16xi32> to vector<2x16xf32>
    %c0_3 = arith.constant 0 : index
    %c0_4 = arith.constant 0 : index
    %10 = vector.load %arg2[%c0_3, %c0_4] : memref<16x32xf32, #tpu.memory_space<vmem>>, vector<16x32xf32>
    %cst = arith.constant dense<0.000000e+00> : vector<2x32xf32>
    %11 = tpu.matmul %9, %10, %cst {dimension_numbers = #tpu.dot_dimension_numbers<[1], [0], [0], [1], [0, 0, 1, 1], [], []>} : vector<2x16xf32>, vector<16x32xf32>, vector<2x32xf32> -> vector<2x32xf32>
    %c0_5 = arith.constant 0 : index
    %c0_6 = arith.constant 0 : index
    %12 = vector.load %arg6[%c0_5, %c0_6] : memref<32x128xf32, #tpu.memory_space<vmem>>, vector<32x128xf32>
    %cst_7 = arith.constant dense<0.000000e+00> : vector<2x128xf32>
    %13 = tpu.matmul %11, %12, %cst_7 {dimension_numbers = #tpu.dot_dimension_numbers<[1], [0], [0], [1], [0, 0, 1, 1], [], []>} : vector<2x32xf32>, vector<32x128xf32>, vector<2x128xf32> -> vector<2x128xf32>
    %c0_8 = arith.constant 0 : index
    %c0_9 = arith.constant 0 : index
    %14 = vector.load %arg29[%c0_8, %c0_9] : memref<2x32xf32, #tpu.memory_space<vmem>>, vector<2x32xf32>
    %c0_10 = arith.constant 0 : index
    %c0_11 = arith.constant 0 : index
    %15 = vector.load %arg7[%c0_10, %c0_11] : memref<32x128xf32, #tpu.memory_space<vmem>>, vector<32x128xf32>
    %cst_12 = arith.constant dense<0.000000e+00> : vector<2x128xf32>
    %16 = tpu.matmul %14, %15, %cst_12 {dimension_numbers = #tpu.dot_dimension_numbers<[1], [0], [0], [1], [0, 0, 1, 1], [], []>} : vector<2x32xf32>, vector<32x128xf32>, vector<2x128xf32> -> vector<2x128xf32>
    %17 = arith.addf %13, %16 : vector<2x128xf32>
    %c0_13 = arith.constant 0 : index
    %c0_14 = arith.constant 0 : index
    %18 = vector.load %arg25[%c0_13, %c0_14] : memref<2x32xf32, #tpu.memory_space<vmem>>, vector<2x32xf32>
    %c0_15 = arith.constant 0 : index
    %c0_16 = arith.constant 0 : index
    %19 = vector.load %arg8[%c0_15, %c0_16] : memref<32x128xf32, #tpu.memory_space<vmem>>, vector<32x128xf32>
    %cst_17 = arith.constant dense<0.000000e+00> : vector<2x128xf32>
    %20 = tpu.matmul %18, %19, %cst_17 {dimension_numbers = #tpu.dot_dimension_numbers<[1], [0], [0], [1], [0, 0, 1, 1], [], []>} : vector<2x32xf32>, vector<32x128xf32>, vector<2x128xf32> -> vector<2x128xf32>
    %21 = arith.addf %17, %20 : vector<2x128xf32>
    %c0_18 = arith.constant 0 : index
    %c0_19 = arith.constant 0 : index
    %22 = vector.load %arg9[%c0_18, %c0_19] : memref<1x128xf32, #tpu.memory_space<vmem>>, vector<1x128xf32>
    %23 = vector.broadcast %22 : vector<1x128xf32> to vector<2x128xf32>
    %24 = arith.addf %21, %23 : vector<2x128xf32>
    %c0_20 = arith.constant 0 : index
    %c0_21 = arith.constant 0 : index
    %25 = vector.load %arg26[%c0_20, %c0_21] : memref<2x32xf32, #tpu.memory_space<vmem>>, vector<2x32xf32>
    %26 = vector.extract_strided_slice %24 {offsets = [0, 0], sizes = [2, 96], strides = [1, 1]} : vector<2x128xf32> to vector<2x96xf32>
    %27 = arith.negf %26 : vector<2x96xf32>
    %28 = math.exp %27 : vector<2x96xf32>
    %cst_22 = arith.constant 1.000000e+00 : f32
    %29 = vector.broadcast %cst_22 : f32 to vector<2x96xf32>
    %30 = arith.addf %29, %28 : vector<2x96xf32>
    %31 = arith.divf %29, %30 : vector<2x96xf32>
    %32 = vector.extract_strided_slice %24 {offsets = [0, 96], sizes = [2, 32], strides = [1, 1]} : vector<2x128xf32> to vector<2x32xf32>
    %33 = math.tanh %32 : vector<2x32xf32>
    %34 = vector.extract_strided_slice %31 {offsets = [0, 32], sizes = [2, 32], strides = [1, 1]} : vector<2x96xf32> to vector<2x32xf32>
    %35 = arith.mulf %34, %25 : vector<2x32xf32>
    %36 = vector.extract_strided_slice %31 {offsets = [0, 0], sizes = [2, 32], strides = [1, 1]} : vector<2x96xf32> to vector<2x32xf32>
    %37 = arith.mulf %36, %33 : vector<2x32xf32>
    %38 = arith.addf %35, %37 : vector<2x32xf32>
    %39 = vector.extract_strided_slice %31 {offsets = [0, 64], sizes = [2, 32], strides = [1, 1]} : vector<2x96xf32> to vector<2x32xf32>
    %40 = math.tanh %38 : vector<2x32xf32>
    %41 = arith.mulf %39, %40 : vector<2x32xf32>
    %c0_23 = arith.constant 0 : index
    %c0_24 = arith.constant 0 : index
    %42 = vector.load %arg10[%c0_23, %c0_24] : memref<32x128xf32, #tpu.memory_space<vmem>>, vector<32x128xf32>
    %cst_25 = arith.constant dense<0.000000e+00> : vector<2x128xf32>
    %43 = tpu.matmul %41, %42, %cst_25 {dimension_numbers = #tpu.dot_dimension_numbers<[1], [0], [0], [1], [0, 0, 1, 1], [], []>} : vector<2x32xf32>, vector<32x128xf32>, vector<2x128xf32> -> vector<2x128xf32>
    %c0_26 = arith.constant 0 : index
    %c0_27 = arith.constant 0 : index
    %44 = vector.load %arg27[%c0_26, %c0_27] : memref<2x32xf32, #tpu.memory_space<vmem>>, vector<2x32xf32>
    %c0_28 = arith.constant 0 : index
    %c0_29 = arith.constant 0 : index
    %45 = vector.load %arg11[%c0_28, %c0_29] : memref<32x128xf32, #tpu.memory_space<vmem>>, vector<32x128xf32>
    %cst_30 = arith.constant dense<0.000000e+00> : vector<2x128xf32>
    %46 = tpu.matmul %44, %45, %cst_30 {dimension_numbers = #tpu.dot_dimension_numbers<[1], [0], [0], [1], [0, 0, 1, 1], [], []>} : vector<2x32xf32>, vector<32x128xf32>, vector<2x128xf32> -> vector<2x128xf32>
    %47 = arith.addf %43, %46 : vector<2x128xf32>
    %c0_31 = arith.constant 0 : index
    %c0_32 = arith.constant 0 : index
    %48 = vector.load %arg12[%c0_31, %c0_32] : memref<1x128xf32, #tpu.memory_space<vmem>>, vector<1x128xf32>
    %49 = vector.broadcast %48 : vector<1x128xf32> to vector<2x128xf32>
    %50 = arith.addf %47, %49 : vector<2x128xf32>
    %c0_33 = arith.constant 0 : index
    %c0_34 = arith.constant 0 : index
    %51 = vector.load %arg28[%c0_33, %c0_34] : memref<2x32xf32, #tpu.memory_space<vmem>>, vector<2x32xf32>
    %52 = vector.extract_strided_slice %50 {offsets = [0, 0], sizes = [2, 96], strides = [1, 1]} : vector<2x128xf32> to vector<2x96xf32>
    %53 = arith.negf %52 : vector<2x96xf32>
    %54 = math.exp %53 : vector<2x96xf32>
    %cst_35 = arith.constant 1.000000e+00 : f32
    %55 = vector.broadcast %cst_35 : f32 to vector<2x96xf32>
    %56 = arith.addf %55, %54 : vector<2x96xf32>
    %57 = arith.divf %55, %56 : vector<2x96xf32>
    %58 = vector.extract_strided_slice %50 {offsets = [0, 96], sizes = [2, 32], strides = [1, 1]} : vector<2x128xf32> to vector<2x32xf32>
    %59 = math.tanh %58 : vector<2x32xf32>
    %60 = vector.extract_strided_slice %57 {offsets = [0, 32], sizes = [2, 32], strides = [1, 1]} : vector<2x96xf32> to vector<2x32xf32>
    %61 = arith.mulf %60, %51 : vector<2x32xf32>
    %62 = vector.extract_strided_slice %57 {offsets = [0, 0], sizes = [2, 32], strides = [1, 1]} : vector<2x96xf32> to vector<2x32xf32>
    %63 = arith.mulf %62, %59 : vector<2x32xf32>
    %64 = arith.addf %61, %63 : vector<2x32xf32>
    %65 = vector.extract_strided_slice %57 {offsets = [0, 64], sizes = [2, 32], strides = [1, 1]} : vector<2x96xf32> to vector<2x32xf32>
    %66 = math.tanh %64 : vector<2x32xf32>
    %67 = arith.mulf %65, %66 : vector<2x32xf32>
    %c0_36 = arith.constant 0 : index
    %c0_37 = arith.constant 0 : index
    %c0_38 = arith.constant 0 : index
    %68 = vector.load %arg3[%c0_36, %c0_37, %c0_38] : memref<2x2x32xf32, #tpu.memory_space<vmem>>, vector<2x2x32xf32>
    %c0_39 = arith.constant 0 : index
    %c0_40 = arith.constant 0 : index
    %69 = vector.load %arg13[%c0_39, %c0_40] : memref<32x96xf32, #tpu.memory_space<vmem>>, vector<32x96xf32>
    %cst_41 = arith.constant dense<0.000000e+00> : vector<2x96xf32>
    %70 = tpu.matmul %67, %69, %cst_41 {dimension_numbers = #tpu.dot_dimension_numbers<[1], [0], [0], [1], [0, 0, 1, 1], [], []>} : vector<2x32xf32>, vector<32x96xf32>, vector<2x96xf32> -> vector<2x96xf32>
    %c0_42 = arith.constant 0 : index
    %c0_43 = arith.constant 0 : index
    %71 = vector.load %arg14[%c0_42, %c0_43] : memref<1x96xf32, #tpu.memory_space<vmem>>, vector<1x96xf32>
    %72 = vector.broadcast %71 : vector<1x96xf32> to vector<2x96xf32>
    %73 = arith.addf %70, %72 : vector<2x96xf32>
    %cst_44 = arith.constant 0.000000e+00 : f32
    %74 = vector.broadcast %cst_44 : f32 to vector<2x96xf32>
    %75 = arith.maximumf %73, %74 : vector<2x96xf32>
    %c0_45 = arith.constant 0 : index
    %c0_46 = arith.constant 0 : index
    %76 = vector.load %arg15[%c0_45, %c0_46] : memref<96x96xf32, #tpu.memory_space<vmem>>, vector<96x96xf32>
    %cst_47 = arith.constant dense<0.000000e+00> : vector<2x96xf32>
    %77 = tpu.matmul %75, %76, %cst_47 {dimension_numbers = #tpu.dot_dimension_numbers<[1], [0], [0], [1], [0, 0, 1, 1], [], []>} : vector<2x96xf32>, vector<96x96xf32>, vector<2x96xf32> -> vector<2x96xf32>
    %c0_48 = arith.constant 0 : index
    %c0_49 = arith.constant 0 : index
    %78 = vector.load %arg16[%c0_48, %c0_49] : memref<1x96xf32, #tpu.memory_space<vmem>>, vector<1x96xf32>
    %79 = vector.broadcast %78 : vector<1x96xf32> to vector<2x96xf32>
    %80 = arith.addf %77, %79 : vector<2x96xf32>
    %cst_50 = arith.constant 0.000000e+00 : f32
    %81 = vector.broadcast %cst_50 : f32 to vector<2x96xf32>
    %82 = arith.maximumf %80, %81 : vector<2x96xf32>
    %c0_51 = arith.constant 0 : index
    %c0_52 = arith.constant 0 : index
    %83 = vector.load %arg17[%c0_51, %c0_52] : memref<96x32xf32, #tpu.memory_space<vmem>>, vector<96x32xf32>
    %cst_53 = arith.constant dense<0.000000e+00> : vector<2x32xf32>
    %84 = tpu.matmul %82, %83, %cst_53 {dimension_numbers = #tpu.dot_dimension_numbers<[1], [0], [0], [1], [0, 0, 1, 1], [], []>} : vector<2x96xf32>, vector<96x32xf32>, vector<2x32xf32> -> vector<2x32xf32>
    %c0_54 = arith.constant 0 : index
    %c0_55 = arith.constant 0 : index
    %85 = vector.load %arg18[%c0_54, %c0_55] : memref<1x32xf32, #tpu.memory_space<vmem>>, vector<1x32xf32>
    %86 = vector.broadcast %85 : vector<1x32xf32> to vector<2x32xf32>
    %87 = arith.addf %84, %86 : vector<2x32xf32>
    %88 = vector.shape_cast %87 : vector<2x32xf32> to vector<2x32x1xf32>
    %cst_56 = arith.constant dense<0.000000e+00> : vector<2x2x1xf32>
    %89 = tpu.matmul %68, %88, %cst_56 {dimension_numbers = #tpu.dot_dimension_numbers<[2], [1], [1], [2], [0, 0, 0, 1, 1, 2], [0], [0]>} : vector<2x2x32xf32>, vector<2x32x1xf32>, vector<2x2x1xf32> -> vector<2x2x1xf32>
    %cst_57 = arith.constant dense<0xFF800000> : vector<2x1xf32>
    %90 = vector.multi_reduction <maximumf>, %89, %cst_57 [1] : vector<2x2x1xf32> to vector<2x1xf32>
    %91 = vector.shape_cast %90 : vector<2x1xf32> to vector<2x1x1xf32>
    %92 = vector.broadcast %91 : vector<2x1x1xf32> to vector<2x2x1xf32>
    %93 = arith.subf %89, %92 : vector<2x2x1xf32>
    %94 = math.exp %93 : vector<2x2x1xf32>
    %cst_58 = arith.constant dense<0.000000e+00> : vector<2x1xf32>
    %95 = vector.multi_reduction <add>, %94, %cst_58 [1] : vector<2x2x1xf32> to vector<2x1xf32>
    %96 = vector.shape_cast %95 : vector<2x1xf32> to vector<2x1x1xf32>
    %97 = tpu.reciprocal %96 {approx = true} : vector<2x1x1xf32> -> vector<2x1x1xf32>
    %98 = vector.broadcast %97 : vector<2x1x1xf32> to vector<2x2x1xf32>
    %99 = arith.mulf %94, %98 : vector<2x2x1xf32>
    %100 = vector.broadcast %99 : vector<2x2x1xf32> to vector<2x2x32xf32>
    %101 = arith.mulf %68, %100 : vector<2x2x32xf32>
    %cst_59 = arith.constant dense<0.000000e+00> : vector<2x32xf32>
    %102 = vector.multi_reduction <add>, %101, %cst_59 [1] : vector<2x2x32xf32> to vector<2x32xf32>
    %c0_60 = arith.constant 0 : index
    %c0_61 = arith.constant 0 : index
    %103 = vector.load %arg19[%c0_60, %c0_61] : memref<32x64xf32, #tpu.memory_space<vmem>>, vector<32x64xf32>
    %cst_62 = arith.constant dense<0.000000e+00> : vector<2x64xf32>
    %104 = tpu.matmul %67, %103, %cst_62 {dimension_numbers = #tpu.dot_dimension_numbers<[1], [0], [0], [1], [0, 0, 1, 1], [], []>} : vector<2x32xf32>, vector<32x64xf32>, vector<2x64xf32> -> vector<2x64xf32>
    %c0_63 = arith.constant 0 : index
    %c0_64 = arith.constant 0 : index
    %105 = vector.load %arg20[%c0_63, %c0_64] : memref<32x64xf32, #tpu.memory_space<vmem>>, vector<32x64xf32>
    %cst_65 = arith.constant dense<0.000000e+00> : vector<2x64xf32>
    %106 = tpu.matmul %102, %105, %cst_65 {dimension_numbers = #tpu.dot_dimension_numbers<[1], [0], [0], [1], [0, 0, 1, 1], [], []>} : vector<2x32xf32>, vector<32x64xf32>, vector<2x64xf32> -> vector<2x64xf32>
    %107 = arith.addf %104, %106 : vector<2x64xf32>
    %c0_66 = arith.constant 0 : index
    %c0_67 = arith.constant 0 : index
    %108 = vector.load %arg21[%c0_66, %c0_67] : memref<1x64xf32, #tpu.memory_space<vmem>>, vector<1x64xf32>
    %109 = vector.broadcast %108 : vector<1x64xf32> to vector<2x64xf32>
    %110 = arith.addf %107, %109 : vector<2x64xf32>
    %cst_68 = arith.constant 0.000000e+00 : f32
    %111 = vector.broadcast %cst_68 : f32 to vector<2x64xf32>
    %112 = arith.maximumf %110, %111 : vector<2x64xf32>
    %c0_69 = arith.constant 0 : index
    %c0_70 = arith.constant 0 : index
    %113 = vector.load %arg22[%c0_69, %c0_70] : memref<64x16xf32, #tpu.memory_space<vmem>>, vector<64x16xf32>
    %cst_71 = arith.constant dense<0.000000e+00> : vector<2x16xf32>
    %114 = tpu.matmul %112, %113, %cst_71 {dimension_numbers = #tpu.dot_dimension_numbers<[1], [0], [0], [1], [0, 0, 1, 1], [], []>} : vector<2x64xf32>, vector<64x16xf32>, vector<2x16xf32> -> vector<2x16xf32>
    %c0_72 = arith.constant 0 : index
    %c0_73 = arith.constant 0 : index
    %115 = vector.load %arg23[%c0_72, %c0_73] : memref<1x16xf32, #tpu.memory_space<vmem>>, vector<1x16xf32>
    %116 = vector.broadcast %115 : vector<1x16xf32> to vector<2x16xf32>
    %117 = arith.addf %114, %116 : vector<2x16xf32>
    %c0_74 = arith.constant 0 : index
    %c0_75 = arith.constant 0 : index
    %c0_76 = arith.constant 0 : index
    %118 = vector.load %arg24[%c0_74, %c0_75, %c0_76] : memref<1x2x16xf32, #tpu.memory_space<vmem>>, vector<1x2x16xf32>
    %119 = vector.shape_cast %118 : vector<1x2x16xf32> to vector<2x16xf32>
    %120 = vector.shape_cast %117 : vector<2x16xf32> to vector<1x2x16xf32>
    tpu.vector_store %arg24[%c0_74, %c0_75, %c0_76], %120 {strides = array<i32>} : memref<1x2x16xf32, #tpu.memory_space<vmem>>, vector<1x2x16xf32>,
    %c0_77 = arith.constant 0 : index
    %c0_78 = arith.constant 0 : index
    %121 = vector.load %arg25[%c0_77, %c0_78] : memref<2x32xf32, #tpu.memory_space<vmem>>, vector<2x32xf32>
    tpu.vector_store %arg25[%c0_77, %c0_78], %41 {strides = array<i32>} : memref<2x32xf32, #tpu.memory_space<vmem>>, vector<2x32xf32>,
    %c0_79 = arith.constant 0 : index
    %c0_80 = arith.constant 0 : index
    %122 = vector.load %arg26[%c0_79, %c0_80] : memref<2x32xf32, #tpu.memory_space<vmem>>, vector<2x32xf32>
    tpu.vector_store %arg26[%c0_79, %c0_80], %38 {strides = array<i32>} : memref<2x32xf32, #tpu.memory_space<vmem>>, vector<2x32xf32>,
    %c0_81 = arith.constant 0 : index
    %c0_82 = arith.constant 0 : index
    %123 = vector.load %arg27[%c0_81, %c0_82] : memref<2x32xf32, #tpu.memory_space<vmem>>, vector<2x32xf32>
    tpu.vector_store %arg27[%c0_81, %c0_82], %67 {strides = array<i32>} : memref<2x32xf32, #tpu.memory_space<vmem>>, vector<2x32xf32>,
    %c0_83 = arith.constant 0 : index
    %c0_84 = arith.constant 0 : index
    %124 = vector.load %arg28[%c0_83, %c0_84] : memref<2x32xf32, #tpu.memory_space<vmem>>, vector<2x32xf32>
    tpu.vector_store %arg28[%c0_83, %c0_84], %64 {strides = array<i32>} : memref<2x32xf32, #tpu.memory_space<vmem>>, vector<2x32xf32>,
    %c0_85 = arith.constant 0 : index
    %c0_86 = arith.constant 0 : index
    %125 = vector.load %arg29[%c0_85, %c0_86] : memref<2x32xf32, #tpu.memory_space<vmem>>, vector<2x32xf32>
    tpu.vector_store %arg29[%c0_85, %c0_86], %102 {strides = array<i32>} : memref<2x32xf32, #tpu.memory_space<vmem>>, vector<2x32xf32>,
    return
  }
  func.func @transform_0(%arg0: i32) -> (i32, i32, i32) {
    %c0_i32 = arith.constant 0 : i32
    %c0_i32_0 = arith.constant 0 : i32
    %c0_i32_1 = arith.constant 0 : i32
    return %arg0, %c0_i32, %c0_i32_0 : i32, i32, i32
  }
  func.func @transform_1(%arg0: i32) -> (i32, i32) {
    %c0_i32 = arith.constant 0 : i32
    %c0_i32_0 = arith.constant 0 : i32
    %c0_i32_1 = arith.constant 0 : i32
    return %c0_i32, %c0_i32_0 : i32, i32
  }
  func.func @transform_2(%arg0: i32) -> (i32, i32, i32) {
    %c0_i32 = arith.constant 0 : i32
    %c0_i32_0 = arith.constant 0 : i32
    %c0_i32_1 = arith.constant 0 : i32
    %c0_i32_2 = arith.constant 0 : i32
    return %c0_i32, %c0_i32_0, %c0_i32_1 : i32, i32, i32
  }
  func.func @transform_3(%arg0: i32) -> (i32, i32, i32) {
    %c0_i32 = arith.constant 0 : i32
    %c0_i32_0 = arith.constant 0 : i32
    %c0_i32_1 = arith.constant 0 : i32
    %c0_i32_2 = arith.constant 0 : i32
    return %c0_i32, %c0_i32_0, %c0_i32_1 : i32, i32, i32
  }
  func.func @transform_4(%arg0: i32) -> (i32, i32, i32) {
    %c0_i32 = arith.constant 0 : i32
    %c0_i32_0 = arith.constant 0 : i32
    %c0_i32_1 = arith.constant 0 : i32
    %c0_i32_2 = arith.constant 0 : i32
    return %c0_i32, %c0_i32_0, %c0_i32_1 : i32, i32, i32
  }
  func.func @transform_5(%arg0: i32) -> (i32, i32) {
    %c0_i32 = arith.constant 0 : i32
    %c0_i32_0 = arith.constant 0 : i32
    %c0_i32_1 = arith.constant 0 : i32
    return %c0_i32, %c0_i32_0 : i32, i32
  }
  func.func @transform_6(%arg0: i32) -> (i32, i32) {
    %c0_i32 = arith.constant 0 : i32
    %c0_i32_0 = arith.constant 0 : i32
    %c0_i32_1 = arith.constant 0 : i32
    return %c0_i32, %c0_i32_0 : i32, i32
  }
  func.func @transform_7(%arg0: i32) -> (i32, i32) {
    %c0_i32 = arith.constant 0 : i32
    %c0_i32_0 = arith.constant 0 : i32
    %c0_i32_1 = arith.constant 0 : i32
    return %c0_i32, %c0_i32_0 : i32, i32
  }
  func.func @transform_8(%arg0: i32) -> (i32, i32) {
    %c0_i32 = arith.constant 0 : i32
    %c0_i32_0 = arith.constant 0 : i32
    %c0_i32_1 = arith.constant 0 : i32
    return %c0_i32, %c0_i32_0 : i32, i32
  }
  func.func @transform_9(%arg0: i32) -> (i32, i32) {
    %c0_i32 = arith.constant 0 : i32
    %c0_i32_0 = arith.constant 0 : i32
    %c0_i32_1 = arith.constant 0 : i32
    return %c0_i32, %c0_i32_0 : i32, i32
  }
  func.func @transform_10(%arg0: i32) -> (i32, i32) {
    %c0_i32 = arith.constant 0 : i32
    %c0_i32_0 = arith.constant 0 : i32
    %c0_i32_1 = arith.constant 0 : i32
    return %c0_i32, %c0_i32_0 : i32, i32
  }
  func.func @transform_11(%arg0: i32) -> (i32, i32) {
    %c0_i32 = arith.constant 0 : i32
    %c0_i32_0 = arith.constant 0 : i32
    %c0_i32_1 = arith.constant 0 : i32
    return %c0_i32, %c0_i32_0 : i32, i32
  }
  func.func @transform_12(%arg0: i32) -> (i32, i32) {
    %c0_i32 = arith.constant 0 : i32
    %c0_i32_0 = arith.constant 0 : i32
    %c0_i32_1 = arith.constant 0 : i32
    return %c0_i32, %c0_i32_0 : i32, i32
  }
  func.func @transform_13(%arg0: i32) -> (i32, i32) {
    %c0_i32 = arith.constant 0 : i32
    %c0_i32_0 = arith.constant 0 : i32
    %c0_i32_1 = arith.constant 0 : i32
    return %c0_i32, %c0_i32_0 : i32, i32
  }
  func.func @transform_14(%arg0: i32) -> (i32, i32) {
    %c0_i32 = arith.constant 0 : i32
    %c0_i32_0 = arith.constant 0 : i32
    %c0_i32_1 = arith.constant 0 : i32
    return %c0_i32, %c0_i32_0 : i32, i32
  }
  func.func @transform_15(%arg0: i32) -> (i32, i32) {
    %c0_i32 = arith.constant 0 : i32
    %c0_i32_0 = arith.constant 0 : i32
    %c0_i32_1 = arith.constant 0 : i32
    return %c0_i32, %c0_i32_0 : i32, i32
  }
  func.func @transform_16(%arg0: i32) -> (i32, i32) {
    %c0_i32 = arith.constant 0 : i32
    %c0_i32_0 = arith.constant 0 : i32
    %c0_i32_1 = arith.constant 0 : i32
    return %c0_i32, %c0_i32_0 : i32, i32
  }
  func.func @transform_17(%arg0: i32) -> (i32, i32) {
    %c0_i32 = arith.constant 0 : i32
    %c0_i32_0 = arith.constant 0 : i32
    %c0_i32_1 = arith.constant 0 : i32
    return %c0_i32, %c0_i32_0 : i32, i32
  }
  func.func @transform_18(%arg0: i32) -> (i32, i32) {
    %c0_i32 = arith.constant 0 : i32
    %c0_i32_0 = arith.constant 0 : i32
    %c0_i32_1 = arith.constant 0 : i32
    return %c0_i32, %c0_i32_0 : i32, i32
  }
  func.func @transform_19(%arg0: i32) -> (i32, i32) {
    %c0_i32 = arith.constant 0 : i32
    %c0_i32_0 = arith.constant 0 : i32
    %c0_i32_1 = arith.constant 0 : i32
    return %c0_i32, %c0_i32_0 : i32, i32
  }
  func.func @transform_20(%arg0: i32) -> (i32, i32) {
    %c0_i32 = arith.constant 0 : i32
    %c0_i32_0 = arith.constant 0 : i32
    %c0_i32_1 = arith.constant 0 : i32
    return %c0_i32, %c0_i32_0 : i32, i32
  }
  func.func @transform_21(%arg0: i32) -> (i32, i32) {
    %c0_i32 = arith.constant 0 : i32
    %c0_i32_0 = arith.constant 0 : i32
    %c0_i32_1 = arith.constant 0 : i32
    return %c0_i32, %c0_i32_0 : i32, i32
  }
  func.func @transform_22(%arg0: i32) -> (i32, i32) {
    %c0_i32 = arith.constant 0 : i32
    %c0_i32_0 = arith.constant 0 : i32
    %c0_i32_1 = arith.constant 0 : i32
    return %c0_i32, %c0_i32_0 : i32, i32
  }
  func.func @transform_23(%arg0: i32) -> (i32, i32, i32) {
    %c0_i32 = arith.constant 0 : i32
    %c0_i32_0 = arith.constant 0 : i32
    %c0_i32_1 = arith.constant 0 : i32
    return %arg0, %c0_i32, %c0_i32_0 : i32, i32, i32
  }
}

</mosaic_0001>

<bundles_post_ra>
// kernel: las_forward.6
= control target key start
LH: loop header
LB: loop body
LE: loop exit
PB: predicated region body
PF: predicated region fallthrough
CT: control target
= control target key end

     0   :  { %s787_s15 = smov 0   ;;  %s789_s16 = smov 0   ;;  %s866_s0 = inlined_call_operand.vmem [shape: f32[2,8,2,16], index: 0, kind: input, shape index: {}]   ;;  %s867_s1 = inlined_call_operand.vmem [shape: f32[2,16,128], index: 1, kind: input, shape index: {}]   ;;  %s868_s2 = inlined_call_operand.vmem [shape: f32[2,32,128], index: 2, kind: input, shape index: {}]   ;;  %s869_s3 = inlined_call_operand.vmem [shape: f32[2,1,128], index: 3, kind: input, shape index: {}]   ;;  %s870_s4 = inlined_call_operand.vmem [shape: f32[2,8,2,32], index: 4, kind: output, shape index: {}]  }
   0x1   :  { %s791_s17 = smov 0   ;;  %s793_s18 = smov 0  }
   0x2   :  { %s795_s19 = smov 0  }
   0x3 LB: > { %s23_s20 = sadd.s32 1, %s746_s17  ;;  %s26_s21 = sadd.s32 1, %s750_s18  ;;  %s754_s19 = sphi %s795_s19, %s14_s19   ;;  %s750_s18 = sphi %s793_s18, %s874_s18   ;;  %s746_s17 = sphi %s791_s17, %s873_s17   ;;  %s742_s16 = sphi %s789_s16, %s872_s16   ;;  %s738_s15 = sphi %s787_s15, %s871_s15  }
   0x4   : > { %p24_p0 = scmp.ge.s32.totalorder %s23_s20, 8  ;;  %p618_p1 = scmp.ge.s32.totalorder %s754_s19, 1 }
   0x5   : > { %p209_p2 = scmp.lt.s32.totalorder %s754_s19, 17 }
   0x6   : > { %s876_s20 = smov (%p24_p0, %s23_s20), 0  ;;  %s878_s21 = smov (!%p24_p0, %s26_s21), %s750_s18 }
   0x7   : > { %p210_p3 = pnand %p618_p1, %p209_p2  ;;  %p28_p4 = scmp.ge.s32.totalorder %s878_s21, 2 }
   0x8   : > { %p254_p5 = scmp.lt.s32.totalorder (!%p210_p3), %s742_s16, 1  ;;  %p256_p6 = scmp.lt.s32.totalorder (!%p210_p3), %s738_s15, 7 }
   0x9   : > { %s880_s21 = smov (%p28_p4, %s878_s21), 0  ;;  %213 = sbr.rel (%p210_p3) target bundleno = 729 (0x2d9), region = 36 }
   0xa   : > { %p627_p7 = scmp.ne.s32.totalorder (!%p210_p3), %s738_s15, 0 }
   0xe   : > { %s882_s16 = smov (!%p254_p5, %s742_s16), 1 }
   0xf   : > { %s257_s22 = scalar_select %p256_p6, %s738_s15, 7 }
  0x10   : > { %s619_s23 = sshll.u32 %s882_s16, 3  ;;  %s634_s24 = sshll.u32 %s882_s16, 4 }
  0x11   : > { %s259_s25 = sadd.s32 %s619_s23, %s257_s22  ;;  %s266_s28 = scalar_lea.vmem %s867_s1, %s634_s24 }
  0x12   : > { %s620_s29 = sshll.u32 %s259_s25, 1  ;;  %s635_s30 = sshll.u32 %s882_s16, 5 }
  0x13   : > { %s261_s7 = scalar_lea.vmem %s866_s0, %s620_s29  ;;  %s271_s10 = scalar_lea.vmem %s868_s2, %s635_s30 }
  0x14   : > { %s274_s13 = scalar_lea.vmem %s869_s3, %s882_s16  ;;  %s842_s23 = scalar_lea.vmem %s870_s4, %s620_s29 }
  0x15   : > { %286 = sbr.rel (%p627_p7) target bundleno = 28 (0x1c), region = 40 }
  0x1a   : > { %vm287_vm0 = vcmask 254976   ;;  %v756_v0 = vmov 0.0  }
  0x1b   : > { %288 = vst.msk [vmem:[#allocation2] sm:$0x3] %vm287_vm0, %v756_v0  ;;  %289 = vst.msk [vmem:[#allocation3] sm:$0x3] %vm287_vm0, %v756_v0 }
  0x1c PF: > { %v298_v1 = vld [vmem:[%s271_s10 + $0x18] sm:$0xff]  ;;  %v294_v2 = vld [vmem:[%s266_s28 + $0x8] sm:$0xff]  ;;  %v757_v3 = vmov 0.0   ;;  %v297_v4 = vld [vmem:[%s271_s10 + $0x10] sm:$0xff]  ;;  %vm373_vm1 = vcmask 130048   ;;  %vm758_vm2 = vmmov 0  }
  0x1d   : > { %644 = vmatprep.subr.mxu0 %v757_v3  ;;  %655 = vmatprep.subr.mxu1 %v757_v3  ;;  %v293_v5 = vld [vmem:[%s266_s28] sm:$0xff]  ;;  %v296_v6 = vld [vmem:[%s271_s10 + $0x8] sm:$0xff]  ;;  %vm299_vm3 = vcmask 261120   ;;  %s759_s25 = smov 32   ;;  %s760_s16 = smov 96   ;;  %vm487_vm4 = vcmask 254976  }
  0x1e   : > { %645 = vmatpush3.msra.mxu0 %v298_v1  ;;  %656 = vmatpush3.msra.mxu1 %v294_v2  ;;  %v292_v7 = vld [vmem:[%s261_s7] sm:$0x3]  ;;  %s761_s26 = smov 64  }
  0x1f   : > { %646 = vmatprep.subr.mxu0 %v757_v3  ;;  %657 = vmatprep.subr.mxu1 %v757_v3  ;;  %v295_v8 = vld [vmem:[%s271_s10] sm:$0xff] }
  0x20   : > { %647 = vmatpush3.msra.mxu0 %v297_v4  ;;  %658 = vmatpush3.msra.mxu1 %v293_v5  ;;  %v630_v13 = vld [vmem:[%s274_s13] ss:$0 sm:$0xff] }
  0x21   : > { %648 = vmatprep.subr.mxu0 %v757_v3  ;;  %659 = vmatprep.mubr.msk.f32.mxu1 %vm758_vm2, %v757_v3 }
  0x22   : > { %649 = vmatpush3.msra.mxu0 %v296_v6  ;;  %660 = vmatmul.mubr.msk.f32.vlgmr.msra.gmra.mxu1 %vm373_vm1, %v292_v7  ;;  %v290_v9 = vld [vmem:[#allocation2] sm:$0x3]  ;;  %v291_v18 = vld [vmem:[#allocation3] sm:$0x3] }
  0x23   : > { %650 = vmatprep.subr.mxu0 %v757_v3  ;;  %652 = vmatprep.mubr.msk.f32.mxu0 %vm758_vm2, %v757_v3 }
  0x24   : > { %651 = vmatpush3.msra.mxu0 %v295_v8 }
  0x25   : > { %653 = vmatmul.mubr.msk.f32.vlgmr.msra.gmra.mxu0 %vm299_vm3, %v290_v9 }
  0xe2   : > { %v443_v10 = vpop.f32.mrf.mxu1 }
  0xe4   : > { %v661_v11 = vpop.f32.mrf.mxu1 }
  0xe5   : > { %v369_v12 = vpop.f32.mrf.mxu0 }
  0xe6   : > { %v444_v14 = vadd.f32 %v443_v10, %v369_v12 }
  0xe7   : > { %v654_v15 = vpop.f32.mrf.mxu0 }
  0xe8   : > { %v454_v16 = vadd.f32 %v630_v13, %v444_v14 }
  0xea   : > { %708 = vtanh.f32 %v454_v16  ;;  %v631_v19 = vmul.f32 -1.442695, %v454_v16 }
  0xec   : > { %710 = vpow2.f32 %v631_v19 }
  0xf7   : > { %v709_v17 = vpop.eup %708 }
  0xf8   : > { %468 = vrot.lane.b32.xlu0 %v709_v17, %s759_s25 }
  0xf9   : > { %v711_v20 = vpop.eup %710 }
  0xfa   : > { %v458_v21 = vadd.f32 1.0, %v711_v20 }
  0xfc   : > { %463 = vrot.lane.b32.xlu0 %v291_v18, %s759_s25  ;;  %712 = vrcp.f32 %v458_v21 }
 0x109   : > { %v713_v22 = vpop.eup %712 }
 0x16a   : > { %v469_v23 = vpop.permute.xlu0 %468 }
 0x16b   : > { %v471_v24 = vmul.f32 %v713_v22, %v469_v23 }
 0x16d   : > { %473 = vrot.lane.b32.xlu1 %v471_v24, %s759_s25 }
 0x16e   : > { %v464_v25 = vpop.permute.xlu0 %463 }
 0x16f   : > { %v466_v26 = vmul.f32 %v713_v22, %v464_v25 }
 0x1df   : > { %v474_v27 = vpop.permute.xlu1 %473 }
 0x1e0   : > { %v476_v28 = vadd.f32 %v474_v27, %v466_v26 }
 0x1e2   : > { %714 = vtanh.f32 %v476_v28 }
 0x1ef   : > { %v715_v29 = vpop.eup %714 }
 0x1f0   : > { %479 = vrot.lane.b32.xlu1 %v715_v29, %s759_s25 }
 0x1f4   : > { %491 = vrot.lane.b32.xlu1 %v476_v28, %s760_s16 }
 0x262   : > { %v480_v30 = vpop.permute.xlu1 %479 }
 0x263   : > { %v482_v31 = vmul.f32 %v713_v22, %v480_v30 }
 0x265   : > { %484 = vrot.lane.b32.xlu0 %v482_v31, %s761_s26 }
 0x266   : > { %v492_v32 = vpop.permute.xlu1 %491 }
 0x267   : > { %494 = vst.msk [vmem:[#allocation3] sm:$0x3] %vm487_vm4, %v492_v32 }
 0x2d7   : > { %v485_v33 = vpop.permute.xlu0 %484 }
 0x2d8   : > { %488 = vst.msk [vmem:[%s842_s23] sm:$0x3] %vm487_vm4, %v485_v33  ;;  %489 = vst.msk [vmem:[#allocation2] sm:$0x3] %vm487_vm4, %v485_v33 }
 0x2d9 PF: > { %s14_s19 = sadd.s32 1, %s754_s19   ;;  %s871_s15 = smov %s746_s17 }
 0x2da   : > { %p11_p8 = scmp.ge.s32.totalorder %s14_s19, 18   ;;  %s872_s16 = smov %s750_s18 }
 0x2db   : > { %s873_s17 = smov %s876_s20  ;;  %s874_s18 = smov %s880_s21 }
 0x2dc   :  { %13 = sbr.rel (!%p11_p8) target bundleno = 3 (0x3), region = 79 }

// kernel: las_forward.7
= control target key start
LH: loop header
LB: loop body
LE: loop exit
PB: predicated region body
PF: predicated region fallthrough
CT: control target
= control target key end

     0   :  { %s838_s15 = smov 0   ;;  %s840_s16 = smov 0   ;;  %s966_s0 = inlined_call_operand.vmem [shape: f32[2,4,2,128], index: 0, kind: input, shape index: {}]   ;;  %s967_s1 = inlined_call_operand.vmem [shape: f32[2,128,128], index: 1, kind: input, shape index: {}]   ;;  %s968_s2 = inlined_call_operand.vmem [shape: f32[2,32,128], index: 2, kind: input, shape index: {}]   ;;  %s969_s3 = inlined_call_operand.vmem [shape: f32[2,1,128], index: 3, kind: input, shape index: {}]   ;;  %s970_s4 = inlined_call_operand.vmem [shape: f32[2,4,2,32], index: 4, kind: output, shape index: {}]  }
   0x1   :  { %s842_s17 = smov 0   ;;  %s844_s18 = smov 0  }
   0x2   :  { %s846_s19 = smov 0  }
   0x3 LB: > { %s23_s20 = sadd.s32 1, %s797_s17  ;;  %s26_s21 = sadd.s32 1, %s801_s18  ;;  %s805_s19 = sphi %s846_s19, %s14_s19   ;;  %s801_s18 = sphi %s844_s18, %s974_s18   ;;  %s797_s17 = sphi %s842_s17, %s973_s17   ;;  %s793_s16 = sphi %s840_s16, %s972_s16   ;;  %s789_s15 = sphi %s838_s15, %s971_s15  }
   0x4   : > { %p24_p0 = scmp.ge.s32.totalorder %s23_s20, 4  ;;  %p628_p1 = scmp.ge.s32.totalorder %s805_s19, 1 }
   0x5   : > { %p209_p2 = scmp.lt.s32.totalorder %s805_s19, 9 }
   0x6   : > { %s976_s20 = smov (%p24_p0, %s23_s20), 0  ;;  %s978_s21 = smov (!%p24_p0, %s26_s21), %s801_s18 }
   0x7   : > { %p210_p3 = pnand %p628_p1, %p209_p2  ;;  %p28_p4 = scmp.ge.s32.totalorder %s978_s21, 2 }
   0x8   : > { %p254_p5 = scmp.lt.s32.totalorder (!%p210_p3), %s793_s16, 1  ;;  %p256_p6 = scmp.lt.s32.totalorder (!%p210_p3), %s789_s15, 3 }
   0x9   : > { %s980_s21 = smov (%p28_p4, %s978_s21), 0  ;;  %213 = sbr.rel (%p210_p3) target bundleno = 753 (0x2f1), region = 36 }
   0xa   : > { %p637_p7 = scmp.ne.s32.totalorder (!%p210_p3), %s789_s15, 0 }
   0xe   : > { %s982_s16 = smov (!%p254_p5, %s793_s16), 1 }
   0xf   : > { %s257_s22 = scalar_select %p256_p6, %s789_s15, 3 }
  0x10   : > { %s629_s23 = sshll.u32 %s982_s16, 2  ;;  %s643_s24 = sshll.u32 %s982_s16, 7 }
  0x11   : > { %s259_s25 = sadd.s32 %s629_s23, %s257_s22  ;;  %s879_s28 = scalar_lea.vmem %s967_s1, %s643_s24 }
  0x12   : > { %s630_s29 = sshll.u32 %s259_s25, 1  ;;  %s644_s30 = sshll.u32 %s982_s16, 5 }
  0x13   : > { %s885_s7 = scalar_lea.vmem %s966_s0, %s630_s29  ;;  %s890_s10 = scalar_lea.vmem %s968_s2, %s644_s30 }
  0x14   : > { %s274_s13 = scalar_lea.vmem %s969_s3, %s982_s16  ;;  %s899_s23 = scalar_lea.vmem %s970_s4, %s630_s29 }
  0x15   : > { %286 = sbr.rel (%p637_p7) target bundleno = 28 (0x1c), region = 40 }
  0x1a   : > { %vm287_vm0 = vcmask 254976   ;;  %v807_v0 = vmov 0.0  }
  0x1b   : > { %288 = vst.msk [vmem:[#allocation2] sm:$0x3] %vm287_vm0, %v807_v0  ;;  %289 = vst.msk [vmem:[#allocation3] sm:$0x3] %vm287_vm0, %v807_v0 }
  0x1c PF: > { %v308_v1 = vld [vmem:[%s879_s28 + $0x78] sm:$0xff]  ;;  %v808_v2 = vmov 0.0   ;;  %v307_v3 = vld [vmem:[%s879_s28 + $0x70] sm:$0xff]  ;;  %vm809_vm1 = vmmov 0   ;;  %v306_v4 = vld [vmem:[%s879_s28 + $0x68] sm:$0xff]  ;;  %vm313_vm2 = vcmask 261120  }
  0x1d   : > { %678 = vmatprep.subr.mxu1 %v808_v2  ;;  %667 = vmatprep.subr.mxu0 %v808_v2  ;;  %v312_v5 = vld [vmem:[%s890_s10 + $0x18] sm:$0xff]  ;;  %v311_v6 = vld [vmem:[%s890_s10 + $0x10] sm:$0xff]  ;;  %v305_v7 = vld [vmem:[%s879_s28 + $0x60] sm:$0xff]  ;;  %s810_s25 = smov 32   ;;  %s811_s16 = smov 96   ;;  %vm497_vm3 = vcmask 254976  }
  0x1e   : > { %679 = vmatpush3.msra.mxu1 %v308_v1  ;;  %675 = vmatprep.mubr.msk.f32.mxu0 %vm809_vm1, %v808_v2  ;;  %v310_v8 = vld [vmem:[%s890_s10 + $0x8] sm:$0xff]  ;;  %v304_v9 = vld [vmem:[%s879_s28 + $0x58] sm:$0xff]  ;;  %v309_v10 = vld [vmem:[%s890_s10] sm:$0xff]  ;;  %s812_s26 = smov 64  }
  0x1f   : > { %680 = vmatprep.subr.mxu1 %v808_v2  ;;  %710 = vmatprep.mubr.msk.f32.mxu1 %vm809_vm1, %v808_v2  ;;  %v303_v12 = vld [vmem:[%s879_s28 + $0x50] sm:$0xff]  ;;  %v302_v13 = vld [vmem:[%s879_s28 + $0x48] sm:$0xff]  ;;  %v301_v14 = vld [vmem:[%s879_s28 + $0x40] sm:$0xff] }
  0x20   : > { %681 = vmatpush3.msra.mxu1 %v307_v3  ;;  %668 = vmatpush3.msra.mxu0 %v312_v5  ;;  %v300_v15 = vld [vmem:[%s879_s28 + $0x38] sm:$0xff]  ;;  %v299_v16 = vld [vmem:[%s879_s28 + $0x30] sm:$0xff]  ;;  %v298_v17 = vld [vmem:[%s879_s28 + $0x28] sm:$0xff] }
  0x21   : > { %682 = vmatprep.subr.mxu1 %v808_v2  ;;  %669 = vmatprep.subr.mxu0 %v808_v2  ;;  %v297_v18 = vld [vmem:[%s879_s28 + $0x20] sm:$0xff]  ;;  %v296_v19 = vld [vmem:[%s879_s28 + $0x18] sm:$0xff]  ;;  %v295_v20 = vld [vmem:[%s879_s28 + $0x10] sm:$0xff] }
  0x22   : > { %683 = vmatpush3.msra.mxu1 %v306_v4  ;;  %670 = vmatpush3.msra.mxu0 %v311_v6  ;;  %v290_v11 = vld [vmem:[#allocation2] sm:$0x3]  ;;  %v294_v21 = vld [vmem:[%s879_s28 + $0x8] sm:$0xff]  ;;  %v291_v32 = vld [vmem:[#allocation3] sm:$0x3] }
  0x23   : > { %684 = vmatprep.subr.mxu1 %v808_v2  ;;  %671 = vmatprep.subr.mxu0 %v808_v2  ;;  %v293_v22 = vld [vmem:[%s879_s28] sm:$0xff] }
  0x24   : > { %685 = vmatpush3.msra.mxu1 %v305_v7  ;;  %672 = vmatpush3.msra.mxu0 %v310_v8  ;;  %v292_v23 = vld [vmem:[%s885_s7] sm:$0x3] }
  0x25   : > { %686 = vmatprep.subr.mxu1 %v808_v2  ;;  %673 = vmatprep.subr.mxu0 %v808_v2  ;;  %v639_v27 = vld [vmem:[%s274_s13] ss:$0 sm:$0xff] }
  0x26   : > { %687 = vmatpush3.msra.mxu1 %v304_v9  ;;  %674 = vmatpush3.msra.mxu0 %v309_v10 }
  0x27   : > { %688 = vmatprep.subr.mxu1 %v808_v2  ;;  %676 = vmatmul.mubr.msk.f32.vlgmr.msra.gmra.mxu0 %vm313_vm2, %v290_v11 }
  0x28   : > { %689 = vmatpush3.msra.mxu1 %v303_v12 }
  0x29   : > { %690 = vmatprep.subr.mxu1 %v808_v2 }
  0x2a   : > { %691 = vmatpush3.msra.mxu1 %v302_v13 }
  0x2b   : > { %692 = vmatprep.subr.mxu1 %v808_v2 }
  0x2c   : > { %693 = vmatpush3.msra.mxu1 %v301_v14 }
  0x2d   : > { %694 = vmatprep.subr.mxu1 %v808_v2 }
  0x2e   : > { %695 = vmatpush3.msra.mxu1 %v300_v15 }
  0x2f   : > { %696 = vmatprep.subr.mxu1 %v808_v2 }
  0x30   : > { %697 = vmatpush3.msra.mxu1 %v299_v16 }
  0x31   : > { %698 = vmatprep.subr.mxu1 %v808_v2 }
  0x32   : > { %699 = vmatpush3.msra.mxu1 %v298_v17 }
  0x33   : > { %700 = vmatprep.subr.mxu1 %v808_v2 }
  0x34   : > { %701 = vmatpush3.msra.mxu1 %v297_v18 }
  0x35   : > { %702 = vmatprep.subr.mxu1 %v808_v2 }
  0x36   : > { %703 = vmatpush3.msra.mxu1 %v296_v19 }
  0x37   : > { %704 = vmatprep.subr.mxu1 %v808_v2 }
  0x38   : > { %705 = vmatpush3.msra.mxu1 %v295_v20 }
  0x39   : > { %706 = vmatprep.subr.mxu1 %v808_v2 }
  0x3a   : > { %707 = vmatpush3.msra.mxu1 %v294_v21 }
  0x3b   : > { %708 = vmatprep.subr.mxu1 %v808_v2 }
  0x3c   : > { %709 = vmatpush3.msra.mxu1 %v293_v22 }
  0x3d   : > { %711 = vmatmul.mubr.f32.vlgmr.msra.gmra.mxu1 %v292_v23 }
  0xe7   : > { %v383_v24 = vpop.f32.mrf.mxu0 }
  0xe9   : > { %v677_v25 = vpop.f32.mrf.mxu0 }
  0xfd   : > { %v453_v26 = vpop.f32.mrf.mxu1 }
  0xfe   : > { %v454_v28 = vadd.f32 %v453_v26, %v383_v24 }
  0xff   : > { %v712_v29 = vpop.f32.mrf.mxu1 }
 0x100   : > { %v464_v30 = vadd.f32 %v639_v27, %v454_v28 }
 0x102   : > { %759 = vtanh.f32 %v464_v30  ;;  %v640_v33 = vmul.f32 -1.442695, %v464_v30 }
 0x104   : > { %761 = vpow2.f32 %v640_v33 }
 0x10f   : > { %v760_v31 = vpop.eup %759 }
 0x110   : > { %478 = vrot.lane.b32.xlu0 %v760_v31, %s810_s25 }
 0x111   : > { %v762_v34 = vpop.eup %761 }
 0x112   : > { %v468_v35 = vadd.f32 1.0, %v762_v34 }
 0x114   : > { %473 = vrot.lane.b32.xlu0 %v291_v32, %s810_s25  ;;  %763 = vrcp.f32 %v468_v35 }
 0x121   : > { %v764_v36 = vpop.eup %763 }
 0x182   : > { %v479_v37 = vpop.permute.xlu0 %478 }
 0x183   : > { %v481_v38 = vmul.f32 %v764_v36, %v479_v37 }
 0x185   : > { %483 = vrot.lane.b32.xlu1 %v481_v38, %s810_s25 }
 0x186   : > { %v474_v39 = vpop.permute.xlu0 %473 }
 0x187   : > { %v476_v40 = vmul.f32 %v764_v36, %v474_v39 }
 0x1f7   : > { %v484_v41 = vpop.permute.xlu1 %483 }
 0x1f8   : > { %v486_v42 = vadd.f32 %v484_v41, %v476_v40 }
 0x1fa   : > { %765 = vtanh.f32 %v486_v42 }
 0x207   : > { %v766_v43 = vpop.eup %765 }
 0x208   : > { %489 = vrot.lane.b32.xlu1 %v766_v43, %s810_s25 }
 0x20c   : > { %501 = vrot.lane.b32.xlu1 %v486_v42, %s811_s16 }
 0x27a   : > { %v490_v44 = vpop.permute.xlu1 %489 }
 0x27b   : > { %v492_v45 = vmul.f32 %v764_v36, %v490_v44 }
 0x27d   : > { %494 = vrot.lane.b32.xlu0 %v492_v45, %s812_s26 }
 0x27e   : > { %v502_v46 = vpop.permute.xlu1 %501 }
 0x27f   : > { %504 = vst.msk [vmem:[#allocation3] sm:$0x3] %vm497_vm3, %v502_v46 }
 0x2ef   : > { %v495_v47 = vpop.permute.xlu0 %494 }
 0x2f0   : > { %498 = vst.msk [vmem:[%s899_s23] sm:$0x3] %vm497_vm3, %v495_v47  ;;  %499 = vst.msk [vmem:[#allocation2] sm:$0x3] %vm497_vm3, %v495_v47 }
 0x2f1 PF: > { %s14_s19 = sadd.s32 1, %s805_s19   ;;  %s971_s15 = smov %s797_s17 }
 0x2f2   : > { %p11_p8 = scmp.ge.s32.totalorder %s14_s19, 10   ;;  %s972_s16 = smov %s801_s18 }
 0x2f3   : > { %s973_s17 = smov %s976_s20  ;;  %s974_s18 = smov %s980_s21 }
 0x2f4   :  { %13 = sbr.rel (!%p11_p8) target bundleno = 3 (0x3), region = 79 }

// kernel: las_forward.8
= control target key start
LH: loop header
LB: loop body
LE: loop exit
PB: predicated region body
PF: predicated region fallthrough
CT: control target
= control target key end

     0   :  { %s838_s15 = smov 0   ;;  %s840_s16 = smov 0   ;;  %s966_s0 = inlined_call_operand.vmem [shape: f32[2,2,2,128], index: 0, kind: input, shape index: {}]   ;;  %s967_s1 = inlined_call_operand.vmem [shape: f32[2,128,128], index: 1, kind: input, shape index: {}]   ;;  %s968_s2 = inlined_call_operand.vmem [shape: f32[2,32,128], index: 2, kind: input, shape index: {}]   ;;  %s969_s3 = inlined_call_operand.vmem [shape: f32[2,1,128], index: 3, kind: input, shape index: {}]   ;;  %s970_s4 = inlined_call_operand.vmem [shape: f32[2,2,2,32], index: 4, kind: output, shape index: {}]  }
   0x1   :  { %s842_s17 = smov 0   ;;  %s844_s18 = smov 0  }
   0x2   :  { %s846_s19 = smov 0  }
   0x3 LB: > { %s23_s20 = sadd.s32 1, %s797_s17  ;;  %s26_s21 = sadd.s32 1, %s801_s18  ;;  %s805_s19 = sphi %s846_s19, %s14_s19   ;;  %s801_s18 = sphi %s844_s18, %s974_s18   ;;  %s797_s17 = sphi %s842_s17, %s973_s17   ;;  %s793_s16 = sphi %s840_s16, %s972_s16   ;;  %s789_s15 = sphi %s838_s15, %s971_s15  }
   0x4   : > { %p24_p0 = scmp.ge.s32.totalorder %s23_s20, 2  ;;  %p628_p1 = scmp.ge.s32.totalorder %s805_s19, 1 }
   0x5   : > { %p209_p2 = scmp.lt.s32.totalorder %s805_s19, 5 }
   0x6   : > { %s976_s20 = smov (%p24_p0, %s23_s20), 0  ;;  %s978_s21 = smov (!%p24_p0, %s26_s21), %s801_s18 }
   0x7   : > { %p210_p3 = pnand %p628_p1, %p209_p2  ;;  %p28_p4 = scmp.ge.s32.totalorder %s978_s21, 2 }
   0x8   : > { %p254_p5 = scmp.lt.s32.totalorder (!%p210_p3), %s793_s16, 1  ;;  %p256_p6 = scmp.lt.s32.totalorder (!%p210_p3), %s789_s15, 1 }
   0x9   : > { %s980_s21 = smov (%p28_p4, %s978_s21), 0  ;;  %213 = sbr.rel (%p210_p3) target bundleno = 753 (0x2f1), region = 36 }
   0xa   : > { %p637_p7 = scmp.ne.s32.totalorder (!%p210_p3), %s789_s15, 0 }
   0xe   : > { %s982_s16 = smov (!%p254_p5, %s793_s16), 1 }
   0xf   : > { %s257_s22 = scalar_select %p256_p6, %s789_s15, 1 }
  0x10   : > { %s629_s23 = sshll.u32 %s982_s16, 1  ;;  %s643_s24 = sshll.u32 %s982_s16, 7 }
  0x11   : > { %s259_s25 = sadd.s32 %s629_s23, %s257_s22  ;;  %s879_s28 = scalar_lea.vmem %s967_s1, %s643_s24 }
  0x12   : > { %s630_s29 = sshll.u32 %s259_s25, 1  ;;  %s644_s30 = sshll.u32 %s982_s16, 5 }
  0x13   : > { %s885_s7 = scalar_lea.vmem %s966_s0, %s630_s29  ;;  %s890_s10 = scalar_lea.vmem %s968_s2, %s644_s30 }
  0x14   : > { %s274_s13 = scalar_lea.vmem %s969_s3, %s982_s16  ;;  %s899_s23 = scalar_lea.vmem %s970_s4, %s630_s29 }
  0x15   : > { %286 = sbr.rel (%p637_p7) target bundleno = 28 (0x1c), region = 40 }
  0x1a   : > { %vm287_vm0 = vcmask 254976   ;;  %v807_v0 = vmov 0.0  }
  0x1b   : > { %288 = vst.msk [vmem:[#allocation2] sm:$0x3] %vm287_vm0, %v807_v0  ;;  %289 = vst.msk [vmem:[#allocation3] sm:$0x3] %vm287_vm0, %v807_v0 }
  0x1c PF: > { %v308_v1 = vld [vmem:[%s879_s28 + $0x78] sm:$0xff]  ;;  %v808_v2 = vmov 0.0   ;;  %v307_v3 = vld [vmem:[%s879_s28 + $0x70] sm:$0xff]  ;;  %vm809_vm1 = vmmov 0   ;;  %v306_v4 = vld [vmem:[%s879_s28 + $0x68] sm:$0xff]  ;;  %vm313_vm2 = vcmask 261120  }
  0x1d   : > { %678 = vmatprep.subr.mxu1 %v808_v2  ;;  %667 = vmatprep.subr.mxu0 %v808_v2  ;;  %v312_v5 = vld [vmem:[%s890_s10 + $0x18] sm:$0xff]  ;;  %v311_v6 = vld [vmem:[%s890_s10 + $0x10] sm:$0xff]  ;;  %v305_v7 = vld [vmem:[%s879_s28 + $0x60] sm:$0xff]  ;;  %s810_s25 = smov 32   ;;  %s811_s16 = smov 96   ;;  %vm497_vm3 = vcmask 254976  }
  0x1e   : > { %679 = vmatpush3.msra.mxu1 %v308_v1  ;;  %675 = vmatprep.mubr.msk.f32.mxu0 %vm809_vm1, %v808_v2  ;;  %v310_v8 = vld [vmem:[%s890_s10 + $0x8] sm:$0xff]  ;;  %v304_v9 = vld [vmem:[%s879_s28 + $0x58] sm:$0xff]  ;;  %v309_v10 = vld [vmem:[%s890_s10] sm:$0xff]  ;;  %s812_s26 = smov 64  }
  0x1f   : > { %680 = vmatprep.subr.mxu1 %v808_v2  ;;  %710 = vmatprep.mubr.msk.f32.mxu1 %vm809_vm1, %v808_v2  ;;  %v303_v12 = vld [vmem:[%s879_s28 + $0x50] sm:$0xff]  ;;  %v302_v13 = vld [vmem:[%s879_s28 + $0x48] sm:$0xff]  ;;  %v301_v14 = vld [vmem:[%s879_s28 + $0x40] sm:$0xff] }
  0x20   : > { %681 = vmatpush3.msra.mxu1 %v307_v3  ;;  %668 = vmatpush3.msra.mxu0 %v312_v5  ;;  %v300_v15 = vld [vmem:[%s879_s28 + $0x38] sm:$0xff]  ;;  %v299_v16 = vld [vmem:[%s879_s28 + $0x30] sm:$0xff]  ;;  %v298_v17 = vld [vmem:[%s879_s28 + $0x28] sm:$0xff] }
  0x21   : > { %682 = vmatprep.subr.mxu1 %v808_v2  ;;  %669 = vmatprep.subr.mxu0 %v808_v2  ;;  %v297_v18 = vld [vmem:[%s879_s28 + $0x20] sm:$0xff]  ;;  %v296_v19 = vld [vmem:[%s879_s28 + $0x18] sm:$0xff]  ;;  %v295_v20 = vld [vmem:[%s879_s28 + $0x10] sm:$0xff] }
  0x22   : > { %683 = vmatpush3.msra.mxu1 %v306_v4  ;;  %670 = vmatpush3.msra.mxu0 %v311_v6  ;;  %v290_v11 = vld [vmem:[#allocation2] sm:$0x3]  ;;  %v294_v21 = vld [vmem:[%s879_s28 + $0x8] sm:$0xff]  ;;  %v291_v32 = vld [vmem:[#allocation3] sm:$0x3] }
  0x23   : > { %684 = vmatprep.subr.mxu1 %v808_v2  ;;  %671 = vmatprep.subr.mxu0 %v808_v2  ;;  %v293_v22 = vld [vmem:[%s879_s28] sm:$0xff] }
  0x24   : > { %685 = vmatpush3.msra.mxu1 %v305_v7  ;;  %672 = vmatpush3.msra.mxu0 %v310_v8  ;;  %v292_v23 = vld [vmem:[%s885_s7] sm:$0x3] }
  0x25   : > { %686 = vmatprep.subr.mxu1 %v808_v2  ;;  %673 = vmatprep.subr.mxu0 %v808_v2  ;;  %v639_v27 = vld [vmem:[%s274_s13] ss:$0 sm:$0xff] }
  0x26   : > { %687 = vmatpush3.msra.mxu1 %v304_v9  ;;  %674 = vmatpush3.msra.mxu0 %v309_v10 }
  0x27   : > { %688 = vmatprep.subr.mxu1 %v808_v2  ;;  %676 = vmatmul.mubr.msk.f32.vlgmr.msra.gmra.mxu0 %vm313_vm2, %v290_v11 }
  0x28   : > { %689 = vmatpush3.msra.mxu1 %v303_v12 }
  0x29   : > { %690 = vmatprep.subr.mxu1 %v808_v2 }
  0x2a   : > { %691 = vmatpush3.msra.mxu1 %v302_v13 }
  0x2b   : > { %692 = vmatprep.subr.mxu1 %v808_v2 }
  0x2c   : > { %693 = vmatpush3.msra.mxu1 %v301_v14 }
  0x2d   : > { %694 = vmatprep.subr.mxu1 %v808_v2 }
  0x2e   : > { %695 = vmatpush3.msra.mxu1 %v300_v15 }
  0x2f   : > { %696 = vmatprep.subr.mxu1 %v808_v2 }
  0x30   : > { %697 = vmatpush3.msra.mxu1 %v299_v16 }
  0x31   : > { %698 = vmatprep.subr.mxu1 %v808_v2 }
  0x32   : > { %699 = vmatpush3.msra.mxu1 %v298_v17 }
  0x33   : > { %700 = vmatprep.subr.mxu1 %v808_v2 }
  0x34   : > { %701 = vmatpush3.msra.mxu1 %v297_v18 }
  0x35   : > { %702 = vmatprep.subr.mxu1 %v808_v2 }
  0x36   : > { %703 = vmatpush3.msra.mxu1 %v296_v19 }
  0x37   : > { %704 = vmatprep.subr.mxu1 %v808_v2 }
  0x38   : > { %705 = vmatpush3.msra.mxu1 %v295_v20 }
  0x39   : > { %706 = vmatprep.subr.mxu1 %v808_v2 }
  0x3a   : > { %707 = vmatpush3.msra.mxu1 %v294_v21 }
  0x3b   : > { %708 = vmatprep.subr.mxu1 %v808_v2 }
  0x3c   : > { %709 = vmatpush3.msra.mxu1 %v293_v22 }
  0x3d   : > { %711 = vmatmul.mubr.f32.vlgmr.msra.gmra.mxu1 %v292_v23 }
  0xe7   : > { %v383_v24 = vpop.f32.mrf.mxu0 }
  0xe9   : > { %v677_v25 = vpop.f32.mrf.mxu0 }
  0xfd   : > { %v453_v26 = vpop.f32.mrf.mxu1 }
  0xfe   : > { %v454_v28 = vadd.f32 %v453_v26, %v383_v24 }
  0xff   : > { %v712_v29 = vpop.f32.mrf.mxu1 }
 0x100   : > { %v464_v30 = vadd.f32 %v639_v27, %v454_v28 }
 0x102   : > { %759 = vtanh.f32 %v464_v30  ;;  %v640_v33 = vmul.f32 -1.442695, %v464_v30 }
 0x104   : > { %761 = vpow2.f32 %v640_v33 }
 0x10f   : > { %v760_v31 = vpop.eup %759 }
 0x110   : > { %478 = vrot.lane.b32.xlu0 %v760_v31, %s810_s25 }
 0x111   : > { %v762_v34 = vpop.eup %761 }
 0x112   : > { %v468_v35 = vadd.f32 1.0, %v762_v34 }
 0x114   : > { %473 = vrot.lane.b32.xlu0 %v291_v32, %s810_s25  ;;  %763 = vrcp.f32 %v468_v35 }
 0x121   : > { %v764_v36 = vpop.eup %763 }
 0x182   : > { %v479_v37 = vpop.permute.xlu0 %478 }
 0x183   : > { %v481_v38 = vmul.f32 %v764_v36, %v479_v37 }
 0x185   : > { %483 = vrot.lane.b32.xlu1 %v481_v38, %s810_s25 }
 0x186   : > { %v474_v39 = vpop.permute.xlu0 %473 }
 0x187   : > { %v476_v40 = vmul.f32 %v764_v36, %v474_v39 }
 0x1f7   : > { %v484_v41 = vpop.permute.xlu1 %483 }
 0x1f8   : > { %v486_v42 = vadd.f32 %v484_v41, %v476_v40 }
 0x1fa   : > { %765 = vtanh.f32 %v486_v42 }
 0x207   : > { %v766_v43 = vpop.eup %765 }
 0x208   : > { %489 = vrot.lane.b32.xlu1 %v766_v43, %s810_s25 }
 0x20c   : > { %501 = vrot.lane.b32.xlu1 %v486_v42, %s811_s16 }
 0x27a   : > { %v490_v44 = vpop.permute.xlu1 %489 }
 0x27b   : > { %v492_v45 = vmul.f32 %v764_v36, %v490_v44 }
 0x27d   : > { %494 = vrot.lane.b32.xlu0 %v492_v45, %s812_s26 }
 0x27e   : > { %v502_v46 = vpop.permute.xlu1 %501 }
 0x27f   : > { %504 = vst.msk [vmem:[#allocation3] sm:$0x3] %vm497_vm3, %v502_v46 }
 0x2ef   : > { %v495_v47 = vpop.permute.xlu0 %494 }
 0x2f0   : > { %498 = vst.msk [vmem:[%s899_s23] sm:$0x3] %vm497_vm3, %v495_v47  ;;  %499 = vst.msk [vmem:[#allocation2] sm:$0x3] %vm497_vm3, %v495_v47 }
 0x2f1 PF: > { %s14_s19 = sadd.s32 1, %s805_s19   ;;  %s971_s15 = smov %s797_s17 }
 0x2f2   : > { %p11_p8 = scmp.ge.s32.totalorder %s14_s19, 6   ;;  %s972_s16 = smov %s801_s18 }
 0x2f3   : > { %s973_s17 = smov %s976_s20  ;;  %s974_s18 = smov %s980_s21 }
 0x2f4   :  { %13 = sbr.rel (!%p11_p8) target bundleno = 3 (0x3), region = 79 }

// kernel: las_forward.9
= control target key start
LH: loop header
LB: loop body
LE: loop exit
PB: predicated region body
PF: predicated region fallthrough
CT: control target
= control target key end

     0   :  { %v270_v0 = vmov 0.0   ;;  %vm38_vm0 = vcmask 523264   ;;  %vm271_vm1 = vmmov 0   ;;  %vm112_vm2 = vcmask 517120   ;;  %s370_s1 = inlined_call_operand.vmem [shape: f32[64,64], index: 1, kind: input, shape index: {}]   ;;  %s371_s3 = inlined_call_operand.vmem [shape: f32[64,64], index: 3, kind: input, shape index: {}]   ;;  %s372_s0 = inlined_call_operand.vmem [shape: f32[2,64], index: 0, kind: input, shape index: {}]   ;;  %s373_s2 = inlined_call_operand.vmem [shape: f32[1,64], index: 2, kind: input, shape index: {}]   ;;  %s374_s4 = inlined_call_operand.vmem [shape: f32[1,64], index: 4, kind: input, shape index: {}]   ;;  %s375_s5 = inlined_call_operand.vmem [shape: f32[2,64], index: 5, kind: output, shape index: {0}]   ;;  %s376_s6 = inlined_call_operand.vmem [shape: f32[2,64], index: 6, kind: output, shape index: {1}]  }
   0x1   :  { %230 = vmatprep.subr.mxu0 %v270_v0  ;;  %249 = vmatprep.subr.mxu1 %v270_v0  ;;  %v30_v1 = vld [vmem:[%s370_s1 + $0x38] sm:$0xff]  ;;  %v29_v3 = vld [vmem:[%s370_s1 + $0x30] sm:$0xff]  ;;  %v28_v5 = vld [vmem:[%s370_s1 + $0x28] sm:$0xff] }
   0x2   :  { %v121_v2 = vld [vmem:[%s371_s3 + $0x38] sm:$0xff]  ;;  %231 = vmatpush3.msra.mxu0 %v30_v1  ;;  %v120_v4 = vld [vmem:[%s371_s3 + $0x30] sm:$0xff]  ;;  %v119_v6 = vld [vmem:[%s371_s3 + $0x28] sm:$0xff]  ;;  %246 = vmatprep.mubr.msk.f32.mxu0 %vm271_vm1, %v270_v0 }
   0x3   :  { %250 = vmatpush3.msra.mxu1 %v121_v2  ;;  %232 = vmatprep.subr.mxu0 %v270_v0  ;;  %v27_v7 = vld [vmem:[%s370_s1 + $0x20] sm:$0xff]  ;;  %v26_v9 = vld [vmem:[%s370_s1 + $0x18] sm:$0xff]  ;;  %v25_v11 = vld [vmem:[%s370_s1 + $0x10] sm:$0xff] }
   0x4   :  { %251 = vmatprep.subr.mxu1 %v270_v0  ;;  %233 = vmatpush3.msra.mxu0 %v29_v3  ;;  %v118_v8 = vld [vmem:[%s371_s3 + $0x20] sm:$0xff]  ;;  %v117_v10 = vld [vmem:[%s371_s3 + $0x18] sm:$0xff]  ;;  %v116_v12 = vld [vmem:[%s371_s3 + $0x10] sm:$0xff] }
   0x5   :  { %252 = vmatpush3.msra.mxu1 %v120_v4  ;;  %234 = vmatprep.subr.mxu0 %v270_v0  ;;  %v24_v13 = vld [vmem:[%s370_s1 + $0x8] sm:$0xff]  ;;  %v23_v15 = vld [vmem:[%s370_s1] sm:$0xff] }
   0x6   :  { %253 = vmatprep.subr.mxu1 %v270_v0  ;;  %235 = vmatpush3.msra.mxu0 %v28_v5  ;;  %v115_v14 = vld [vmem:[%s371_s3 + $0x8] sm:$0xff]  ;;  %v114_v16 = vld [vmem:[%s371_s3] sm:$0xff] }
   0x7   :  { %254 = vmatpush3.msra.mxu1 %v119_v6  ;;  %236 = vmatprep.subr.mxu0 %v270_v0  ;;  %v22_v17 = vld [vmem:[%s372_s0] sm:$0x3] }
   0x8   :  { %255 = vmatprep.subr.mxu1 %v270_v0  ;;  %237 = vmatpush3.msra.mxu0 %v27_v7  ;;  %v208_v18 = vld [vmem:[%s373_s2] ss:$0 sm:$0xff] }
   0x9   :  { %256 = vmatpush3.msra.mxu1 %v118_v8  ;;  %238 = vmatprep.subr.mxu0 %v270_v0  ;;  %v210_v19 = vld [vmem:[%s374_s4] ss:$0 sm:$0xff] }
   0xa   :  { %257 = vmatprep.subr.mxu1 %v270_v0  ;;  %239 = vmatpush3.msra.mxu0 %v26_v9 }
   0xb   :  { %258 = vmatpush3.msra.mxu1 %v117_v10  ;;  %240 = vmatprep.subr.mxu0 %v270_v0 }
   0xc   :  { %259 = vmatprep.subr.mxu1 %v270_v0  ;;  %241 = vmatpush3.msra.mxu0 %v25_v11 }
   0xd   :  { %260 = vmatpush3.msra.mxu1 %v116_v12  ;;  %242 = vmatprep.subr.mxu0 %v270_v0 }
   0xe   :  { %261 = vmatprep.subr.mxu1 %v270_v0  ;;  %243 = vmatpush3.msra.mxu0 %v24_v13 }
   0xf   :  { %262 = vmatpush3.msra.mxu1 %v115_v14  ;;  %244 = vmatprep.subr.mxu0 %v270_v0 }
  0x10   :  { %263 = vmatprep.subr.mxu1 %v270_v0  ;;  %245 = vmatpush3.msra.mxu0 %v23_v15 }
  0x11   :  { %264 = vmatpush3.msra.mxu1 %v114_v16  ;;  %265 = vmatprep.mubr.msk.f32.mxu1 %vm271_vm1, %v270_v0 }
  0x12   :  { %247 = vmatmul.mubr.msk.f32.vlgmr.msra.gmra.mxu0 %vm38_vm0, %v22_v17  ;;  %266 = vmatmul.mubr.msk.f32.vlgmr.msra.gmra.mxu1 %vm38_vm0, %v22_v17 }
  0xd2   :  { %v108_v20 = vpop.f32.mrf.mxu0  ;;  %v195_v21 = vpop.f32.mrf.mxu1 }
  0xd3   :  { %v109_v22 = vadd.f32 %v208_v18, %v108_v20  ;;  %v196_v23 = vadd.f32 %v210_v19, %v195_v21 }
  0xd4   :  { %v248_v24 = vpop.f32.mrf.mxu0  ;;  %v267_v25 = vpop.f32.mrf.mxu1 }
  0xd5   :  { %113 = vst.msk [vmem:[%s375_s5] sm:$0x3] %vm112_vm2, %v109_v22  ;;  %199 = vst.msk [vmem:[%s376_s6] sm:$0x3] %vm112_vm2, %v196_v23 }

// kernel: las_forward.10
= control target key start
LH: loop header
LB: loop body
LE: loop exit
PB: predicated region body
PF: predicated region fallthrough
CT: control target
= control target key end

     0   :  { %v425_v0 = vmov 0.0   ;;  %vm426_vm0 = vmmov 0   ;;  %vm42_vm1 = vcmask 523264   ;;  %vm136_vm2 = vcmask 785408   ;;  %s618_s1 = inlined_call_operand.vmem [shape: f32[64,96], index: 1, kind: input, shape index: {}]   ;;  %s619_s3 = inlined_call_operand.vmem [shape: f32[96,96], index: 3, kind: input, shape index: {}]   ;;  %s620_s0 = inlined_call_operand.vmem [shape: f32[4,64], index: 0, kind: input, shape index: {}]   ;;  %s621_s5 = inlined_call_operand.vmem [shape: f32[96,32], index: 5, kind: input, shape index: {}]   ;;  %s622_s2 = inlined_call_operand.vmem [shape: f32[1,96], index: 2, kind: input, shape index: {}]   ;;  %s623_s4 = inlined_call_operand.vmem [shape: f32[1,96], index: 4, kind: input, shape index: {}]   ;;  %s624_s6 = inlined_call_operand.vmem [shape: f32[1,32], index: 6, kind: input, shape index: {}]   ;;  %s625_s7 = inlined_call_operand.vmem [shape: f32[4,32], index: 7, kind: output, shape index: {}]  }
   0x1   :  { %350 = vmatprep.subr.mxu0 %v425_v0  ;;  %v34_v1 = vld [vmem:[%s618_s1 + $0x38] sm:$0xff]  ;;  %v33_v2 = vld [vmem:[%s618_s1 + $0x30] sm:$0xff]  ;;  %366 = vmatprep.mubr.msk.f32.mxu0 %vm426_vm0, %v425_v0  ;;  %v32_v3 = vld [vmem:[%s618_s1 + $0x28] sm:$0xff]  ;;  %vm303_vm3 = vcmask 257024  }
   0x2   :  { %351 = vmatpush3.msra.mxu0 %v34_v1  ;;  %369 = vmatprep.subr.mxu1 %v425_v0  ;;  %v128_v4 = vld [vmem:[%s619_s3 + $0x58] sm:$0xff]  ;;  %v127_v5 = vld [vmem:[%s619_s3 + $0x50] sm:$0xff]  ;;  %v31_v6 = vld [vmem:[%s618_s1 + $0x20] sm:$0xff] }
   0x3   :  { %352 = vmatprep.subr.mxu0 %v425_v0  ;;  %393 = vmatprep.mubr.msk.f32.mxu1 %vm426_vm0, %v425_v0  ;;  %v126_v7 = vld [vmem:[%s619_s3 + $0x48] sm:$0xff]  ;;  %v30_v8 = vld [vmem:[%s618_s1 + $0x18] sm:$0xff]  ;;  %v125_v9 = vld [vmem:[%s619_s3 + $0x40] sm:$0xff] }
   0x4   :  { %353 = vmatpush3.msra.mxu0 %v33_v2  ;;  %370 = vmatpush3.msra.mxu1 %v128_v4  ;;  %v29_v10 = vld [vmem:[%s618_s1 + $0x10] sm:$0xff]  ;;  %v124_v11 = vld [vmem:[%s619_s3 + $0x38] sm:$0xff]  ;;  %v28_v12 = vld [vmem:[%s618_s1 + $0x8] sm:$0xff] }
   0x5   :  { %354 = vmatprep.subr.mxu0 %v425_v0  ;;  %371 = vmatprep.subr.mxu1 %v425_v0  ;;  %v123_v13 = vld [vmem:[%s619_s3 + $0x30] sm:$0xff]  ;;  %v27_v14 = vld [vmem:[%s618_s1] sm:$0xff]  ;;  %v122_v16 = vld [vmem:[%s619_s3 + $0x28] sm:$0xff] }
   0x6   :  { %355 = vmatpush3.msra.mxu0 %v32_v3  ;;  %372 = vmatpush3.msra.mxu1 %v127_v5  ;;  %v26_v15 = vld [vmem:[%s620_s0] sm:$0xf]  ;;  %v120_v18 = vld [vmem:[%s619_s3 + $0x18] sm:$0xff]  ;;  %v119_v19 = vld [vmem:[%s619_s3 + $0x10] sm:$0xff] }
   0x7   :  { %356 = vmatprep.subr.mxu0 %v425_v0  ;;  %373 = vmatprep.subr.mxu1 %v425_v0  ;;  %v121_v17 = vld [vmem:[%s619_s3 + $0x20] sm:$0xff]  ;;  %v118_v20 = vld [vmem:[%s619_s3 + $0x8] sm:$0xff]  ;;  %v222_v22 = vld [vmem:[%s621_s5 + $0x58] sm:$0xff] }
   0x8   :  { %357 = vmatpush3.msra.mxu0 %v31_v6  ;;  %374 = vmatpush3.msra.mxu1 %v126_v7  ;;  %v117_v21 = vld [vmem:[%s619_s3] sm:$0xff]  ;;  %v221_v23 = vld [vmem:[%s621_s5 + $0x50] sm:$0xff]  ;;  %v220_v24 = vld [vmem:[%s621_s5 + $0x48] sm:$0xff] }
   0x9   :  { %358 = vmatprep.subr.mxu0 %v425_v0  ;;  %375 = vmatprep.subr.mxu1 %v425_v0  ;;  %v219_v25 = vld [vmem:[%s621_s5 + $0x40] sm:$0xff]  ;;  %v218_v26 = vld [vmem:[%s621_s5 + $0x38] sm:$0xff]  ;;  %v217_v27 = vld [vmem:[%s621_s5 + $0x30] sm:$0xff] }
   0xa   :  { %359 = vmatpush3.msra.mxu0 %v30_v8  ;;  %376 = vmatpush3.msra.mxu1 %v125_v9  ;;  %v216_v28 = vld [vmem:[%s621_s5 + $0x28] sm:$0xff]  ;;  %v215_v29 = vld [vmem:[%s621_s5 + $0x20] sm:$0xff]  ;;  %v214_v30 = vld [vmem:[%s621_s5 + $0x18] sm:$0xff] }
   0xb   :  { %360 = vmatprep.subr.mxu0 %v425_v0  ;;  %377 = vmatprep.subr.mxu1 %v425_v0  ;;  %v309_v31 = vld [vmem:[%s622_s2] ss:$0 sm:$0xff]  ;;  %v213_v36 = vld [vmem:[%s621_s5 + $0x10] sm:$0xff]  ;;  %v212_v37 = vld [vmem:[%s621_s5 + $0x8] sm:$0xff] }
   0xc   :  { %361 = vmatpush3.msra.mxu0 %v29_v10  ;;  %378 = vmatpush3.msra.mxu1 %v124_v11  ;;  %v211_v38 = vld [vmem:[%s621_s5] sm:$0xff] }
   0xd   :  { %362 = vmatprep.subr.mxu0 %v425_v0  ;;  %379 = vmatprep.subr.mxu1 %v425_v0  ;;  %v311_v39 = vld [vmem:[%s623_s4] ss:$0 sm:$0xff] }
   0xe   :  { %363 = vmatpush3.msra.mxu0 %v28_v12  ;;  %380 = vmatpush3.msra.mxu1 %v123_v13  ;;  %v313_v44 = vld [vmem:[%s624_s6] ss:$0 sm:$0xff] }
   0xf   :  { %364 = vmatprep.subr.mxu0 %v425_v0  ;;  %381 = vmatprep.subr.mxu1 %v425_v0 }
  0x10   :  { %365 = vmatpush3.msra.mxu0 %v27_v14  ;;  %382 = vmatpush3.msra.mxu1 %v122_v16 }
  0x11   :  { %367 = vmatmul.mubr.msk.f32.vlgmr.msra.gmra.mxu0 %vm42_vm1, %v26_v15  ;;  %383 = vmatprep.subr.mxu1 %v425_v0 }
  0x12   :  { %396 = vmatprep.subr.mxu0 %v425_v0  ;;  %384 = vmatpush3.msra.mxu1 %v121_v17 }
  0x13   :  { %420 = vmatprep.mubr.msk.f32.mxu0 %vm426_vm0, %v425_v0  ;;  %385 = vmatprep.subr.mxu1 %v425_v0 }
  0x14   :  { %386 = vmatpush3.msra.mxu1 %v120_v18  ;;  %397 = vmatpush3.msra.mxu0 %v222_v22 }
  0x15   :  { %387 = vmatprep.subr.mxu1 %v425_v0  ;;  %398 = vmatprep.subr.mxu0 %v425_v0 }
  0x16   :  { %388 = vmatpush3.msra.mxu1 %v119_v19  ;;  %399 = vmatpush3.msra.mxu0 %v221_v23 }
  0x17   :  { %389 = vmatprep.subr.mxu1 %v425_v0  ;;  %400 = vmatprep.subr.mxu0 %v425_v0 }
  0x18   :  { %390 = vmatpush3.msra.mxu1 %v118_v20  ;;  %401 = vmatpush3.msra.mxu0 %v220_v24 }
  0x19   :  { %391 = vmatprep.subr.mxu1 %v425_v0  ;;  %402 = vmatprep.subr.mxu0 %v425_v0 }
  0x1a   :  { %392 = vmatpush3.msra.mxu1 %v117_v21  ;;  %403 = vmatpush3.msra.mxu0 %v219_v25 }
  0x1b   :  { %404 = vmatprep.subr.mxu0 %v425_v0 }
  0x1c   :  { %405 = vmatpush3.msra.mxu0 %v218_v26 }
  0x1d   :  { %406 = vmatprep.subr.mxu0 %v425_v0 }
  0x1e   :  { %407 = vmatpush3.msra.mxu0 %v217_v27 }
  0x1f   :  { %408 = vmatprep.subr.mxu0 %v425_v0 }
  0x20   :  { %409 = vmatpush3.msra.mxu0 %v216_v28 }
  0x21   :  { %410 = vmatprep.subr.mxu0 %v425_v0 }
  0x22   :  { %411 = vmatpush3.msra.mxu0 %v215_v29 }
  0x23   :  { %412 = vmatprep.subr.mxu0 %v425_v0 }
  0x24   :  { %413 = vmatpush3.msra.mxu0 %v214_v30 }
  0x25   :  { %414 = vmatprep.subr.mxu0 %v425_v0 }
  0x26   :  { %415 = vmatpush3.msra.mxu0 %v213_v36 }
  0x27   :  { %416 = vmatprep.subr.mxu0 %v425_v0 }
  0x28   :  { %417 = vmatpush3.msra.mxu0 %v212_v37 }
  0x29   :  { %418 = vmatprep.subr.mxu0 %v425_v0 }
  0x2a   :  { %419 = vmatpush3.msra.mxu0 %v211_v38 }
  0xd1   :  { %v112_v32 = vpop.f32.mrf.mxu0 }
  0xd2   :  { %v113_v33 = vadd.f32 %v309_v31, %v112_v32 }
  0xd3   :  { %v368_v34 = vpop.f32.mrf.mxu0 }
  0xd4   :  { %v116_v35 = vmax.f32 %v113_v33, 0.0 }
  0xd6   :  { %394 = vmatmul.mubr.msk.f32.vlgmr.msra.gmra.mxu1 %vm136_vm2, %v116_v35 }
 0x196   :  { %v206_v40 = vpop.f32.mrf.mxu1 }
 0x197   :  { %v207_v41 = vadd.f32 %v311_v39, %v206_v40 }
 0x198   :  { %v395_v42 = vpop.f32.mrf.mxu1 }
 0x199   :  { %v210_v43 = vmax.f32 %v207_v41, 0.0 }
 0x19b   :  { %421 = vmatmul.mubr.msk.f32.vlgmr.msra.gmra.mxu0 %vm136_vm2, %v210_v43 }
 0x25b   :  { %v299_v45 = vpop.f32.mrf.mxu0 }
 0x25c   :  { %v300_v46 = vadd.f32 %v313_v44, %v299_v45 }
 0x25d   :  { %v422_v47 = vpop.f32.mrf.mxu0 }
 0x25e   :  { %304 = vst.msk [vmem:[%s625_s7] sm:$0xf] %vm303_vm3, %v300_v46 }

// kernel: las_forward.11
= control target key start
LH: loop header
LB: loop body
LE: loop exit
PB: predicated region body
PF: predicated region fallthrough
CT: control target
= control target key end

     0   :  { %s3885_s0 = inlined_call_operand.vmem [shape: s32[3,2,1], index: 0, kind: input, shape index: {}]   ;;  %s3886_s1 = inlined_call_operand.vmem [shape: f32[16,32], index: 1, kind: input, shape index: {}]   ;;  %s3887_s2 = inlined_call_operand.vmem [shape: f32[2,2,32], index: 2, kind: input, shape index: {}]   ;;  %s3888_s3 = inlined_call_operand.vmem [shape: f32[2,2,32], index: 3, kind: input, shape index: {}]   ;;  %s3889_s4 = inlined_call_operand.vmem [shape: f32[2,2,32], index: 4, kind: input, shape index: {}]   ;;  %s3890_s5 = inlined_call_operand.vmem [shape: f32[32,128], index: 5, kind: input, shape index: {}]   ;;  %s3891_s6 = inlined_call_operand.vmem [shape: f32[32,128], index: 6, kind: input, shape index: {}]   ;;  %s3892_s7 = inlined_call_operand.vmem [shape: f32[32,128], index: 7, kind: input, shape index: {}]   ;;  %s3893_s8 = inlined_call_operand.vmem [shape: f32[1,128], index: 8, kind: input, shape index: {}]   ;;  %s3894_s9 = inlined_call_operand.vmem [shape: f32[32,128], index: 9, kind: input, shape index: {}]   ;;  %s3895_s10 = inlined_call_operand.vmem [shape: f32[32,128], index: 10, kind: input, shape index: {}]   ;;  %s3896_s11 = inlined_call_operand.vmem [shape: f32[1,128], index: 11, kind: input, shape index: {}]   ;;  %s3897_s12 = inlined_call_operand.vmem [shape: f32[32,96], index: 12, kind: input, shape index: {}]   ;;  %s3898_s13 = inlined_call_operand.vmem [shape: f32[1,96], index: 13, kind: input, shape index: {}]   ;;  %s3899_s14 = inlined_call_operand.vmem [shape: f32[96,96], index: 14, kind: input, shape index: {}]   ;;  %s3900_s15 = inlined_call_operand.vmem [shape: f32[1,96], index: 15, kind: input, shape index: {}]   ;;  %s3901_s16 = inlined_call_operand.vmem [shape: f32[96,32], index: 16, kind: input, shape index: {}]   ;;  %s3902_s17 = inlined_call_operand.vmem [shape: f32[1,32], index: 17, kind: input, shape index: {}]   ;;  %s3903_s18 = inlined_call_operand.vmem [shape: f32[32,64], index: 18, kind: input, shape index: {}]   ;;  %s3904_s19 = inlined_call_operand.vmem [shape: f32[32,64], index: 19, kind: input, shape index: {}]   ;;  %s3905_s20 = inlined_call_operand.vmem [shape: f32[1,64], index: 20, kind: input, shape index: {}]   ;;  %s3906_s21 = inlined_call_operand.vmem [shape: f32[64,16], index: 21, kind: input, shape index: {}]   ;;  %s3907_s22 = inlined_call_operand.vmem [shape: f32[1,16], index: 22, kind: input, shape index: {}]   ;;  %s3908_s23 = inlined_call_operand.vmem [shape: f32[3,2,16], index: 23, kind: output, shape index: {}]  }
   0x1   :  { %3922 = sst [smem:[#allocation7_spill]] %s3885_s0 }
   0x2   :  { %3923 = sst [smem:[#allocation8_spill]] %s3886_s1 }
   0x3   :  { %3924 = sst [smem:[#allocation9_spill]] %s3887_s2 }
   0x4   :  { %3925 = sst [smem:[#allocation10_spill]] %s3888_s3 }
   0x5   :  { %3926 = sst [smem:[#allocation11_spill]] %s3889_s4  ;;  %s3291_s4 = smov 0  }
   0x6   :  { %3927 = sst [smem:[#allocation12_spill]] %s3890_s5 }
   0x7   :  { %3928 = sst [smem:[#allocation13_spill]] %s3891_s6 }
   0x8   :  { %3929 = sst [smem:[#allocation14_spill]] %s3892_s7 }
   0x9 LB: > { %s2650_s30 = sadd.s32 4294967295, %s3160_s4   ;;  %p2654_p0 = scmp.ge.s32.totalorder %s3160_s4, 1  ;;  %s3160_s4 = sphi %s3291_s4, %s33_s4  }
   0xa   : > { %p636_p1 = scmp.lt.s32.totalorder %s3160_s4, 4 }
   0xc   : > { %p637_p2 = pnand %p2654_p0, %p636_p1 }
   0xd   : > { %p698_p3 = scmp.lt.s32.totalorder (!%p637_p2), %s2650_s30, 2  ;;  %s3930_s26 = sld [smem:[#allocation7_spill]] (!%p637_p2) }
   0xe   : > { %640 = sbr.rel (%p637_p2) target bundleno = 4361 (0x1109), region = 112  ;;  %p2657_p4 = scmp.ne.s32.totalorder (!%p637_p2), %s2650_s30, 0 }
  0x13   : > { %s699_s24 = scalar_select %p698_p3, %s2650_s30, 2 }
  0x14   : > { %709 = sbr.rel (%p2657_p4) target bundleno = 1148 (0x47c), region = 116  ;;  %s3932_s27 = sld [smem:[#allocation9_spill]] (!%p2657_p4) }
  0x15   : > { %s2655_s25 = sshll.u32 %s699_s24, 1  ;;  %s3931_s24 = sld [smem:[#allocation10_spill]] (!%p2657_p4) }
  0x16   : > { %s3302_s2 = scalar_lea.vmem %s3930_s26, %s2655_s25  ;;  %s3307_s7 = scalar_lea.vmem %s3908_s23, %s2655_s25 }
  0x17   : > { %s3933_s5 = sld [smem:[#allocation11_spill]] (!%p2657_p4) }
  0x19   : > { %v727_v0 = vld [vmem:[%s3897_s12 + $0x18] sm:$0xff]  ;;  %v3162_v1 = vmov 0.0   ;;  %v726_v2 = vld [vmem:[%s3897_s12 + $0x10] sm:$0xff]  ;;  %vm3163_vm0 = vmmov 0   ;;  %v725_v5 = vld [vmem:[%s3897_s12 + $0x8] sm:$0xff]  ;;  %vm735_vm1 = vcmask 261120   ;;  %v996_v40 = vlaneseq }
  0x1a   : > { %2824 = vmatprep.subr.mxu0 %v3162_v1  ;;  %2832 = vmatprep.mubr.msk.f32.mxu0 %vm3163_vm0, %v3162_v1  ;;  %v821_v3 = vld [vmem:[%s3899_s14 + $0x58] sm:$0xff]  ;;  %v820_v4 = vld [vmem:[%s3899_s14 + $0x50] sm:$0xff]  ;;  %v819_v6 = vld [vmem:[%s3899_s14 + $0x48] sm:$0xff]  ;;  %vm829_vm2 = vcmask 785408   ;;  %v3164_v60 = vmov 0   ;;  %vm1180_vm3 = vcmask 1024  }
  0x1b   : > { %2825 = vmatpush3.msra.mxu0 %v727_v0  ;;  %2835 = vmatprep.subr.mxu1 %v3162_v1  ;;  %v724_v7 = vld [vmem:[%s3897_s12] sm:$0xff]  ;;  %v817_v10 = vld [vmem:[%s3899_s14 + $0x38] sm:$0xff]  ;;  %v816_v11 = vld [vmem:[%s3899_s14 + $0x30] sm:$0xff]  ;;  %v997_v41 = vshrl.u32 %v996_v40, 7  ;;  %vm711_vm4 = vcmask 254976   ;;  %vm1247_vm5 = vcmask 1041409  }
  0x1c   : > { %2826 = vmatprep.subr.mxu0 %v3162_v1  ;;  %2836 = vmatpush3.msra.mxu1 %v821_v3  ;;  %v2660_v8 = vld [vmem:[%s3931_s24 + $0x2] sm:$0x3]  ;;  %v815_v12 = vld [vmem:[%s3899_s14 + $0x28] sm:$0xff]  ;;  %v813_v14 = vld [vmem:[%s3899_s14 + $0x18] sm:$0xff] }
  0x1d   : > { %2827 = vmatpush3.msra.mxu0 %v726_v2  ;;  %2837 = vmatprep.subr.mxu1 %v3162_v1  ;;  %v818_v9 = vld [vmem:[%s3899_s14 + $0x40] sm:$0xff]  ;;  %v812_v15 = vld [vmem:[%s3899_s14 + $0x10] sm:$0xff]  ;;  %v811_v16 = vld [vmem:[%s3899_s14 + $0x8] sm:$0xff]  ;;  %v998_v43 = vsub.s32 0, %v997_v41  ;;  %v1017_v48 = vsub.s32 1, %v997_v41 }
  0x1e   : > { %2828 = vmatprep.subr.mxu0 %v3162_v1  ;;  %2838 = vmatpush3.msra.mxu1 %v820_v4  ;;  %v814_v13 = vld [vmem:[%s3899_s14 + $0x20] sm:$0xff]  ;;  %v915_v18 = vld [vmem:[%s3901_s16 + $0x58] sm:$0xff]  ;;  %v914_v19 = vld [vmem:[%s3901_s16 + $0x50] sm:$0xff] }
  0x1f   : > { %2829 = vmatpush3.msra.mxu0 %v725_v5  ;;  %2839 = vmatprep.subr.mxu1 %v3162_v1  ;;  %v810_v17 = vld [vmem:[%s3899_s14] sm:$0xff]  ;;  %v913_v20 = vld [vmem:[%s3901_s16 + $0x48] sm:$0xff]  ;;  %v911_v22 = vld [vmem:[%s3901_s16 + $0x38] sm:$0xff] }
  0x20   : > { %2830 = vmatprep.subr.mxu0 %v3162_v1  ;;  %2840 = vmatpush3.msra.mxu1 %v819_v6  ;;  %v912_v21 = vld [vmem:[%s3901_s16 + $0x40] sm:$0xff]  ;;  %v910_v23 = vld [vmem:[%s3901_s16 + $0x30] sm:$0xff]  ;;  %v909_v24 = vld [vmem:[%s3901_s16 + $0x28] sm:$0xff] }
  0x21   : > { %2831 = vmatpush3.msra.mxu0 %v724_v7  ;;  %2841 = vmatprep.subr.mxu1 %v3162_v1  ;;  %v908_v25 = vld [vmem:[%s3901_s16 + $0x20] sm:$0xff]  ;;  %v907_v26 = vld [vmem:[%s3901_s16 + $0x18] sm:$0xff]  ;;  %v906_v32 = vld [vmem:[%s3901_s16 + $0x10] sm:$0xff] }
  0x22   : > { %2833 = vmatmul.mubr.msk.f32.vlgmr.msra.gmra.mxu0 %vm735_vm1, %v2660_v8  ;;  %2842 = vmatpush3.msra.mxu1 %v818_v9  ;;  %v2661_v27 = vld [vmem:[%s3898_s13] ss:$0 sm:$0xff]  ;;  %v905_v33 = vld [vmem:[%s3901_s16 + $0x8] sm:$0xff]  ;;  %v3462_v57 = vld [vmem:[%s3932_s27 + $0x2] sm:$0x3] }
  0x23   : > { %2843 = vmatprep.subr.mxu1 %v3162_v1  ;;  %2859 = vmatprep.mubr.msk.f32.mxu1 %vm3163_vm0, %v3162_v1  ;;  %v904_v34 = vld [vmem:[%s3901_s16] sm:$0xff] }
  0x24   : > { %2844 = vmatpush3.msra.mxu1 %v817_v10  ;;  %2862 = vmatprep.subr.mxu0 %v3162_v1  ;;  %v2663_v35 = vld [vmem:[%s3900_s15] ss:$0 sm:$0xff] }
  0x25   : > { %2845 = vmatprep.subr.mxu1 %v3162_v1  ;;  %2886 = vmatprep.mubr.msk.f32.mxu0 %vm3163_vm0, %v3162_v1  ;;  %v2665_v42 = vld [vmem:[%s3902_s17] ss:$0 sm:$0xff] }
  0x26   : > { %2846 = vmatpush3.msra.mxu1 %v816_v11  ;;  %2863 = vmatpush3.msra.mxu0 %v915_v18  ;;  %v3457_v56 = vld [vmem:[%s3932_s27] sm:$0x3] }
  0x27   : > { %2847 = vmatprep.subr.mxu1 %v3162_v1  ;;  %2864 = vmatprep.subr.mxu0 %v3162_v1 }
  0x28   : > { %2848 = vmatpush3.msra.mxu1 %v815_v12  ;;  %2865 = vmatpush3.msra.mxu0 %v914_v19 }
  0x29   : > { %2849 = vmatprep.subr.mxu1 %v3162_v1  ;;  %2866 = vmatprep.subr.mxu0 %v3162_v1 }
  0x2a   : > { %2850 = vmatpush3.msra.mxu1 %v814_v13  ;;  %2867 = vmatpush3.msra.mxu0 %v913_v20 }
  0x2b   : > { %2851 = vmatprep.subr.mxu1 %v3162_v1  ;;  %2868 = vmatprep.subr.mxu0 %v3162_v1 }
  0x2c   : > { %2852 = vmatpush3.msra.mxu1 %v813_v14  ;;  %2869 = vmatpush3.msra.mxu0 %v912_v21 }
  0x2d   : > { %2853 = vmatprep.subr.mxu1 %v3162_v1  ;;  %2870 = vmatprep.subr.mxu0 %v3162_v1 }
  0x2e   : > { %2854 = vmatpush3.msra.mxu1 %v812_v15  ;;  %2871 = vmatpush3.msra.mxu0 %v911_v22 }
  0x2f   : > { %2855 = vmatprep.subr.mxu1 %v3162_v1  ;;  %2872 = vmatprep.subr.mxu0 %v3162_v1 }
  0x30   : > { %2856 = vmatpush3.msra.mxu1 %v811_v16  ;;  %2873 = vmatpush3.msra.mxu0 %v910_v23 }
  0x31   : > { %2857 = vmatprep.subr.mxu1 %v3162_v1  ;;  %2874 = vmatprep.subr.mxu0 %v3162_v1 }
  0x32   : > { %2858 = vmatpush3.msra.mxu1 %v810_v17  ;;  %2875 = vmatpush3.msra.mxu0 %v909_v24 }
  0x33   : > { %2889 = vmatprep.subr.mxu1 %v3162_v1  ;;  %2876 = vmatprep.subr.mxu0 %v3162_v1 }
  0x34   : > { %2877 = vmatpush3.msra.mxu0 %v908_v25  ;;  %3119 = vset.pattern.permute.xlu1 %v3164_v60 }
  0x35   : > { %2878 = vmatprep.subr.mxu0 %v3162_v1  ;;  %3118 = vset.pattern.permute.xlu0 %v3164_v60 }
  0x36   : > { %2879 = vmatpush3.msra.mxu0 %v907_v26 }
  0x37   : > { %2880 = vmatprep.subr.mxu0 %v3162_v1 }
  0x38   : > { %2881 = vmatpush3.msra.mxu0 %v906_v32 }
  0x39   : > { %2882 = vmatprep.subr.mxu0 %v3162_v1 }
  0x3a   : > { %2883 = vmatpush3.msra.mxu0 %v905_v33 }
  0x3b   : > { %2884 = vmatprep.subr.mxu0 %v3162_v1 }
  0x3c   : > { %2885 = vmatpush3.msra.mxu0 %v904_v34 }
  0x3d   : > { %2900 = vmatprep.subr.mxu0 %v3162_v1 }
  0xe2   : > { %v805_v28 = vpop.f32.mrf.mxu0 }
  0xe3   : > { %v806_v29 = vadd.f32 %v2661_v27, %v805_v28 }
  0xe4   : > { %v2834_v30 = vpop.f32.mrf.mxu0 }
  0xe5   : > { %v809_v31 = vmax.f32 %v806_v29, 0.0 }
  0xe7   : > { %2860 = vmatmul.mubr.msk.f32.vlgmr.msra.gmra.mxu1 %vm829_vm2, %v809_v31 }
  0xe8   : > { %2897 = vmatprep.mubr.msk.f32.mxu1 %vm3163_vm0, %v3162_v1 }
 0x1a7   : > { %v899_v36 = vpop.f32.mrf.mxu1 }
 0x1a8   : > { %v900_v37 = vadd.f32 %v2663_v35, %v899_v36  ;;  %v710_v35 = vld [vmem:[%s3931_s24] sm:$0x3] }
 0x1a9   : > { %v2861_v38 = vpop.f32.mrf.mxu1  ;;  %v713_v36 = vld [vmem:[%s3933_s5] sm:$0x3]  ;;  %712 = vst.msk [vmem:[#allocation2] sm:$0x3] %vm711_vm4, %v710_v35 }
 0x1aa   : > { %v903_v39 = vmax.f32 %v900_v37, 0.0  ;;  %714 = vst.msk [vmem:[#allocation3] sm:$0x3] %vm711_vm4, %v713_v36  ;;  %v2658_v37 = vld [vmem:[%s3931_s24 + $0x2] sm:$0x3] }
 0x1ab   : > { %v2659_v38 = vld [vmem:[%s3933_s5 + $0x2] sm:$0x3]  ;;  %717 = vst.msk [vmem:[#allocation4] sm:$0x3] %vm711_vm4, %v2658_v37 }
 0x1ac   : > { %2887 = vmatmul.mubr.msk.f32.vlgmr.msra.gmra.mxu0 %vm829_vm2, %v903_v39  ;;  %720 = vst.msk [vmem:[#allocation5] sm:$0x3] %vm711_vm4, %v2659_v38 }
 0x1ad   : > { %2908 = vmatprep.mubr.msk.f32.mxu0 %vm3163_vm0, %v3162_v1 }
 0x26c   : > { %v992_v44 = vpop.f32.mrf.mxu0 }
 0x26d   : > { %v993_v45 = vadd.f32 %v2665_v42, %v992_v44 }
 0x26e   : > { %v2888_v46 = vpop.f32.mrf.mxu0 }
 0x26f   : > { %v999_v47 = vrot.slane %v993_v45, %v998_v43  ;;  %v1018_v49 = vrot.slane %v993_v45, %v1017_v48 }
 0x271   : > { %1009 = vbcast.lane.b32.xlu1 %v999_v47, 272  ;;  %1013 = vbcast.lane.b32.xlu0 %v999_v47, 280 }
 0x275   : > { %1028 = vbcast.lane.b32.xlu1 %v1018_v49, 272  ;;  %1032 = vbcast.lane.b32.xlu0 %v1018_v49, 280 }
 0x279   : > { %1024 = vbcast.lane.b32.xlu1 %v1018_v49, 264  ;;  %1005 = vbcast.lane.b32.xlu0 %v999_v47, 264 }
 0x27d   : > { %1020 = vbcast.lane.b32.xlu1 %v1018_v49, 256  ;;  %1001 = vbcast.lane.b32.xlu0 %v999_v47, 256 }
 0x2e3   : > { %v1010_v50 = vpop.permute.xlu1 %1009  ;;  %v1014_v51 = vpop.permute.xlu0 %1013 }
 0x2e4   : > { %2890 = vmatpush3.msra.mxu1 %v1014_v51 }
 0x2e5   : > { %2891 = vmatprep.subr.mxu1 %v3162_v1 }
 0x2e6   : > { %2892 = vmatpush3.msra.mxu1 %v1010_v50 }
 0x2e7   : > { %v1029_v52 = vpop.permute.xlu1 %1028  ;;  %v1033_v53 = vpop.permute.xlu0 %1032  ;;  %2893 = vmatprep.subr.mxu1 %v3162_v1 }
 0x2e8   : > { %2901 = vmatpush3.msra.mxu0 %v1033_v53 }
 0x2e9   : > { %2902 = vmatprep.subr.mxu0 %v3162_v1 }
 0x2ea   : > { %2903 = vmatpush3.msra.mxu0 %v1029_v52 }
 0x2eb   : > { %v1025_v54 = vpop.permute.xlu1 %1024  ;;  %2904 = vmatprep.subr.mxu0 %v3162_v1  ;;  %v1006_v55 = vpop.permute.xlu0 %1005 }
 0x2ec   : > { %2894 = vmatpush3.msra.mxu1 %v1006_v55  ;;  %2905 = vmatpush3.msra.mxu0 %v1025_v54 }
 0x2ed   : > { %2895 = vmatprep.subr.mxu1 %v3162_v1  ;;  %2906 = vmatprep.subr.mxu0 %v3162_v1 }
 0x2ef   : > { %v1021_v58 = vpop.permute.xlu1 %1020  ;;  %v1002_v59 = vpop.permute.xlu0 %1001 }
 0x2f0   : > { %2896 = vmatpush3.msra.mxu1 %v1002_v59  ;;  %2907 = vmatpush3.msra.mxu0 %v1021_v58 }
 0x2f1   : > { %2898 = vmatmul.mubr.msk.f32.vlgmr.msra.gmra.mxu1 %vm735_vm1, %v3457_v56  ;;  %2909 = vmatmul.mubr.msk.f32.vlgmr.msra.gmra.mxu0 %vm735_vm1, %v3462_v57 }
 0x3b1   : > { %v1103_v61 = vpop.f32.mrf.mxu1  ;;  %v1176_v62 = vpop.f32.mrf.mxu0 }
 0x3b2   : > { %v1181_v63 = vsel %vm1180_vm3, %v1103_v61, -inf  ;;  %v1188_v0 = vsel %vm1180_vm3, %v1176_v62, -inf }
 0x3b3   : > { %v1182_v1 = vrot.slane %v1181_v63, 4  ;;  %v1189_v2 = vrot.slane %v1188_v0, 4  ;;  %v2899_v3 = vpop.f32.mrf.mxu1  ;;  %v2910_v4 = vpop.f32.mrf.mxu0 }
 0x3b5   : > { %v1183_v5 = vmax.f32 %v1181_v63, %v1182_v1  ;;  %v1190_v6 = vmax.f32 %v1188_v0, %v1189_v2 }
 0x3b7   : > { %v1184_v7 = vrot.slane %v1183_v5, 2  ;;  %v1191_v8 = vrot.slane %v1190_v6, 2 }
 0x3b9   : > { %v1185_v9 = vmax.f32 %v1183_v5, %v1184_v7  ;;  %v1192_v10 = vmax.f32 %v1190_v6, %v1191_v8 }
 0x3bb   : > { %v1186_v11 = vrot.slane %v1185_v9, 1  ;;  %v1193_v12 = vrot.slane %v1192_v10, 1 }
 0x3bd   : > { %v1187_v13 = vmax.f32 %v1185_v9, %v1186_v11  ;;  %v1194_v14 = vmax.f32 %v1192_v10, %v1193_v12 }
 0x3bf   : > { %v1195_v15 = vsub.f32 %v1103_v61, %v1187_v13  ;;  %v1196_v16 = vsub.f32 %v1176_v62, %v1194_v14 }
 0x3c1   : > { %v1197_v17 = vmul.f32 1.442695, %v1195_v15  ;;  %v1199_v18 = vmul.f32 1.442695, %v1196_v16 }
 0x3c3   : > { %3120 = vpow2.f32 %v1197_v17 }
 0x3c4   : > { %3122 = vpow2.f32 %v1199_v18 }
 0x3d0   : > { %v3121_v19 = vpop.eup %3120 }
 0x3d1   : > { %v3123_v20 = vpop.eup %3122  ;;  %v1201_v21 = vsel %vm1180_vm3, %v3121_v19, 0.0 }
 0x3d2   : > { %v1202_v22 = vrot.slane %v1201_v21, 4  ;;  %v1208_v23 = vsel %vm1180_vm3, %v3123_v20, 0.0 }
 0x3d3   : > { %v1209_v24 = vrot.slane %v1208_v23, 4 }
 0x3d4   : > { %v1203_v25 = vadd.f32 %v1202_v22, %v1201_v21 }
 0x3d5   : > { %v1210_v26 = vadd.f32 %v1209_v24, %v1208_v23 }
 0x3d6   : > { %v1204_v27 = vrot.slane %v1203_v25, 2 }
 0x3d7   : > { %v1211_v28 = vrot.slane %v1210_v26, 2 }
 0x3d8   : > { %v1205_v29 = vadd.f32 %v1204_v27, %v1203_v25 }
 0x3d9   : > { %v1212_v30 = vadd.f32 %v1211_v28, %v1210_v26 }
 0x3da   : > { %v1206_v31 = vrot.slane %v1205_v29, 1 }
 0x3db   : > { %v1213_v32 = vrot.slane %v1212_v30, 1 }
 0x3dc   : > { %v1207_v33 = vadd.f32 %v1206_v31, %v1205_v29 }
 0x3dd   : > { %v1214_v34 = vadd.f32 %v1213_v32, %v1212_v30 }
 0x3de   : > { %3124 = vrcp.f32 %v1207_v33 }
 0x3df   : > { %3126 = vrcp.f32 %v1214_v34 }
 0x3eb   : > { %v3125_v39 = vpop.eup %3124 }
 0x3ec   : > { %v3127_v40 = vpop.eup %3126  ;;  %v1217_v41 = vmul.f32 %v3125_v39, %v3121_v19 }
 0x3ed   : > { %v1218_v42 = vmul.f32 %v3127_v40, %v3123_v20 }
 0x3ee   : > { %1221 = vperm.xlu0 %3118, %v1217_v41  }
 0x3ef   : > { %1226 = vperm.xlu1 %3119, %v1218_v42  }
 0x469   : > { %v1222_v43 = vpop.permute.xlu0 %1221 }
 0x46a   : > { %v1229_v44 = vmul.f32 %v1222_v43, %v3457_v56  ;;  %v1227_v45 = vpop.permute.xlu1 %1226 }
 0x46b   : > { %v1230_v46 = vmul.f32 %v1227_v45, %v3462_v57 }
 0x46c   : > { %v1231_v47 = vsel %vm711_vm4, %v1229_v44, 0.0 }
 0x46d   : > { %v1232_v48 = vrot.slane %v1231_v47, 4  ;;  %v1238_v49 = vsel %vm711_vm4, %v1230_v46, 0.0 }
 0x46e   : > { %v1239_v50 = vrot.slane %v1238_v49, 4 }
 0x46f   : > { %v1233_v51 = vadd.f32 %v1232_v48, %v1231_v47 }
 0x470   : > { %v1240_v52 = vadd.f32 %v1239_v50, %v1238_v49 }
 0x471   : > { %v1234_v53 = vrot.slane %v1233_v51, 2 }
 0x472   : > { %v1241_v54 = vrot.slane %v1240_v52, 2 }
 0x473   : > { %v1235_v55 = vadd.f32 %v1234_v53, %v1233_v51 }
 0x474   : > { %v1242_v58 = vadd.f32 %v1241_v54, %v1240_v52 }
 0x475   : > { %v1236_v59 = vrot.slane %v1235_v55, 1 }
 0x476   : > { %v1243_v60 = vrot.slane %v1242_v58, 1 }
 0x477   : > { %v1237_v61 = vadd.f32 %v1236_v59, %v1235_v55 }
 0x478   : > { %v1244_v56 = vadd.f32 %v1243_v60, %v1242_v58 }
 0x47a   : > { %v1248_v62 = vsel %vm1247_vm5, %v1244_v56, %v1237_v61 }
 0x47b   : > { %1250 = vst.msk [vmem:[#allocation6] sm:$0x3] %vm711_vm4, %v1248_v62 }
 0x47c PF: > { %v1251_v57 = vld [vmem:[%s3302_s2] sm:$0x3]  ;;  %s3934_s3 = sld [smem:[#allocation8_spill]]  ;;  %v3165_v0 = vmov 0   ;;  %v3166_v1 = vmov 0.0   ;;  %vm3167_vm6 = vmmov 0   ;;  %v1252_v6 = vlaneseq }
 0x47d   : > { %3128 = vset.pattern.permute.xlu0 %v3165_v0  ;;  %2911 = vmatprep.subr.mxu0 %v3166_v1  ;;  %s3935_s1 = sld [smem:[#allocation14_spill]]  ;;  %vm1262_vm7 = vcmask 130048   ;;  %vm1345_vm9 = vcmask 261120   ;;  %v1492_v20 = vld [vmem:[#allocation2] sm:$0x3]  ;;  %s3917_s26 = smov 32  }
 0x47e   : > { %1255 = vperm.xlu0 %3128, %v1251_v57   ;;  %2915 = vmatprep.mubr.msk.f32.mxu0 %vm3167_vm6, %v3166_v1  ;;  %v1253_v7 = vand.u32 127, %v1252_v6  ;;  %s3936_s25 = sld [smem:[#allocation13_spill]]  ;;  %v1579_v21 = vld [vmem:[#allocation3] sm:$0x3]  ;;  %v2674_v30 = vld [vmem:[%s3893_s8] ss:$0 sm:$0xff] }
 0x47f   : > { %2940 = vmatprep.subr.mxu1 %v3166_v1  ;;  %2948 = vmatprep.mubr.msk.f32.mxu1 %vm3167_vm6, %v3166_v1  ;;  %s3937_s2 = sld [smem:[#allocation12_spill]]  ;;  %v1616_v45 = vld [vmem:[%s3895_s10 + $0x18] sm:$0xff]  ;;  %v1615_v46 = vld [vmem:[%s3895_s10 + $0x10] sm:$0xff]  ;;  %v1614_v49 = vld [vmem:[%s3895_s10 + $0x8] sm:$0xff]  ;;  %s3938_s28 = smov 32   ;;  %vm2312_vm10 = vcmask 254976  }
 0x480   : > { %3129 = vset.pattern.permute.xlu1 %v3165_v0  ;;  %v1611_v47 = vld [vmem:[%s3894_s9 + $0x18] sm:$0xff]  ;;  %v1610_v48 = vld [vmem:[%s3894_s9 + $0x10] sm:$0xff]  ;;  %v1609_v50 = vld [vmem:[%s3894_s9 + $0x8] sm:$0xff]  ;;  %s3920_s29 = smov 64   ;;  %vm1910_vm11 = vcmask 785408   ;;  %s3940_s27 = sld [smem:[#allocation9_spill]] }
 0x481   : > { %1588 = vrot.lane.b32.xlu1 %v1579_v21, %s3917_s26  ;;  %v1613_v51 = vld [vmem:[%s3895_s10] sm:$0xff]  ;;  %v1901_v21 = vld [vmem:[%s3899_s14 + $0x50] sm:$0xff]  ;;  %vm2261_vm12 = vcmask 1024   ;;  %vm2337_vm13 = vcmask 1041409   ;;  %vm2505_vm14 = vcmask 523264   ;;  %vm2579_vm15 = vcmask 123904  }
 0x482   : > { %v1261_v63 = vld [vmem:[%s3934_s3 + $0x8] sm:$0xff]  ;;  %v1260_v2 = vld [vmem:[%s3934_s3] sm:$0xff] }
 0x483   : > { %2912 = vmatpush3.msra.mxu0 %v1261_v63  ;;  %v1496_v3 = vld [vmem:[%s3935_s1 + $0x18] sm:$0xff]  ;;  %v1495_v4 = vld [vmem:[%s3935_s1 + $0x10] sm:$0xff]  ;;  %v1494_v5 = vld [vmem:[%s3935_s1 + $0x8] sm:$0xff] }
 0x484   : > { %2913 = vmatprep.subr.mxu0 %v3166_v1  ;;  %2941 = vmatpush3.msra.mxu1 %v1496_v3  ;;  %v1344_v9 = vld [vmem:[%s3936_s25 + $0x18] sm:$0xff]  ;;  %v1343_v11 = vld [vmem:[%s3936_s25 + $0x10] sm:$0xff]  ;;  %v1342_v12 = vld [vmem:[%s3936_s25 + $0x8] sm:$0xff] }
 0x485   : > { %2914 = vmatpush3.msra.mxu0 %v1260_v2  ;;  %2942 = vmatprep.subr.mxu1 %v3166_v1  ;;  %v1341_v13 = vld [vmem:[%s3936_s25] sm:$0xff]  ;;  %v1340_v14 = vld [vmem:[#allocation6] sm:$0x3]  ;;  %v1339_v15 = vld [vmem:[%s3937_s2 + $0x18] sm:$0xff] }
 0x486   : > { %2918 = vmatprep.subr.mxu0 %v3166_v1  ;;  %2943 = vmatpush3.msra.mxu1 %v1495_v4  ;;  %v1338_v16 = vld [vmem:[%s3937_s2 + $0x10] sm:$0xff]  ;;  %v1337_v17 = vld [vmem:[%s3937_s2 + $0x8] sm:$0xff]  ;;  %v1336_v18 = vld [vmem:[%s3937_s2] sm:$0xff] }
 0x487   : > { %2944 = vmatprep.subr.mxu1 %v3166_v1  ;;  %v1493_v19 = vld [vmem:[%s3935_s1] sm:$0xff] }
 0x488   : > { %2945 = vmatpush3.msra.mxu1 %v1494_v5  ;;  %v1608_v52 = vld [vmem:[%s3894_s9] sm:$0xff] }
 0x489   : > { %2946 = vmatprep.subr.mxu1 %v3166_v1  ;;  %v1612_v53 = vld [vmem:[#allocation4] sm:$0x3]  ;;  %v1773_v59 = vld [vmem:[#allocation5] sm:$0x3]  ;;  %v2678_v57 = vld [vmem:[%s3896_s11] ss:$0 sm:$0xff] }
 0x48a   : > { %2947 = vmatpush3.msra.mxu1 %v1493_v19 }
 0x48b   : > { %2949 = vmatmul.mubr.msk.f32.vlgmr.msra.gmra.mxu1 %vm1345_vm9, %v1492_v20  ;;  %2962 = vmatprep.subr.mxu1 %v3166_v1  ;;  %v1902_v20 = vld [vmem:[%s3899_s14 + $0x58] sm:$0xff] }
 0x48c   : > { %2970 = vmatprep.mubr.msk.f32.mxu1 %vm3167_vm6, %v3166_v1  ;;  %2963 = vmatpush3.msra.mxu1 %v1611_v47 }
 0x48d   : > { %2964 = vmatprep.subr.mxu1 %v3166_v1 }
 0x48e   : > { %2965 = vmatpush3.msra.mxu1 %v1610_v48 }
 0x48f   : > { %2966 = vmatprep.subr.mxu1 %v3166_v1 }
 0x490   : > { %2967 = vmatpush3.msra.mxu1 %v1609_v50  ;;  %v1987_v50 = vld [vmem:[%s3901_s16 + $0x10] sm:$0xff] }
 0x491   : > { %2968 = vmatprep.subr.mxu1 %v3166_v1 }
 0x492   : > { %2969 = vmatpush3.msra.mxu1 %v1608_v52  ;;  %v1985_v52 = vld [vmem:[%s3901_s16] sm:$0xff] }
 0x493   : > { %2984 = vmatprep.subr.mxu1 %v3166_v1 }
 0x4f3   : > { %v1589_v41 = vpop.permute.xlu1 %1588 }
 0x4f9   : > { %v1256_v8 = vpop.permute.xlu0 %1255 }
 0x4fa   : > { %vm1257_vm8 = vcmp.eq.s32.totalorder %v1253_v7, %v1256_v8 }
 0x4fb   : > { %v2669_v10 = vsel %vm1257_vm8, 1.0, %v3166_v1 }
 0x4fc   : > { %2916 = vmatmul.mubr.msk.f32.vlgmr.msra.gmra.mxu0 %vm1262_vm7, %v2669_v10 }
 0x4fd   : > { %2919 = vmatpush3.msra.mxu0 %v1344_v9  ;;  %2926 = vmatprep.mubr.msk.f32.mxu0 %vm3167_vm6, %v3166_v1 }
 0x4fe   : > { %2920 = vmatprep.subr.mxu0 %v3166_v1 }
 0x4ff   : > { %2921 = vmatpush3.msra.mxu0 %v1343_v11 }
 0x500   : > { %2922 = vmatprep.subr.mxu0 %v3166_v1 }
 0x501   : > { %2923 = vmatpush3.msra.mxu0 %v1342_v12 }
 0x502   : > { %2924 = vmatprep.subr.mxu0 %v3166_v1 }
 0x503   : > { %2925 = vmatpush3.msra.mxu0 %v1341_v13 }
 0x504   : > { %2927 = vmatmul.mubr.msk.f32.vlgmr.msra.gmra.mxu0 %vm1345_vm9, %v1340_v14  ;;  %2929 = vmatprep.subr.mxu0 %v3166_v1 }
 0x505   : > { %2930 = vmatpush3.msra.mxu0 %v1339_v15  ;;  %2937 = vmatprep.mubr.msk.f32.mxu0 %vm3167_vm6, %v3166_v1  ;;  %v1807_v15 = vld [vmem:[%s3897_s12 + $0x18] sm:$0xff] }
 0x506   : > { %2931 = vmatprep.subr.mxu0 %v3166_v1 }
 0x507   : > { %2932 = vmatpush3.msra.mxu0 %v1338_v16  ;;  %v1806_v16 = vld [vmem:[%s3897_s12 + $0x10] sm:$0xff] }
 0x508   : > { %2933 = vmatprep.subr.mxu0 %v3166_v1 }
 0x509   : > { %2934 = vmatpush3.msra.mxu0 %v1337_v17  ;;  %v1805_v17 = vld [vmem:[%s3897_s12 + $0x8] sm:$0xff] }
 0x50a   : > { %2935 = vmatprep.subr.mxu0 %v3166_v1 }
 0x50b   : > { %2936 = vmatpush3.msra.mxu0 %v1336_v18  ;;  %v1804_v18 = vld [vmem:[%s3897_s12] sm:$0xff] }
 0x50c   : > { %2951 = vmatprep.subr.mxu0 %v3166_v1 }
 0x54b   : > { %v1566_v26 = vpop.f32.mrf.mxu1 }
 0x54d   : > { %v2950_v27 = vpop.f32.mrf.mxu1 }
 0x54e   : > { %v1896_v27 = vld [vmem:[%s3899_s14 + $0x28] sm:$0xff] }
 0x5bc   : > { %v1332_v22 = vpop.f32.mrf.mxu0 }
 0x5bd   : > { %2938 = vmatmul.mubr.msk.f32.vlgmr.msra.gmra.mxu0 %vm1345_vm9, %v1332_v22  ;;  %v1900_v22 = vld [vmem:[%s3899_s14 + $0x48] sm:$0xff] }
 0x5be   : > { %v2917_v23 = vpop.f32.mrf.mxu0  ;;  %2959 = vmatprep.mubr.msk.f32.mxu0 %vm3167_vm6, %v3166_v1  ;;  %2952 = vmatpush3.msra.mxu0 %v1616_v45  ;;  %v2680_v45 = vld [vmem:[%s3898_s13] ss:$0 sm:$0xff] }
 0x5bf   : > { %2953 = vmatprep.subr.mxu0 %v3166_v1  ;;  %v1899_v23 = vld [vmem:[%s3899_s14 + $0x40] sm:$0xff] }
 0x5c0   : > { %2954 = vmatpush3.msra.mxu0 %v1615_v46 }
 0x5c1   : > { %2955 = vmatprep.subr.mxu0 %v3166_v1 }
 0x5c2   : > { %2956 = vmatpush3.msra.mxu0 %v1614_v49 }
 0x5c3   : > { %2957 = vmatprep.subr.mxu0 %v3166_v1 }
 0x5c4   : > { %v1415_v24 = vpop.f32.mrf.mxu0  ;;  %2958 = vmatpush3.msra.mxu0 %v1613_v51  ;;  %v1986_v51 = vld [vmem:[%s3901_s16 + $0x8] sm:$0xff] }
 0x5c5   : > { %2960 = vmatmul.mubr.msk.f32.vlgmr.msra.gmra.mxu0 %vm1345_vm9, %v1612_v53  ;;  %2973 = vmatprep.subr.mxu0 %v3166_v1  ;;  %v2682_v53 = vld [vmem:[%s3900_s15] ss:$0 sm:$0xff] }
 0x5c6   : > { %v2928_v25 = vpop.f32.mrf.mxu0  ;;  %2981 = vmatprep.mubr.msk.f32.mxu0 %vm3167_vm6, %v3166_v1  ;;  %2974 = vmatpush3.msra.mxu0 %v1807_v15  ;;  %v2330_v15 = vld [vmem:[%s3903_s18 + $0x18] sm:$0xff] }
 0x5c7   : > { %2975 = vmatprep.subr.mxu0 %v3166_v1  ;;  %v1897_v25 = vld [vmem:[%s3899_s14 + $0x30] sm:$0xff] }
 0x5c8   : > { %2976 = vmatpush3.msra.mxu0 %v1806_v16  ;;  %v2329_v16 = vld [vmem:[%s3903_s18 + $0x10] sm:$0xff] }
 0x5c9   : > { %2977 = vmatprep.subr.mxu0 %v3166_v1 }
 0x5ca   : > { %2978 = vmatpush3.msra.mxu0 %v1805_v17  ;;  %v2328_v17 = vld [vmem:[%s3903_s18 + $0x8] sm:$0xff] }
 0x5cb   : > { %2979 = vmatprep.subr.mxu0 %v3166_v1 }
 0x5cc   : > { %2980 = vmatpush3.msra.mxu0 %v1804_v18  ;;  %v2327_v18 = vld [vmem:[%s3903_s18] sm:$0xff] }
 0x5cd   : > { %3011 = vmatprep.subr.mxu0 %v3166_v1 }
 0x67d   : > { %v1488_v28 = vpop.f32.mrf.mxu0 }
 0x67e   : > { %v1489_v29 = vadd.f32 %v1488_v28, %v1415_v24  ;;  %v1898_v24 = vld [vmem:[%s3899_s14 + $0x38] sm:$0xff] }
 0x67f   : > { %v2939_v31 = vpop.f32.mrf.mxu0 }
 0x680   : > { %v1570_v32 = vadd.f32 %v1566_v26, %v1489_v29  ;;  %v1895_v29 = vld [vmem:[%s3899_s14 + $0x20] sm:$0xff] }
 0x682   : > { %v1578_v33 = vadd.f32 %v2674_v30, %v1570_v32  ;;  %v1894_v30 = vld [vmem:[%s3899_s14 + $0x18] sm:$0xff]  ;;  %v1893_v32 = vld [vmem:[%s3899_s14 + $0x10] sm:$0xff] }
 0x684   : > { %3130 = vtanh.f32 %v1578_v33  ;;  %v2675_v35 = vmul.f32 -1.442695, %v1578_v33  ;;  %v1892_v33 = vld [vmem:[%s3899_s14 + $0x8] sm:$0xff] }
 0x685   : > { %v1686_v60 = vpop.f32.mrf.mxu0 }
 0x686   : > { %3132 = vpow2.f32 %v2675_v35  ;;  %v1996_v35 = vld [vmem:[%s3901_s16 + $0x58] sm:$0xff] }
 0x687   : > { %v2961_v61 = vpop.f32.mrf.mxu0 }
 0x688   : > { %v2684_v61 = vld [vmem:[%s3902_s17] ss:$0 sm:$0xff] }
 0x691   : > { %v3131_v34 = vpop.eup %3130 }
 0x692   : > { %1593 = vrot.lane.b32.xlu0 %v3131_v34, %s3917_s26  ;;  %v1891_v34 = vld [vmem:[%s3899_s14] sm:$0xff] }
 0x693   : > { %v3133_v36 = vpop.eup %3132 }
 0x694   : > { %v1583_v37 = vadd.f32 1.0, %v3133_v36  ;;  %v1995_v36 = vld [vmem:[%s3901_s16 + $0x50] sm:$0xff] }
 0x696   : > { %3134 = vrcp.f32 %v1583_v37  ;;  %v1994_v37 = vld [vmem:[%s3901_s16 + $0x48] sm:$0xff] }
 0x6a3   : > { %v3135_v38 = vpop.eup %3134 }
 0x6a4   : > { %v1591_v42 = vmul.f32 %v3135_v38, %v1589_v41  ;;  %v1990_v41 = vld [vmem:[%s3901_s16 + $0x28] sm:$0xff] }
 0x704   : > { %v1594_v39 = vpop.permute.xlu0 %1593 }
 0x705   : > { %v1596_v40 = vmul.f32 %v3135_v38, %v1594_v39  ;;  %v1992_v39 = vld [vmem:[%s3901_s16 + $0x38] sm:$0xff] }
 0x707   : > { %1598 = vrot.lane.b32.xlu1 %v1596_v40, %s3917_s26  ;;  %v1991_v40 = vld [vmem:[%s3901_s16 + $0x30] sm:$0xff] }
 0x779   : > { %v1599_v43 = vpop.permute.xlu1 %1598 }
 0x77a   : > { %v3575_v44 = vadd.f32 %v1599_v43, %v1591_v42  ;;  %v1989_v42 = vld [vmem:[%s3901_s16 + $0x20] sm:$0xff]  ;;  %v1988_v43 = vld [vmem:[%s3901_s16 + $0x18] sm:$0xff] }
 0x77c   : > { %3136 = vtanh.f32 %v3575_v44 }
 0x789   : > { %v3137_v54 = vpop.eup %3136 }
 0x78a   : > { %1604 = vrot.lane.b32.xlu0 %v3137_v54, %s3938_s28 }
 0x7fc   : > { %v1605_v55 = vpop.permute.xlu0 %1604 }
 0x7fd   : > { %v1607_v58 = vmul.f32 %v3135_v38, %v1605_v55  ;;  %v1993_v38 = vld [vmem:[%s3901_s16 + $0x40] sm:$0xff] }
 0x7ff   : > { %1691 = vrot.lane.b32.xlu1 %v1607_v58, %s3920_s29  ;;  %s3170_s29 = smov 96  }
 0x803   : > { %1782 = vrot.lane.b32.xlu1 %v1773_v59, %s3938_s28 }
 0x871   : > { %v1692_v56 = vpop.permute.xlu1 %1691 }
 0x872   : > { %2582 = vst.msk [vmem:[#allocation2] sm:$0x3] %vm2312_vm10, %v1692_v56  ;;  %2971 = vmatmul.mubr.msk.f32.vlgmr.msra.gmra.mxu1 %vm1345_vm9, %v1692_v56 }
 0x873   : > { %3008 = vmatprep.mubr.msk.f32.mxu1 %vm3167_vm6, %v3166_v1  ;;  %2985 = vmatpush3.msra.mxu1 %v1902_v20 }
 0x874   : > { %2986 = vmatprep.subr.mxu1 %v3166_v1 }
 0x875   : > { %v1783_v11 = vpop.permute.xlu1 %1782  ;;  %2987 = vmatpush3.msra.mxu1 %v1901_v21 }
 0x876   : > { %2988 = vmatprep.subr.mxu1 %v3166_v1 }
 0x877   : > { %2989 = vmatpush3.msra.mxu1 %v1900_v22 }
 0x878   : > { %2990 = vmatprep.subr.mxu1 %v3166_v1 }
 0x879   : > { %2991 = vmatpush3.msra.mxu1 %v1899_v23 }
 0x87a   : > { %2992 = vmatprep.subr.mxu1 %v3166_v1 }
 0x87b   : > { %2993 = vmatpush3.msra.mxu1 %v1898_v24 }
 0x87c   : > { %2994 = vmatprep.subr.mxu1 %v3166_v1 }
 0x87d   : > { %2995 = vmatpush3.msra.mxu1 %v1897_v25 }
 0x87e   : > { %2996 = vmatprep.subr.mxu1 %v3166_v1 }
 0x87f   : > { %2997 = vmatpush3.msra.mxu1 %v1896_v27 }
 0x880   : > { %2998 = vmatprep.subr.mxu1 %v3166_v1 }
 0x881   : > { %2999 = vmatpush3.msra.mxu1 %v1895_v29 }
 0x882   : > { %3000 = vmatprep.subr.mxu1 %v3166_v1 }
 0x883   : > { %3001 = vmatpush3.msra.mxu1 %v1894_v30 }
 0x884   : > { %3002 = vmatprep.subr.mxu1 %v3166_v1 }
 0x885   : > { %3003 = vmatpush3.msra.mxu1 %v1893_v32 }
 0x886   : > { %3004 = vmatprep.subr.mxu1 %v3166_v1 }
 0x887   : > { %3005 = vmatpush3.msra.mxu1 %v1892_v33 }
 0x888   : > { %3006 = vmatprep.subr.mxu1 %v3166_v1 }
 0x889   : > { %3007 = vmatpush3.msra.mxu1 %v1891_v34 }
 0x88a   : > { %3038 = vmatprep.subr.mxu1 %v3166_v1 }
 0x932   : > { %v1761_v62 = vpop.f32.mrf.mxu1 }
 0x933   : > { %v1762_v63 = vadd.f32 %v1761_v62, %v1686_v60  ;;  %v2078_v60 = vshrl.u32 %v1252_v6, 7 }
 0x934   : > { %v2972_v0 = vpop.f32.mrf.mxu1 }
 0x935   : > { %v1772_v2 = vadd.f32 %v2678_v57, %v1762_v63  ;;  %v2079_v56 = vsub.s32 0, %v2078_v60  ;;  %v2098_v62 = vsub.s32 1, %v2078_v60 }
 0x937   : > { %3138 = vtanh.f32 %v1772_v2  ;;  %v2679_v4 = vmul.f32 -1.442695, %v1772_v2 }
 0x939   : > { %3140 = vpow2.f32 %v2679_v4 }
 0x944   : > { %v3139_v3 = vpop.eup %3138 }
 0x945   : > { %1787 = vrot.lane.b32.xlu0 %v3139_v3, %s3938_s28 }
 0x946   : > { %v3141_v5 = vpop.eup %3140 }
 0x947   : > { %v1777_v7 = vadd.f32 1.0, %v3141_v5 }
 0x949   : > { %3142 = vrcp.f32 %v1777_v7 }
 0x956   : > { %v3143_v8 = vpop.eup %3142 }
 0x957   : > { %v1785_v12 = vmul.f32 %v3143_v8, %v1783_v11  ;;  %v3780_v11 = vld [vmem:[%s3940_s27 + $0x2] sm:$0x3] }
 0x9b7   : > { %v1788_v9 = vpop.permute.xlu0 %1787 }
 0x9b8   : > { %v1790_v10 = vmul.f32 %v3143_v8, %v1788_v9 }
 0x9ba   : > { %1792 = vrot.lane.b32.xlu0 %v1790_v10, %s3938_s28  ;;  %v3775_v10 = vld [vmem:[%s3940_s27] sm:$0x3] }
 0xa2c   : > { %v1793_v13 = vpop.permute.xlu0 %1792 }
 0xa2d   : > { %v3625_v14 = vadd.f32 %v1793_v13, %v1785_v12 }
 0xa2f   : > { %3144 = vtanh.f32 %v3625_v14 }
 0xa3c   : > { %v3145_v19 = vpop.eup %3144 }
 0xa3d   : > { %1798 = vrot.lane.b32.xlu1 %v3145_v19, %s3938_s28  ;;  %s3939_s28 = smov 64  }
 0xaaf   : > { %v1799_v26 = vpop.permute.xlu1 %1798 }
 0xab0   : > { %v1801_v28 = vmul.f32 %v3143_v8, %v1799_v26 }
 0xab2   : > { %1816 = vrot.lane.b32.xlu0 %v1801_v28, %s3939_s28 }
 0xb24   : > { %v3682_v31 = vpop.permute.xlu0 %1816 }
 0xb25   : > { %2589 = vst.msk [vmem:[#allocation4] sm:$0x3] %vm2312_vm10, %v3682_v31  ;;  %2982 = vmatmul.mubr.msk.f32.vlgmr.msra.gmra.mxu0 %vm1345_vm9, %v3682_v31 }
 0xb26   : > { %3035 = vmatprep.mubr.msk.f32.mxu0 %vm3167_vm6, %v3166_v1  ;;  %3012 = vmatpush3.msra.mxu0 %v1996_v35 }
 0xb27   : > { %3013 = vmatprep.subr.mxu0 %v3166_v1 }
 0xb28   : > { %3014 = vmatpush3.msra.mxu0 %v1995_v36 }
 0xb29   : > { %3015 = vmatprep.subr.mxu0 %v3166_v1 }
 0xb2a   : > { %3016 = vmatpush3.msra.mxu0 %v1994_v37 }
 0xb2b   : > { %3017 = vmatprep.subr.mxu0 %v3166_v1 }
 0xb2c   : > { %3018 = vmatpush3.msra.mxu0 %v1993_v38 }
 0xb2d   : > { %3019 = vmatprep.subr.mxu0 %v3166_v1 }
 0xb2e   : > { %3020 = vmatpush3.msra.mxu0 %v1992_v39 }
 0xb2f   : > { %3021 = vmatprep.subr.mxu0 %v3166_v1 }
 0xb30   : > { %3022 = vmatpush3.msra.mxu0 %v1991_v40 }
 0xb31   : > { %3023 = vmatprep.subr.mxu0 %v3166_v1 }
 0xb32   : > { %3024 = vmatpush3.msra.mxu0 %v1990_v41 }
 0xb33   : > { %3025 = vmatprep.subr.mxu0 %v3166_v1 }
 0xb34   : > { %3026 = vmatpush3.msra.mxu0 %v1989_v42 }
 0xb35   : > { %3027 = vmatprep.subr.mxu0 %v3166_v1 }
 0xb36   : > { %3028 = vmatpush3.msra.mxu0 %v1988_v43 }
 0xb37   : > { %3029 = vmatprep.subr.mxu0 %v3166_v1 }
 0xb38   : > { %3030 = vmatpush3.msra.mxu0 %v1987_v50 }
 0xb39   : > { %3031 = vmatprep.subr.mxu0 %v3166_v1 }
 0xb3a   : > { %3032 = vmatpush3.msra.mxu0 %v1986_v51 }
 0xb3b   : > { %3033 = vmatprep.subr.mxu0 %v3166_v1 }
 0xb3c   : > { %3034 = vmatpush3.msra.mxu0 %v1985_v52 }
 0xb3d   : > { %3049 = vmatprep.subr.mxu0 %v3166_v1 }
 0xbe5   : > { %v1886_v46 = vpop.f32.mrf.mxu0 }
 0xbe6   : > { %v1887_v47 = vadd.f32 %v2680_v45, %v1886_v46 }
 0xbe7   : > { %v2983_v48 = vpop.f32.mrf.mxu0 }
 0xbe8   : > { %v1890_v49 = vmax.f32 %v1887_v47, 0.0 }
 0xbea   : > { %3009 = vmatmul.mubr.msk.f32.vlgmr.msra.gmra.mxu1 %vm1910_vm11, %v1890_v49 }
 0xbeb   : > { %3046 = vmatprep.mubr.msk.f32.mxu1 %vm3167_vm6, %v3166_v1 }
 0xcaa   : > { %v1980_v54 = vpop.f32.mrf.mxu1 }
 0xcab   : > { %v1981_v55 = vadd.f32 %v2682_v53, %v1980_v54 }
 0xcac   : > { %v3010_v58 = vpop.f32.mrf.mxu1 }
 0xcad   : > { %v1984_v59 = vmax.f32 %v1981_v55, 0.0 }
 0xcaf   : > { %3036 = vmatmul.mubr.msk.f32.vlgmr.msra.gmra.mxu0 %vm1910_vm11, %v1984_v59 }
 0xcb0   : > { %3057 = vmatprep.mubr.msk.f32.mxu0 %vm3167_vm6, %v3166_v1 }
 0xd6f   : > { %v2073_v57 = vpop.f32.mrf.mxu0 }
 0xd70   : > { %v2074_v63 = vadd.f32 %v2684_v61, %v2073_v57 }
 0xd71   : > { %v3037_v0 = vpop.f32.mrf.mxu0 }
 0xd72   : > { %v2080_v2 = vrot.slane %v2074_v63, %v2079_v56  ;;  %v2099_v3 = vrot.slane %v2074_v63, %v2098_v62  ;;  %v2334_v0 = vld [vmem:[%s3904_s19 + $0x18] sm:$0xff] }
 0xd74   : > { %2113 = vbcast.lane.b32.xlu0 %v2099_v3, 280  ;;  %2094 = vbcast.lane.b32.xlu1 %v2080_v2, 280 }
 0xd78   : > { %2109 = vbcast.lane.b32.xlu0 %v2099_v3, 272  ;;  %2090 = vbcast.lane.b32.xlu1 %v2080_v2, 272 }
 0xd7c   : > { %2105 = vbcast.lane.b32.xlu0 %v2099_v3, 264  ;;  %2086 = vbcast.lane.b32.xlu1 %v2080_v2, 264 }
 0xd80   : > { %2101 = vbcast.lane.b32.xlu0 %v2099_v3, 256  ;;  %2082 = vbcast.lane.b32.xlu1 %v2080_v2, 256  ;;  %v2333_v2 = vld [vmem:[%s3904_s19 + $0x10] sm:$0xff] }
 0xde6   : > { %v2114_v6 = vpop.permute.xlu0 %2113  ;;  %v2095_v4 = vpop.permute.xlu1 %2094 }
 0xde7   : > { %3039 = vmatpush3.msra.mxu1 %v2095_v4  ;;  %3050 = vmatpush3.msra.mxu0 %v2114_v6 }
 0xde8   : > { %3051 = vmatprep.subr.mxu0 %v3166_v1  ;;  %3040 = vmatprep.subr.mxu1 %v3166_v1 }
 0xdea   : > { %v2110_v5 = vpop.permute.xlu0 %2109  ;;  %v2091_v7 = vpop.permute.xlu1 %2090 }
 0xdeb   : > { %3041 = vmatpush3.msra.mxu1 %v2091_v7  ;;  %3052 = vmatpush3.msra.mxu0 %v2110_v5 }
 0xdec   : > { %3053 = vmatprep.subr.mxu0 %v3166_v1  ;;  %3042 = vmatprep.subr.mxu1 %v3166_v1 }
 0xdee   : > { %v2106_v8 = vpop.permute.xlu0 %2105  ;;  %v2087_v9 = vpop.permute.xlu1 %2086 }
 0xdef   : > { %3043 = vmatpush3.msra.mxu1 %v2087_v9  ;;  %3054 = vmatpush3.msra.mxu0 %v2106_v8 }
 0xdf0   : > { %3055 = vmatprep.subr.mxu0 %v3166_v1  ;;  %3044 = vmatprep.subr.mxu1 %v3166_v1 }
 0xdf2   : > { %v2102_v12 = vpop.permute.xlu0 %2101  ;;  %v2083_v13 = vpop.permute.xlu1 %2082 }
 0xdf3   : > { %3045 = vmatpush3.msra.mxu1 %v2083_v13  ;;  %3056 = vmatpush3.msra.mxu0 %v2102_v12 }
 0xdf4   : > { %3047 = vmatmul.mubr.msk.f32.vlgmr.msra.gmra.mxu1 %vm1345_vm9, %v3775_v10  ;;  %3058 = vmatmul.mubr.msk.f32.vlgmr.msra.gmra.mxu0 %vm1345_vm9, %v3780_v11 }
 0xdf5   : > { %3071 = vmatprep.subr.mxu0 %v3166_v1  ;;  %3079 = vmatprep.mubr.msk.f32.mxu0 %vm3167_vm6, %v3166_v1 }
 0xdf6   : > { %3072 = vmatpush3.msra.mxu0 %v2330_v15  ;;  %3060 = vmatprep.subr.mxu1 %v3166_v1 }
 0xdf7   : > { %3073 = vmatprep.subr.mxu0 %v3166_v1  ;;  %3068 = vmatprep.mubr.msk.f32.mxu1 %vm3167_vm6, %v3166_v1 }
 0xdf8   : > { %3074 = vmatpush3.msra.mxu0 %v2329_v16  ;;  %3061 = vmatpush3.msra.mxu1 %v2334_v0 }
 0xdf9   : > { %3075 = vmatprep.subr.mxu0 %v3166_v1  ;;  %3062 = vmatprep.subr.mxu1 %v3166_v1 }
 0xdfa   : > { %3076 = vmatpush3.msra.mxu0 %v2328_v17  ;;  %3063 = vmatpush3.msra.mxu1 %v2333_v2 }
 0xdfb   : > { %3077 = vmatprep.subr.mxu0 %v3166_v1  ;;  %3064 = vmatprep.subr.mxu1 %v3166_v1 }
 0xdfc   : > { %3078 = vmatpush3.msra.mxu0 %v2327_v18 }
 0xdfd   : > { %3080 = vmatmul.mubr.msk.f32.vlgmr.msra.gmra.mxu0 %vm1345_vm9, %v3682_v31 }
 0xeb4   : > { %v2184_v19 = vpop.f32.mrf.mxu1  ;;  %v2257_v20 = vpop.f32.mrf.mxu0 }
 0xeb5   : > { %v2262_v21 = vsel %vm2261_vm12, %v2184_v19, -inf  ;;  %v2269_v22 = vsel %vm2261_vm12, %v2257_v20, -inf }
 0xeb6   : > { %v2263_v23 = vrot.slane %v2262_v21, 4  ;;  %v2270_v24 = vrot.slane %v2269_v22, 4  ;;  %v3048_v25 = vpop.f32.mrf.mxu1  ;;  %v3059_v26 = vpop.f32.mrf.mxu0 }
 0xeb7   : > { %v2496_v26 = vld [vmem:[%s3906_s21 + $0x30] sm:$0xff] }
 0xeb8   : > { %v2264_v27 = vmax.f32 %v2262_v21, %v2263_v23  ;;  %v2271_v28 = vmax.f32 %v2269_v22, %v2270_v24  ;;  %v2497_v24 = vld [vmem:[%s3906_s21 + $0x38] sm:$0xff] }
 0xeba   : > { %v2265_v29 = vrot.slane %v2264_v27, 2  ;;  %v2272_v30 = vrot.slane %v2271_v28, 2 }
 0xebc   : > { %v2266_v32 = vmax.f32 %v2264_v27, %v2265_v29  ;;  %v2273_v33 = vmax.f32 %v2271_v28, %v2272_v30  ;;  %v2495_v27 = vld [vmem:[%s3906_s21 + $0x28] sm:$0xff]  ;;  %v2494_v28 = vld [vmem:[%s3906_s21 + $0x20] sm:$0xff]  ;;  %v2493_v29 = vld [vmem:[%s3906_s21 + $0x18] sm:$0xff] }
 0xebd   : > { %v3811_v34 = vpop.f32.mrf.mxu0  ;;  %v2492_v30 = vld [vmem:[%s3906_s21 + $0x10] sm:$0xff] }
 0xebe   : > { %v2267_v31 = vrot.slane %v2266_v32, 1  ;;  %v2274_v35 = vrot.slane %v2273_v33, 1 }
 0xebf   : > { %v3081_v36 = vpop.f32.mrf.mxu0 }
 0xec0   : > { %v2268_v37 = vmax.f32 %v2266_v32, %v2267_v31  ;;  %v2275_v38 = vmax.f32 %v2273_v33, %v2274_v35  ;;  %v2491_v32 = vld [vmem:[%s3906_s21 + $0x8] sm:$0xff]  ;;  %v2490_v33 = vld [vmem:[%s3906_s21] sm:$0xff] }
 0xec1   : > { %v2690_v35 = vld [vmem:[%s3905_s20] ss:$0 sm:$0xff] }
 0xec2   : > { %v2276_v39 = vsub.f32 %v2184_v19, %v2268_v37  ;;  %v2277_v40 = vsub.f32 %v2257_v20, %v2275_v38 }
 0xec4   : > { %v2278_v41 = vmul.f32 1.442695, %v2276_v39  ;;  %v2280_v42 = vmul.f32 1.442695, %v2277_v40 }
 0xec6   : > { %3146 = vpow2.f32 %v2278_v41 }
 0xec7   : > { %3148 = vpow2.f32 %v2280_v42 }
 0xed3   : > { %v3147_v43 = vpop.eup %3146 }
 0xed4   : > { %v3149_v45 = vpop.eup %3148  ;;  %v2282_v46 = vsel %vm2261_vm12, %v3147_v43, 0.0 }
 0xed5   : > { %v2283_v47 = vrot.slane %v2282_v46, 4  ;;  %v2289_v48 = vsel %vm2261_vm12, %v3149_v45, 0.0 }
 0xed6   : > { %v2290_v49 = vrot.slane %v2289_v48, 4 }
 0xed7   : > { %v2284_v50 = vadd.f32 %v2283_v47, %v2282_v46 }
 0xed8   : > { %v2291_v51 = vadd.f32 %v2290_v49, %v2289_v48 }
 0xed9   : > { %v2285_v52 = vrot.slane %v2284_v50, 2 }
 0xeda   : > { %v2292_v53 = vrot.slane %v2291_v51, 2 }
 0xedb   : > { %v2286_v54 = vadd.f32 %v2285_v52, %v2284_v50 }
 0xedc   : > { %v2293_v55 = vadd.f32 %v2292_v53, %v2291_v51 }
 0xedd   : > { %v2287_v58 = vrot.slane %v2286_v54, 1 }
 0xede   : > { %v2294_v59 = vrot.slane %v2293_v55, 1 }
 0xedf   : > { %v2288_v60 = vadd.f32 %v2287_v58, %v2286_v54 }
 0xee0   : > { %v2295_v61 = vadd.f32 %v2294_v59, %v2293_v55 }
 0xee1   : > { %3150 = vrcp.f32 %v2288_v60 }
 0xee2   : > { %3152 = vrcp.f32 %v2295_v61 }
 0xeee   : > { %v3151_v56 = vpop.eup %3150 }
 0xeef   : > { %v3153_v62 = vpop.eup %3152  ;;  %v2298_v57 = vmul.f32 %v3151_v56, %v3147_v43 }
 0xef0   : > { %v2299_v63 = vmul.f32 %v3153_v62, %v3149_v45 }
 0xef1   : > { %2302 = vperm.xlu1 %3129, %v2298_v57  }
 0xef2   : > { %2307 = vperm.xlu0 %3128, %v2299_v63  }
 0xef5   : > { %2584 = vrot.lane.b32.xlu1 %v3575_v44, %s3170_s29  ;;  %v2332_v44 = vld [vmem:[%s3904_s19 + $0x8] sm:$0xff] }
 0xef6   : > { %2591 = vrot.lane.b32.xlu0 %v3625_v14, %s3170_s29  ;;  %3065 = vmatpush3.msra.mxu1 %v2332_v44  ;;  %v2331_v14 = vld [vmem:[%s3904_s19] sm:$0xff] }
 0xef7   : > { %3066 = vmatprep.subr.mxu1 %v3166_v1 }
 0xef8   : > { %3067 = vmatpush3.msra.mxu1 %v2331_v14 }
 0xef9   : > { %3082 = vmatprep.subr.mxu1 %v3166_v1 }
 0xf6c   : > { %v2303_v3 = vpop.permute.xlu1 %2302 }
 0xf6d   : > { %v2310_v6 = vmul.f32 %v2303_v3, %v3775_v10  ;;  %v2308_v4 = vpop.permute.xlu0 %2307 }
 0xf6e   : > { %v2311_v5 = vmul.f32 %v2308_v4, %v3780_v11 }
 0xf6f   : > { %v2313_v7 = vsel %vm2312_vm10, %v2310_v6, 0.0 }
 0xf70   : > { %v2314_v8 = vrot.slane %v2313_v7, 4  ;;  %v2320_v9 = vsel %vm2312_vm10, %v2311_v5, 0.0  ;;  %v2585_v12 = vpop.permute.xlu1 %2584 }
 0xf71   : > { %v2321_v13 = vrot.slane %v2320_v9, 4  ;;  %2587 = vst.msk [vmem:[#allocation3] sm:$0x3] %vm2312_vm10, %v2585_v12  ;;  %v2592_v15 = vpop.permute.xlu0 %2591 }
 0xf72   : > { %v2315_v16 = vadd.f32 %v2314_v8, %v2313_v7  ;;  %2594 = vst.msk [vmem:[#allocation5] sm:$0x3] %vm2312_vm10, %v2592_v15 }
 0xf73   : > { %v2322_v17 = vadd.f32 %v2321_v13, %v2320_v9 }
 0xf74   : > { %v2316_v18 = vrot.slane %v2315_v16, 2 }
 0xf75   : > { %v2323_v19 = vrot.slane %v2322_v17, 2 }
 0xf76   : > { %v2317_v10 = vadd.f32 %v2316_v18, %v2315_v16 }
 0xf77   : > { %v2324_v20 = vadd.f32 %v2323_v19, %v2322_v17 }
 0xf78   : > { %v2318_v21 = vrot.slane %v2317_v10, 1 }
 0xf79   : > { %v2325_v11 = vrot.slane %v2324_v20, 1 }
 0xf7a   : > { %v2319_v22 = vadd.f32 %v2318_v21, %v2317_v10 }
 0xf7b   : > { %v2326_v23 = vadd.f32 %v2325_v11, %v2324_v20 }
 0xf7d   : > { %v2338_v25 = vsel %vm2337_vm13, %v2326_v23, %v2319_v22 }
 0xf7e   : > { %3069 = vmatmul.mubr.msk.f32.vlgmr.msra.gmra.mxu1 %vm1345_vm9, %v2338_v25  ;;  %2596 = vst.msk [vmem:[#allocation6] sm:$0x3] %vm2312_vm10, %v2338_v25 }
 0xf7f   : > { %3083 = vmatpush3.msra.mxu1 %v2497_v24  ;;  %3098 = vmatprep.mubr.msk.f32.mxu1 %vm3167_vm6, %v3166_v1 }
 0xf80   : > { %3084 = vmatprep.subr.mxu1 %v3166_v1 }
 0xf81   : > { %3085 = vmatpush3.msra.mxu1 %v2496_v26 }
 0xf82   : > { %3086 = vmatprep.subr.mxu1 %v3166_v1 }
 0xf83   : > { %3087 = vmatpush3.msra.mxu1 %v2495_v27 }
 0xf84   : > { %3088 = vmatprep.subr.mxu1 %v3166_v1 }
 0xf85   : > { %3089 = vmatpush3.msra.mxu1 %v2494_v28 }
 0xf86   : > { %3090 = vmatprep.subr.mxu1 %v3166_v1 }
 0xf87   : > { %3091 = vmatpush3.msra.mxu1 %v2493_v29 }
 0xf88   : > { %3092 = vmatprep.subr.mxu1 %v3166_v1 }
 0xf89   : > { %3093 = vmatpush3.msra.mxu1 %v2492_v30 }
 0xf8a   : > { %3094 = vmatprep.subr.mxu1 %v3166_v1 }
 0xf8b   : > { %3095 = vmatpush3.msra.mxu1 %v2491_v32 }
 0xf8c   : > { %3096 = vmatprep.subr.mxu1 %v3166_v1  ;;  %v2691_v1 = vld [vmem:[%s3907_s22] ss:$0 sm:$0xff] }
 0xf8d   : > { %3097 = vmatpush3.msra.mxu1 %v2490_v33 }
0x103e   : > { %v2407_v31 = vpop.f32.mrf.mxu1 }
0x103f   : > { %v2478_v36 = vadd.f32 %v3811_v34, %v2407_v31 }
0x1040   : > { %v3070_v37 = vpop.f32.mrf.mxu1 }
0x1041   : > { %v2488_v38 = vadd.f32 %v2690_v35, %v2478_v36 }
0x1043   : > { %v2489_v39 = vmax.f32 %v2488_v38, 0.0 }
0x1045   : > { %3099 = vmatmul.mubr.msk.f32.vlgmr.msra.gmra.mxu1 %vm2505_vm14, %v2489_v39 }
0x1105   : > { %v2575_v40 = vpop.f32.mrf.mxu1 }
0x1106   : > { %v2576_v41 = vadd.f32 %v2691_v1, %v2575_v40 }
0x1107   : > { %v3100_v42 = vpop.f32.mrf.mxu1 }
0x1108   : > { %2580 = vst.msk [vmem:[%s3307_s7] sm:$0x3] %vm2579_vm15, %v2576_v41 }
0x1109 PF: > { %s33_s4 = sadd.s32 1, %s3160_s4  }
0x110a   : > { %p30_p5 = scmp.ge.s32.totalorder %s33_s4, 5  }
0x110c   :  { %32 = sbr.rel (!%p30_p5) target bundleno = 9 (0x9), region = 148 }

</bundles_post_ra>
